<compile_context>
chip_gen: v7x
topology: tpu7x:2x2x1
jax: 0.10.0
libtpu: 0.0.40
codegen_flags: <defaults>
</compile_context>

<pallas_src>
import jax
import jax.numpy as jnp
from jax import lax
from jax.experimental import pallas as pl
from jax.experimental.pallas import tpu as pltpu


H = 128           # embedding / hidden dimension (lane-aligned)
VPAD = 128        # vocab padded to one MXU-friendly tile for the one-hot gather
TILE_B = 512      # batch rows (lanes) per grid step
STRIP = 128       # compute sub-strip width (bounds vreg live ranges)
NUM_USERS = 16
NUM_MOVIES = 32


def _recommend_kernel(uid_ref, mid_ref, ut_ref, mt_ref, wut_ref, wmt_ref,
                      bu_ref, bm_ref, out_ref):
    # uid_ref, mid_ref: (1, TILE_B) i32   request ids (batch along lanes)
    # ut_ref, mt_ref:   (H, VPAD)   bf16  embedding tables^T, vocab-padded (resident)
    # wut_ref, wmt_ref: (H, H)      bf16  projection weights^T (out, in)   (resident)
    # bu_ref, bm_ref:   (H, 1)      f32   biases (column)                  (resident)
    # out_ref:          (1, TILE_B) f32   packed per-request dot products
    vocab_iota = lax.broadcasted_iota(jnp.int32, (VPAD, STRIP), 0)  # hoisted

    # Strip-mine the 512-wide block into 128-lane strips: keeps concurrent f32
    # intermediates small; static trip count -> fully unrolled for the scheduler.
    for s in range(TILE_B // STRIP):
        off = s * STRIP
        uids = uid_ref[:, off:off + STRIP]                      # (1, STRIP) i32
        mids = mid_ref[:, off:off + STRIP]

        # In-kernel gather: one-hot (vocab, strip) bf16 matmul vs resident tables.
        oh_u = jnp.where(vocab_iota == uids, 1.0, 0.0).astype(jnp.bfloat16)
        oh_m = jnp.where(vocab_iota == mids, 1.0, 0.0).astype(jnp.bfloat16)
        u = jnp.dot(ut_ref[...], oh_u, preferred_element_type=jnp.float32)  # (H, STRIP)
        m = jnp.dot(mt_ref[...], oh_m, preferred_element_type=jnp.float32)

        # Linear + ReLU towers (bf16 MXU matmuls, f32 accumulate / bias / ReLU).
        ue = jnp.dot(wut_ref[...], u.astype(jnp.bfloat16),
                     preferred_element_type=jnp.float32) + bu_ref[...]
        me = jnp.dot(wmt_ref[...], m.astype(jnp.bfloat16),
                     preferred_element_type=jnp.float32) + bm_ref[...]
        ue = jnp.maximum(ue, 0.0)
        me = jnp.maximum(me, 0.0)

        # Per-request torch.dot(user_emb, movie_emb): reduce over H (sublanes);
        # the result is already packed and lane-dense.
        dots = jnp.sum(ue * me, axis=0, keepdims=True)          # (1, STRIP) f32
        out_ref[:, off:off + STRIP] = dots


def recommend_pallas(uids, mids, ut, mt, wut, wmt, bu, bm):
    """uids, mids: (1, B) int32 with B a multiple of TILE_B.

    Returns (B,) f32 likelihoods (packed, lane-dense output)."""
    B = uids.shape[1]
    assert B % TILE_B == 0, "batch must be padded to a multiple of TILE_B"
    grid = (B // TILE_B,)

    # 2 one-hot gathers + 2 projections, each 2*H*VPAD MACs per request.
    flops = 8 * H * VPAD * B
    bytes_accessed = (
        2 * B * 4 + B * 4                      # ids in, packed dots out
        + 2 * H * VPAD * 2 + 2 * H * H * 2     # resident bf16 tables + weights (once)
        + 2 * H * 4                            # biases
    )

    resident = lambda b: (0, 0)
    out = pl.pallas_call(
        _recommend_kernel,
        out_shape=jax.ShapeDtypeStruct((1, B), jnp.float32),
        grid=grid,
        in_specs=[
            pl.BlockSpec((1, TILE_B), lambda b: (0, b)),   # user ids   (per step)
            pl.BlockSpec((1, TILE_B), lambda b: (0, b)),   # movie ids  (per step)
            pl.BlockSpec((H, VPAD), resident),             # user table^T  (resident)
            pl.BlockSpec((H, VPAD), resident),             # movie table^T (resident)
            pl.BlockSpec((H, H), resident),                # Wu^T          (resident)
            pl.BlockSpec((H, H), resident),                # Wm^T          (resident)
            pl.BlockSpec((H, 1), resident),                # bu            (resident)
            pl.BlockSpec((H, 1), resident),                # bm            (resident)
        ],
        out_specs=pl.BlockSpec((1, TILE_B), lambda b: (0, b)),
        compiler_params=pltpu.CompilerParams(
            dimension_semantics=("parallel",)),
        cost_estimate=pl.CostEstimate(
            flops=flops, transcendentals=0, bytes_accessed=bytes_accessed),
    )(uids, mids, ut, mt, wut, wmt, bu, bm)
    return out[0]


@jax.jit
def _forward_batched(uids, mids, ut, mt, wut, wmt, bu, bm):
    return recommend_pallas(uids.reshape(1, -1), mids.reshape(1, -1),
                            ut, mt, wut, wmt, bu, bm)


def _string_to_id(s: str, vocab: int) -> int:
    # Deterministic string -> index mapping (stand-in for a tokenizer/lookup).
    return sum(ord(c) for c in s) % vocab


class RecommendMasterJax:
    """Parameter container + forward wrapper mirroring recommendMaster."""

    def __init__(self, key):
        k1, k2, k3, k4, k5, k6 = jax.random.split(key, 6)
        scale = 0.02

        def padded_table_t(k, vocab):
            t = scale * jax.random.normal(k, (H, vocab), jnp.float32)
            return jnp.pad(t, ((0, 0), (0, VPAD - vocab))).astype(jnp.bfloat16)

        # Embedding tables stored transposed (H, vocab_pad) in bf16 (resident).
        self.user_table_t = padded_table_t(k1, NUM_USERS)
        self.movie_table_t = padded_table_t(k2, NUM_MOVIES)
        # Projection weights stored transposed (out, in) in bf16.
        self.w_user_t = (scale * jax.random.normal(k3, (H, H), jnp.float32)).astype(jnp.bfloat16)
        self.w_movie_t = (scale * jax.random.normal(k5, (H, H), jnp.float32)).astype(jnp.bfloat16)
        # Biases stored as (H, 1) f32 columns.
        self.b_user = scale * jax.random.normal(k4, (H, 1), jnp.float32)
        self.b_movie = scale * jax.random.normal(k6, (H, 1), jnp.float32)

    def _ids(self, user_info, movie_info):
        single = isinstance(user_info, str)
        users = [user_info] if single else list(user_info)
        movies = [movie_info] if isinstance(movie_info, str) else list(movie_info)
        assert len(users) == len(movies)
        uids = jnp.array([_string_to_id(s, NUM_USERS) for s in users], jnp.int32)
        mids = jnp.array([_string_to_id(s, NUM_MOVIES) for s in movies], jnp.int32)
        return uids, mids, len(users), single

    def forward(self, user_info, movie_info):
        """Single (str, str) pair -> scalar likelihood (original semantics),
        or lists of strings -> (B,) likelihoods (batched)."""
        uids, mids, n, single = self._ids(user_info, movie_info)
        pad = (-n) % TILE_B
        if pad:
            uids = jnp.concatenate([uids, jnp.zeros((pad,), jnp.int32)])
            mids = jnp.concatenate([mids, jnp.zeros((pad,), jnp.int32)])
        out = _forward_batched(uids, mids, self.user_table_t, self.movie_table_t,
                               self.w_user_t, self.w_movie_t, self.b_user, self.b_movie)
        out = out[:n]
        return out[0] if single else out

    def forward_ref(self, user_info, movie_info):
        # Pure-JAX reference (same dtypes as the kernel path).
        uids, mids, n, single = self._ids(user_info, movie_info)
        u = jnp.take(self.user_table_t, uids, axis=1).T        # (n, H) bf16
        m = jnp.take(self.movie_table_t, mids, axis=1).T
        ue = jnp.maximum(
            jnp.dot(u, self.w_user_t.T, preferred_element_type=jnp.float32)
            + self.b_user.T, 0.0)
        me = jnp.maximum(
            jnp.dot(m, self.w_movie_t.T, preferred_element_type=jnp.float32)
            + self.b_movie.T, 0.0)
        out = jnp.sum(ue * me, axis=-1)
        return out[0] if single else out


if __name__ == "__main__":
    model = RecommendMasterJax(jax.random.PRNGKey(0))

    # Small batched request (padded to one TILE_B=512 grid step).
    users = [f"user_{i}" for i in range(16)]
    movies = [f"movie_title_{i}" for i in range(16)]
    out = jax.block_until_ready(model.forward(users, movies))
    ref = jax.block_until_ready(model.forward_ref(users, movies))
    assert out.shape == (16,)
    assert jnp.allclose(out, ref, rtol=1e-3, atol=1e-5), (out, ref)

    # Larger batch exercising a multi-step grid (1030 -> 1536 rows, grid=(3,)).
    users_l = [f"user_{i % 97}" for i in range(1030)]
    movies_l = [f"movie_{i % 131}" for i in range(1030)]
    out_l = jax.block_until_ready(model.forward(users_l, movies_l))
    ref_l = jax.block_until_ready(model.forward_ref(users_l, movies_l))
    assert out_l.shape == (1030,)
    assert jnp.allclose(out_l, ref_l, rtol=1e-3, atol=1e-5), (out_l, ref_l)

    # Original single-pair semantics: scalar likelihood.
    single = jax.block_until_ready(model.forward("user_42", "the_matrix"))
    single_ref = jax.block_until_ready(model.forward_ref("user_42", "the_matrix"))
    assert single.ndim == 0
    assert jnp.allclose(single, single_ref, rtol=1e-3, atol=1e-5), (single, single_ref)

    print("KERNEL_OK")
</pallas_src>

<mosaic_0001>
module attributes {stable_mosaic.version = 11 : i64} {
  func.func @_recommend_kernel(%arg0: i32, %arg1: memref<1x512xi32, #tpu.memory_space<vmem>>, %arg2: memref<1x512xi32, #tpu.memory_space<vmem>>, %arg3: memref<128x128xbf16, #tpu.memory_space<vmem>>, %arg4: memref<128x128xbf16, #tpu.memory_space<vmem>>, %arg5: memref<128x128xbf16, #tpu.memory_space<vmem>>, %arg6: memref<128x128xbf16, #tpu.memory_space<vmem>>, %arg7: memref<128x1xf32, #tpu.memory_space<vmem>>, %arg8: memref<128x1xf32, #tpu.memory_space<vmem>>, %arg9: memref<1x512xf32, #tpu.memory_space<vmem>>) attributes {dimension_semantics = [#tpu.dimension_semantics<parallel>], iteration_bounds = array<i64: 1>, scalar_prefetch = 0 : i64, scratch_operands = 0 : i64, tpu.core_type = #tpu.core_type<tc>, window_params = [{transform_indices = @transform_0, window_bounds = array<i64: 1, 512>}, {transform_indices = @transform_1, window_bounds = array<i64: 1, 512>}, {pipeline_mode = #tpu.pipeline_mode<synchronous>, transform_indices = @transform_2, window_bounds = array<i64: 128, 128>}, {pipeline_mode = #tpu.pipeline_mode<synchronous>, transform_indices = @transform_3, window_bounds = array<i64: 128, 128>}, {pipeline_mode = #tpu.pipeline_mode<synchronous>, transform_indices = @transform_4, window_bounds = array<i64: 128, 128>}, {pipeline_mode = #tpu.pipeline_mode<synchronous>, transform_indices = @transform_5, window_bounds = array<i64: 128, 128>}, {pipeline_mode = #tpu.pipeline_mode<synchronous>, transform_indices = @transform_6, window_bounds = array<i64: 128, 1>}, {pipeline_mode = #tpu.pipeline_mode<synchronous>, transform_indices = @transform_7, window_bounds = array<i64: 128, 1>}, {transform_indices = @transform_8, window_bounds = array<i64: 1, 512>}]} {
    %0 = tpu.iota {dimensions = array<i32: 0>} : vector<128x128xi32>
    %c0 = arith.constant 0 : index
    %c0_0 = arith.constant 0 : index
    %1 = vector.load %arg1[%c0, %c0_0] : memref<1x512xi32, #tpu.memory_space<vmem>>, vector<1x128xi32>
    %c0_1 = arith.constant 0 : index
    %c0_2 = arith.constant 0 : index
    %2 = vector.load %arg2[%c0_1, %c0_2] : memref<1x512xi32, #tpu.memory_space<vmem>>, vector<1x128xi32>
    %3 = vector.broadcast %1 : vector<1x128xi32> to vector<128x128xi32>
    %4 = arith.cmpi eq, %0, %3 : vector<128x128xi32>
    %cst = arith.constant 1.000000e+00 : f32
    %cst_3 = arith.constant 0.000000e+00 : f32
    %5 = vector.broadcast %cst : f32 to vector<128x128xf32>
    %6 = vector.broadcast %cst_3 : f32 to vector<128x128xf32>
    %7 = arith.select %4, %5, %6 : vector<128x128xi1>, vector<128x128xf32>
    %8 = arith.truncf %7 : vector<128x128xf32> to vector<128x128xbf16>
    %9 = vector.broadcast %2 : vector<1x128xi32> to vector<128x128xi32>
    %10 = arith.cmpi eq, %0, %9 : vector<128x128xi32>
    %cst_4 = arith.constant 1.000000e+00 : f32
    %cst_5 = arith.constant 0.000000e+00 : f32
    %11 = vector.broadcast %cst_4 : f32 to vector<128x128xf32>
    %12 = vector.broadcast %cst_5 : f32 to vector<128x128xf32>
    %13 = arith.select %10, %11, %12 : vector<128x128xi1>, vector<128x128xf32>
    %14 = arith.truncf %13 : vector<128x128xf32> to vector<128x128xbf16>
    %c0_6 = arith.constant 0 : index
    %c0_7 = arith.constant 0 : index
    %15 = vector.load %arg3[%c0_6, %c0_7] : memref<128x128xbf16, #tpu.memory_space<vmem>>, vector<128x128xbf16>
    %cst_8 = arith.constant dense<0.000000e+00> : vector<128x128xf32>
    %16 = tpu.matmul %15, %8, %cst_8 {dimension_numbers = #tpu.dot_dimension_numbers<[1], [0], [0], [1], [0, 0, 1, 1], [], []>} : vector<128x128xbf16>, vector<128x128xbf16>, vector<128x128xf32> -> vector<128x128xf32>
    %c0_9 = arith.constant 0 : index
    %c0_10 = arith.constant 0 : index
    %17 = vector.load %arg4[%c0_9, %c0_10] : memref<128x128xbf16, #tpu.memory_space<vmem>>, vector<128x128xbf16>
    %cst_11 = arith.constant dense<0.000000e+00> : vector<128x128xf32>
    %18 = tpu.matmul %17, %14, %cst_11 {dimension_numbers = #tpu.dot_dimension_numbers<[1], [0], [0], [1], [0, 0, 1, 1], [], []>} : vector<128x128xbf16>, vector<128x128xbf16>, vector<128x128xf32> -> vector<128x128xf32>
    %c0_12 = arith.constant 0 : index
    %c0_13 = arith.constant 0 : index
    %19 = vector.load %arg5[%c0_12, %c0_13] : memref<128x128xbf16, #tpu.memory_space<vmem>>, vector<128x128xbf16>
    %20 = arith.truncf %16 : vector<128x128xf32> to vector<128x128xbf16>
    %cst_14 = arith.constant dense<0.000000e+00> : vector<128x128xf32>
    %21 = tpu.matmul %19, %20, %cst_14 {dimension_numbers = #tpu.dot_dimension_numbers<[1], [0], [0], [1], [0, 0, 1, 1], [], []>} : vector<128x128xbf16>, vector<128x128xbf16>, vector<128x128xf32> -> vector<128x128xf32>
    %c0_15 = arith.constant 0 : index
    %c0_16 = arith.constant 0 : index
    %22 = vector.load %arg7[%c0_15, %c0_16] : memref<128x1xf32, #tpu.memory_space<vmem>>, vector<128x1xf32>
    %23 = vector.broadcast %22 : vector<128x1xf32> to vector<128x128xf32>
    %24 = arith.addf %21, %23 : vector<128x128xf32>
    %c0_17 = arith.constant 0 : index
    %c0_18 = arith.constant 0 : index
    %25 = vector.load %arg6[%c0_17, %c0_18] : memref<128x128xbf16, #tpu.memory_space<vmem>>, vector<128x128xbf16>
    %26 = arith.truncf %18 : vector<128x128xf32> to vector<128x128xbf16>
    %cst_19 = arith.constant dense<0.000000e+00> : vector<128x128xf32>
    %27 = tpu.matmul %25, %26, %cst_19 {dimension_numbers = #tpu.dot_dimension_numbers<[1], [0], [0], [1], [0, 0, 1, 1], [], []>} : vector<128x128xbf16>, vector<128x128xbf16>, vector<128x128xf32> -> vector<128x128xf32>
    %c0_20 = arith.constant 0 : index
    %c0_21 = arith.constant 0 : index
    %28 = vector.load %arg8[%c0_20, %c0_21] : memref<128x1xf32, #tpu.memory_space<vmem>>, vector<128x1xf32>
    %29 = vector.broadcast %28 : vector<128x1xf32> to vector<128x128xf32>
    %30 = arith.addf %27, %29 : vector<128x128xf32>
    %cst_22 = arith.constant 0.000000e+00 : f32
    %31 = vector.broadcast %cst_22 : f32 to vector<128x128xf32>
    %32 = arith.maximumf %24, %31 : vector<128x128xf32>
    %cst_23 = arith.constant 0.000000e+00 : f32
    %33 = vector.broadcast %cst_23 : f32 to vector<128x128xf32>
    %34 = arith.maximumf %30, %33 : vector<128x128xf32>
    %35 = arith.mulf %32, %34 : vector<128x128xf32>
    %cst_24 = arith.constant dense<0.000000e+00> : vector<128xf32>
    %36 = vector.multi_reduction <add>, %35, %cst_24 [0] : vector<128x128xf32> to vector<128xf32>
    %37 = vector.shape_cast %36 : vector<128xf32> to vector<1x128xf32>
    %c0_25 = arith.constant 0 : index
    %c0_26 = arith.constant 0 : index
    %38 = vector.load %arg9[%c0_25, %c0_26] : memref<1x512xf32, #tpu.memory_space<vmem>>, vector<1x128xf32>
    tpu.vector_store %arg9[%c0_25, %c0_26], %37 {strides = array<i32>} : memref<1x512xf32, #tpu.memory_space<vmem>>, vector<1x128xf32>,
    %c0_27 = arith.constant 0 : index
    %c128 = arith.constant 128 : index
    %39 = vector.load %arg1[%c0_27, %c128] : memref<1x512xi32, #tpu.memory_space<vmem>>, vector<1x128xi32>
    %c0_28 = arith.constant 0 : index
    %c128_29 = arith.constant 128 : index
    %40 = vector.load %arg2[%c0_28, %c128_29] : memref<1x512xi32, #tpu.memory_space<vmem>>, vector<1x128xi32>
    %41 = vector.broadcast %39 : vector<1x128xi32> to vector<128x128xi32>
    %42 = arith.cmpi eq, %0, %41 : vector<128x128xi32>
    %cst_30 = arith.constant 1.000000e+00 : f32
    %cst_31 = arith.constant 0.000000e+00 : f32
    %43 = vector.broadcast %cst_30 : f32 to vector<128x128xf32>
    %44 = vector.broadcast %cst_31 : f32 to vector<128x128xf32>
    %45 = arith.select %42, %43, %44 : vector<128x128xi1>, vector<128x128xf32>
    %46 = arith.truncf %45 : vector<128x128xf32> to vector<128x128xbf16>
    %47 = vector.broadcast %40 : vector<1x128xi32> to vector<128x128xi32>
    %48 = arith.cmpi eq, %0, %47 : vector<128x128xi32>
    %cst_32 = arith.constant 1.000000e+00 : f32
    %cst_33 = arith.constant 0.000000e+00 : f32
    %49 = vector.broadcast %cst_32 : f32 to vector<128x128xf32>
    %50 = vector.broadcast %cst_33 : f32 to vector<128x128xf32>
    %51 = arith.select %48, %49, %50 : vector<128x128xi1>, vector<128x128xf32>
    %52 = arith.truncf %51 : vector<128x128xf32> to vector<128x128xbf16>
    %c0_34 = arith.constant 0 : index
    %c0_35 = arith.constant 0 : index
    %53 = vector.load %arg3[%c0_34, %c0_35] : memref<128x128xbf16, #tpu.memory_space<vmem>>, vector<128x128xbf16>
    %cst_36 = arith.constant dense<0.000000e+00> : vector<128x128xf32>
    %54 = tpu.matmul %53, %46, %cst_36 {dimension_numbers = #tpu.dot_dimension_numbers<[1], [0], [0], [1], [0, 0, 1, 1], [], []>} : vector<128x128xbf16>, vector<128x128xbf16>, vector<128x128xf32> -> vector<128x128xf32>
    %c0_37 = arith.constant 0 : index
    %c0_38 = arith.constant 0 : index
    %55 = vector.load %arg4[%c0_37, %c0_38] : memref<128x128xbf16, #tpu.memory_space<vmem>>, vector<128x128xbf16>
    %cst_39 = arith.constant dense<0.000000e+00> : vector<128x128xf32>
    %56 = tpu.matmul %55, %52, %cst_39 {dimension_numbers = #tpu.dot_dimension_numbers<[1], [0], [0], [1], [0, 0, 1, 1], [], []>} : vector<128x128xbf16>, vector<128x128xbf16>, vector<128x128xf32> -> vector<128x128xf32>
    %c0_40 = arith.constant 0 : index
    %c0_41 = arith.constant 0 : index
    %57 = vector.load %arg5[%c0_40, %c0_41] : memref<128x128xbf16, #tpu.memory_space<vmem>>, vector<128x128xbf16>
    %58 = arith.truncf %54 : vector<128x128xf32> to vector<128x128xbf16>
    %cst_42 = arith.constant dense<0.000000e+00> : vector<128x128xf32>
    %59 = tpu.matmul %57, %58, %cst_42 {dimension_numbers = #tpu.dot_dimension_numbers<[1], [0], [0], [1], [0, 0, 1, 1], [], []>} : vector<128x128xbf16>, vector<128x128xbf16>, vector<128x128xf32> -> vector<128x128xf32>
    %c0_43 = arith.constant 0 : index
    %c0_44 = arith.constant 0 : index
    %60 = vector.load %arg7[%c0_43, %c0_44] : memref<128x1xf32, #tpu.memory_space<vmem>>, vector<128x1xf32>
    %61 = vector.broadcast %60 : vector<128x1xf32> to vector<128x128xf32>
    %62 = arith.addf %59, %61 : vector<128x128xf32>
    %c0_45 = arith.constant 0 : index
    %c0_46 = arith.constant 0 : index
    %63 = vector.load %arg6[%c0_45, %c0_46] : memref<128x128xbf16, #tpu.memory_space<vmem>>, vector<128x128xbf16>
    %64 = arith.truncf %56 : vector<128x128xf32> to vector<128x128xbf16>
    %cst_47 = arith.constant dense<0.000000e+00> : vector<128x128xf32>
    %65 = tpu.matmul %63, %64, %cst_47 {dimension_numbers = #tpu.dot_dimension_numbers<[1], [0], [0], [1], [0, 0, 1, 1], [], []>} : vector<128x128xbf16>, vector<128x128xbf16>, vector<128x128xf32> -> vector<128x128xf32>
    %c0_48 = arith.constant 0 : index
    %c0_49 = arith.constant 0 : index
    %66 = vector.load %arg8[%c0_48, %c0_49] : memref<128x1xf32, #tpu.memory_space<vmem>>, vector<128x1xf32>
    %67 = vector.broadcast %66 : vector<128x1xf32> to vector<128x128xf32>
    %68 = arith.addf %65, %67 : vector<128x128xf32>
    %cst_50 = arith.constant 0.000000e+00 : f32
    %69 = vector.broadcast %cst_50 : f32 to vector<128x128xf32>
    %70 = arith.maximumf %62, %69 : vector<128x128xf32>
    %cst_51 = arith.constant 0.000000e+00 : f32
    %71 = vector.broadcast %cst_51 : f32 to vector<128x128xf32>
    %72 = arith.maximumf %68, %71 : vector<128x128xf32>
    %73 = arith.mulf %70, %72 : vector<128x128xf32>
    %cst_52 = arith.constant dense<0.000000e+00> : vector<128xf32>
    %74 = vector.multi_reduction <add>, %73, %cst_52 [0] : vector<128x128xf32> to vector<128xf32>
    %75 = vector.shape_cast %74 : vector<128xf32> to vector<1x128xf32>
    %c0_53 = arith.constant 0 : index
    %c128_54 = arith.constant 128 : index
    %76 = vector.load %arg9[%c0_53, %c128_54] : memref<1x512xf32, #tpu.memory_space<vmem>>, vector<1x128xf32>
    tpu.vector_store %arg9[%c0_53, %c128_54], %75 {strides = array<i32>} : memref<1x512xf32, #tpu.memory_space<vmem>>, vector<1x128xf32>,
    %c0_55 = arith.constant 0 : index
    %c256 = arith.constant 256 : index
    %77 = vector.load %arg1[%c0_55, %c256] : memref<1x512xi32, #tpu.memory_space<vmem>>, vector<1x128xi32>
    %c0_56 = arith.constant 0 : index
    %c256_57 = arith.constant 256 : index
    %78 = vector.load %arg2[%c0_56, %c256_57] : memref<1x512xi32, #tpu.memory_space<vmem>>, vector<1x128xi32>
    %79 = vector.broadcast %77 : vector<1x128xi32> to vector<128x128xi32>
    %80 = arith.cmpi eq, %0, %79 : vector<128x128xi32>
    %cst_58 = arith.constant 1.000000e+00 : f32
    %cst_59 = arith.constant 0.000000e+00 : f32
    %81 = vector.broadcast %cst_58 : f32 to vector<128x128xf32>
    %82 = vector.broadcast %cst_59 : f32 to vector<128x128xf32>
    %83 = arith.select %80, %81, %82 : vector<128x128xi1>, vector<128x128xf32>
    %84 = arith.truncf %83 : vector<128x128xf32> to vector<128x128xbf16>
    %85 = vector.broadcast %78 : vector<1x128xi32> to vector<128x128xi32>
    %86 = arith.cmpi eq, %0, %85 : vector<128x128xi32>
    %cst_60 = arith.constant 1.000000e+00 : f32
    %cst_61 = arith.constant 0.000000e+00 : f32
    %87 = vector.broadcast %cst_60 : f32 to vector<128x128xf32>
    %88 = vector.broadcast %cst_61 : f32 to vector<128x128xf32>
    %89 = arith.select %86, %87, %88 : vector<128x128xi1>, vector<128x128xf32>
    %90 = arith.truncf %89 : vector<128x128xf32> to vector<128x128xbf16>
    %c0_62 = arith.constant 0 : index
    %c0_63 = arith.constant 0 : index
    %91 = vector.load %arg3[%c0_62, %c0_63] : memref<128x128xbf16, #tpu.memory_space<vmem>>, vector<128x128xbf16>
    %cst_64 = arith.constant dense<0.000000e+00> : vector<128x128xf32>
    %92 = tpu.matmul %91, %84, %cst_64 {dimension_numbers = #tpu.dot_dimension_numbers<[1], [0], [0], [1], [0, 0, 1, 1], [], []>} : vector<128x128xbf16>, vector<128x128xbf16>, vector<128x128xf32> -> vector<128x128xf32>
    %c0_65 = arith.constant 0 : index
    %c0_66 = arith.constant 0 : index
    %93 = vector.load %arg4[%c0_65, %c0_66] : memref<128x128xbf16, #tpu.memory_space<vmem>>, vector<128x128xbf16>
    %cst_67 = arith.constant dense<0.000000e+00> : vector<128x128xf32>
    %94 = tpu.matmul %93, %90, %cst_67 {dimension_numbers = #tpu.dot_dimension_numbers<[1], [0], [0], [1], [0, 0, 1, 1], [], []>} : vector<128x128xbf16>, vector<128x128xbf16>, vector<128x128xf32> -> vector<128x128xf32>
    %c0_68 = arith.constant 0 : index
    %c0_69 = arith.constant 0 : index
    %95 = vector.load %arg5[%c0_68, %c0_69] : memref<128x128xbf16, #tpu.memory_space<vmem>>, vector<128x128xbf16>
    %96 = arith.truncf %92 : vector<128x128xf32> to vector<128x128xbf16>
    %cst_70 = arith.constant dense<0.000000e+00> : vector<128x128xf32>
    %97 = tpu.matmul %95, %96, %cst_70 {dimension_numbers = #tpu.dot_dimension_numbers<[1], [0], [0], [1], [0, 0, 1, 1], [], []>} : vector<128x128xbf16>, vector<128x128xbf16>, vector<128x128xf32> -> vector<128x128xf32>
    %c0_71 = arith.constant 0 : index
    %c0_72 = arith.constant 0 : index
    %98 = vector.load %arg7[%c0_71, %c0_72] : memref<128x1xf32, #tpu.memory_space<vmem>>, vector<128x1xf32>
    %99 = vector.broadcast %98 : vector<128x1xf32> to vector<128x128xf32>
    %100 = arith.addf %97, %99 : vector<128x128xf32>
    %c0_73 = arith.constant 0 : index
    %c0_74 = arith.constant 0 : index
    %101 = vector.load %arg6[%c0_73, %c0_74] : memref<128x128xbf16, #tpu.memory_space<vmem>>, vector<128x128xbf16>
    %102 = arith.truncf %94 : vector<128x128xf32> to vector<128x128xbf16>
    %cst_75 = arith.constant dense<0.000000e+00> : vector<128x128xf32>
    %103 = tpu.matmul %101, %102, %cst_75 {dimension_numbers = #tpu.dot_dimension_numbers<[1], [0], [0], [1], [0, 0, 1, 1], [], []>} : vector<128x128xbf16>, vector<128x128xbf16>, vector<128x128xf32> -> vector<128x128xf32>
    %c0_76 = arith.constant 0 : index
    %c0_77 = arith.constant 0 : index
    %104 = vector.load %arg8[%c0_76, %c0_77] : memref<128x1xf32, #tpu.memory_space<vmem>>, vector<128x1xf32>
    %105 = vector.broadcast %104 : vector<128x1xf32> to vector<128x128xf32>
    %106 = arith.addf %103, %105 : vector<128x128xf32>
    %cst_78 = arith.constant 0.000000e+00 : f32
    %107 = vector.broadcast %cst_78 : f32 to vector<128x128xf32>
    %108 = arith.maximumf %100, %107 : vector<128x128xf32>
    %cst_79 = arith.constant 0.000000e+00 : f32
    %109 = vector.broadcast %cst_79 : f32 to vector<128x128xf32>
    %110 = arith.maximumf %106, %109 : vector<128x128xf32>
    %111 = arith.mulf %108, %110 : vector<128x128xf32>
    %cst_80 = arith.constant dense<0.000000e+00> : vector<128xf32>
    %112 = vector.multi_reduction <add>, %111, %cst_80 [0] : vector<128x128xf32> to vector<128xf32>
    %113 = vector.shape_cast %112 : vector<128xf32> to vector<1x128xf32>
    %c0_81 = arith.constant 0 : index
    %c256_82 = arith.constant 256 : index
    %114 = vector.load %arg9[%c0_81, %c256_82] : memref<1x512xf32, #tpu.memory_space<vmem>>, vector<1x128xf32>
    tpu.vector_store %arg9[%c0_81, %c256_82], %113 {strides = array<i32>} : memref<1x512xf32, #tpu.memory_space<vmem>>, vector<1x128xf32>,
    %c0_83 = arith.constant 0 : index
    %c384 = arith.constant 384 : index
    %115 = vector.load %arg1[%c0_83, %c384] : memref<1x512xi32, #tpu.memory_space<vmem>>, vector<1x128xi32>
    %c0_84 = arith.constant 0 : index
    %c384_85 = arith.constant 384 : index
    %116 = vector.load %arg2[%c0_84, %c384_85] : memref<1x512xi32, #tpu.memory_space<vmem>>, vector<1x128xi32>
    %117 = vector.broadcast %115 : vector<1x128xi32> to vector<128x128xi32>
    %118 = arith.cmpi eq, %0, %117 : vector<128x128xi32>
    %cst_86 = arith.constant 1.000000e+00 : f32
    %cst_87 = arith.constant 0.000000e+00 : f32
    %119 = vector.broadcast %cst_86 : f32 to vector<128x128xf32>
    %120 = vector.broadcast %cst_87 : f32 to vector<128x128xf32>
    %121 = arith.select %118, %119, %120 : vector<128x128xi1>, vector<128x128xf32>
    %122 = arith.truncf %121 : vector<128x128xf32> to vector<128x128xbf16>
    %123 = vector.broadcast %116 : vector<1x128xi32> to vector<128x128xi32>
    %124 = arith.cmpi eq, %0, %123 : vector<128x128xi32>
    %cst_88 = arith.constant 1.000000e+00 : f32
    %cst_89 = arith.constant 0.000000e+00 : f32
    %125 = vector.broadcast %cst_88 : f32 to vector<128x128xf32>
    %126 = vector.broadcast %cst_89 : f32 to vector<128x128xf32>
    %127 = arith.select %124, %125, %126 : vector<128x128xi1>, vector<128x128xf32>
    %128 = arith.truncf %127 : vector<128x128xf32> to vector<128x128xbf16>
    %c0_90 = arith.constant 0 : index
    %c0_91 = arith.constant 0 : index
    %129 = vector.load %arg3[%c0_90, %c0_91] : memref<128x128xbf16, #tpu.memory_space<vmem>>, vector<128x128xbf16>
    %cst_92 = arith.constant dense<0.000000e+00> : vector<128x128xf32>
    %130 = tpu.matmul %129, %122, %cst_92 {dimension_numbers = #tpu.dot_dimension_numbers<[1], [0], [0], [1], [0, 0, 1, 1], [], []>} : vector<128x128xbf16>, vector<128x128xbf16>, vector<128x128xf32> -> vector<128x128xf32>
    %c0_93 = arith.constant 0 : index
    %c0_94 = arith.constant 0 : index
    %131 = vector.load %arg4[%c0_93, %c0_94] : memref<128x128xbf16, #tpu.memory_space<vmem>>, vector<128x128xbf16>
    %cst_95 = arith.constant dense<0.000000e+00> : vector<128x128xf32>
    %132 = tpu.matmul %131, %128, %cst_95 {dimension_numbers = #tpu.dot_dimension_numbers<[1], [0], [0], [1], [0, 0, 1, 1], [], []>} : vector<128x128xbf16>, vector<128x128xbf16>, vector<128x128xf32> -> vector<128x128xf32>
    %c0_96 = arith.constant 0 : index
    %c0_97 = arith.constant 0 : index
    %133 = vector.load %arg5[%c0_96, %c0_97] : memref<128x128xbf16, #tpu.memory_space<vmem>>, vector<128x128xbf16>
    %134 = arith.truncf %130 : vector<128x128xf32> to vector<128x128xbf16>
    %cst_98 = arith.constant dense<0.000000e+00> : vector<128x128xf32>
    %135 = tpu.matmul %133, %134, %cst_98 {dimension_numbers = #tpu.dot_dimension_numbers<[1], [0], [0], [1], [0, 0, 1, 1], [], []>} : vector<128x128xbf16>, vector<128x128xbf16>, vector<128x128xf32> -> vector<128x128xf32>
    %c0_99 = arith.constant 0 : index
    %c0_100 = arith.constant 0 : index
    %136 = vector.load %arg7[%c0_99, %c0_100] : memref<128x1xf32, #tpu.memory_space<vmem>>, vector<128x1xf32>
    %137 = vector.broadcast %136 : vector<128x1xf32> to vector<128x128xf32>
    %138 = arith.addf %135, %137 : vector<128x128xf32>
    %c0_101 = arith.constant 0 : index
    %c0_102 = arith.constant 0 : index
    %139 = vector.load %arg6[%c0_101, %c0_102] : memref<128x128xbf16, #tpu.memory_space<vmem>>, vector<128x128xbf16>
    %140 = arith.truncf %132 : vector<128x128xf32> to vector<128x128xbf16>
    %cst_103 = arith.constant dense<0.000000e+00> : vector<128x128xf32>
    %141 = tpu.matmul %139, %140, %cst_103 {dimension_numbers = #tpu.dot_dimension_numbers<[1], [0], [0], [1], [0, 0, 1, 1], [], []>} : vector<128x128xbf16>, vector<128x128xbf16>, vector<128x128xf32> -> vector<128x128xf32>
    %c0_104 = arith.constant 0 : index
    %c0_105 = arith.constant 0 : index
    %142 = vector.load %arg8[%c0_104, %c0_105] : memref<128x1xf32, #tpu.memory_space<vmem>>, vector<128x1xf32>
    %143 = vector.broadcast %142 : vector<128x1xf32> to vector<128x128xf32>
    %144 = arith.addf %141, %143 : vector<128x128xf32>
    %cst_106 = arith.constant 0.000000e+00 : f32
    %145 = vector.broadcast %cst_106 : f32 to vector<128x128xf32>
    %146 = arith.maximumf %138, %145 : vector<128x128xf32>
    %cst_107 = arith.constant 0.000000e+00 : f32
    %147 = vector.broadcast %cst_107 : f32 to vector<128x128xf32>
    %148 = arith.maximumf %144, %147 : vector<128x128xf32>
    %149 = arith.mulf %146, %148 : vector<128x128xf32>
    %cst_108 = arith.constant dense<0.000000e+00> : vector<128xf32>
    %150 = vector.multi_reduction <add>, %149, %cst_108 [0] : vector<128x128xf32> to vector<128xf32>
    %151 = vector.shape_cast %150 : vector<128xf32> to vector<1x128xf32>
    %c0_109 = arith.constant 0 : index
    %c384_110 = arith.constant 384 : index
    %152 = vector.load %arg9[%c0_109, %c384_110] : memref<1x512xf32, #tpu.memory_space<vmem>>, vector<1x128xf32>
    tpu.vector_store %arg9[%c0_109, %c384_110], %151 {strides = array<i32>} : memref<1x512xf32, #tpu.memory_space<vmem>>, vector<1x128xf32>,
    return
  }
  func.func @transform_0(%arg0: i32) -> (i32, i32) {
    %c0_i32 = arith.constant 0 : i32
    %c0_i32_0 = arith.constant 0 : i32
    return %c0_i32, %arg0 : i32, i32
  }
  func.func @transform_1(%arg0: i32) -> (i32, i32) {
    %c0_i32 = arith.constant 0 : i32
    %c0_i32_0 = arith.constant 0 : i32
    return %c0_i32, %arg0 : i32, i32
  }
  func.func @transform_2(%arg0: i32) -> (i32, i32) {
    %c0_i32 = arith.constant 0 : i32
    %c0_i32_0 = arith.constant 0 : i32
    %c0_i32_1 = arith.constant 0 : i32
    return %c0_i32, %c0_i32_0 : i32, i32
  }
  func.func @transform_3(%arg0: i32) -> (i32, i32) {
    %c0_i32 = arith.constant 0 : i32
    %c0_i32_0 = arith.constant 0 : i32
    %c0_i32_1 = arith.constant 0 : i32
    return %c0_i32, %c0_i32_0 : i32, i32
  }
  func.func @transform_4(%arg0: i32) -> (i32, i32) {
    %c0_i32 = arith.constant 0 : i32
    %c0_i32_0 = arith.constant 0 : i32
    %c0_i32_1 = arith.constant 0 : i32
    return %c0_i32, %c0_i32_0 : i32, i32
  }
  func.func @transform_5(%arg0: i32) -> (i32, i32) {
    %c0_i32 = arith.constant 0 : i32
    %c0_i32_0 = arith.constant 0 : i32
    %c0_i32_1 = arith.constant 0 : i32
    return %c0_i32, %c0_i32_0 : i32, i32
  }
  func.func @transform_6(%arg0: i32) -> (i32, i32) {
    %c0_i32 = arith.constant 0 : i32
    %c0_i32_0 = arith.constant 0 : i32
    %c0_i32_1 = arith.constant 0 : i32
    return %c0_i32, %c0_i32_0 : i32, i32
  }
  func.func @transform_7(%arg0: i32) -> (i32, i32) {
    %c0_i32 = arith.constant 0 : i32
    %c0_i32_0 = arith.constant 0 : i32
    %c0_i32_1 = arith.constant 0 : i32
    return %c0_i32, %c0_i32_0 : i32, i32
  }
  func.func @transform_8(%arg0: i32) -> (i32, i32) {
    %c0_i32 = arith.constant 0 : i32
    %c0_i32_0 = arith.constant 0 : i32
    return %c0_i32, %arg0 : i32, i32
  }
}

</mosaic_0001>

<bundles_post_ra>
// kernel: _forward_batched.1
= control target key start
LH: loop header
LB: loop body
LE: loop exit
PB: predicated region body
PF: predicated region fallthrough
CT: control target
= control target key end

     0   :  { %v7294_v0 = vlaneseq  ;;  %v7292_v11 = vmov 1.0|1.0   ;;  %s7283_s0 = inlined_call_operand.vmem [shape: s32[1,512], index: 0, kind: input, shape index: {}]   ;;  %s7284_s1 = inlined_call_operand.vmem [shape: s32[1,512], index: 1, kind: input, shape index: {}]   ;;  %s7285_s2 = inlined_call_operand.vmem [shape: bf16[128,128], index: 2, kind: input, shape index: {}]   ;;  %s7286_s3 = inlined_call_operand.vmem [shape: bf16[128,128], index: 3, kind: input, shape index: {}]   ;;  %s7287_s4 = inlined_call_operand.vmem [shape: bf16[128,128], index: 4, kind: input, shape index: {}]   ;;  %s7288_s5 = inlined_call_operand.vmem [shape: bf16[128,128], index: 5, kind: input, shape index: {}]   ;;  %s7289_s6 = inlined_call_operand.vmem [shape: f32[128,1], index: 6, kind: input, shape index: {}]   ;;  %s7290_s7 = inlined_call_operand.vmem [shape: f32[128,1], index: 7, kind: input, shape index: {}]   ;;  %s7291_s8 = inlined_call_operand.hbm [shape: f32[1,512], index: 8, kind: output, shape index: {}]  }
   0x1   :  { %v5354_v1 = vld [vmem:[%s7283_s0] ss:$0 sm:$0xff]  ;;  %v5153_v33 = vld [vmem:[%s7285_s2 + $0x8] sm:$0xff]   ;;  %v5155_v35 = vld [vmem:[%s7285_s2 + $0x10] sm:$0xff]  }
   0x2   :  { %v5359_v2 = vld [vmem:[%s7284_s1] ss:$0 sm:$0xff]  ;;  %v5365_v4 = vshrl.u32 %v7294_v0, 7  ;;  %v5154_v34 = vld [vmem:[%s7286_s3 + $0x8] sm:$0xff]   ;;  %v5156_v36 = vld [vmem:[%s7286_s3 + $0x10] sm:$0xff]  }
   0x3   :  { %v5151_v3 = vld [vmem:[%s7285_s2] sm:$0xff]   ;;  %v5157_v37 = vld [vmem:[%s7285_s2 + $0x18] sm:$0xff]   ;;  %v5161_v41 = vld [vmem:[%s7285_s2 + $0x28] sm:$0xff]  }
   0x4   :  { %v5152_v5 = vld [vmem:[%s7286_s3] sm:$0xff]   ;;  %4650 = vmatprep.mubr.bf16.mxu0 %v5151_v3  ;;  %v5371_v6 = vadd.s32 8, %v5365_v4  ;;  %vm54_vm0 = vcmp.eq.s32.totalorder %v5365_v4, %v5354_v1  ;;  %v5376_v7 = vadd.s32 16, %v5365_v4  ;;  %vm98_vm1 = vcmp.eq.s32.totalorder %v5365_v4, %v5359_v2  ;;  %v5158_v38 = vld [vmem:[%s7286_s3 + $0x18] sm:$0xff]   ;;  %v5162_v42 = vld [vmem:[%s7286_s3 + $0x28] sm:$0xff]  }
   0x5   :  { %4682 = vmatprep.mubr.bf16.mxu1 %v5152_v5  ;;  %v5381_v8 = vadd.s32 24, %v5365_v4  ;;  %v5384_v9 = vadd.s32 32, %v5365_v4  ;;  %v5387_v10 = vadd.s32 40, %v5365_v4  ;;  %v5407_v12 = vadd.s32 48, %v5365_v4  ;;  %v5159_v39 = vld [vmem:[%s7285_s2 + $0x20] sm:$0xff]   ;;  %v5163_v43 = vld [vmem:[%s7285_s2 + $0x30] sm:$0xff]  }
   0x6   :  { %vm55_vm2 = vcmp.eq.s32.totalorder %v5371_v6, %v5354_v1  ;;  %vm99_vm3 = vcmp.eq.s32.totalorder %v5371_v6, %v5359_v2  ;;  %vm56_vm4 = vcmp.eq.s32.totalorder %v5376_v7, %v5354_v1  ;;  %vm100_vm7 = vcmp.eq.s32.totalorder %v5376_v7, %v5359_v2  ;;  %v5160_v40 = vld [vmem:[%s7286_s3 + $0x20] sm:$0xff]   ;;  %v5164_v44 = vld [vmem:[%s7286_s3 + $0x30] sm:$0xff]   ;;  %v5165_v45 = vld [vmem:[%s7285_s2 + $0x38] sm:$0xff]  }
   0x7   :  { %vm4124_vm5 = vmpackc.low %vm55_vm2, %vm54_vm0  ;;  %vm57_vm6 = vcmp.eq.s32.totalorder %v5381_v8, %v5354_v1  ;;  %vm101_vm8 = vcmp.eq.s32.totalorder %v5381_v8, %v5359_v2  ;;  %vm58_vm10 = vcmp.eq.s32.totalorder %v5384_v9, %v5354_v1  ;;  %vm59_vm11 = vcmp.eq.s32.totalorder %v5387_v10, %v5354_v1  ;;  %v5166_v46 = vld [vmem:[%s7286_s3 + $0x38] sm:$0xff]  }
   0x8   :  { %4634 = vmatprep.subr.msk.bf16.mxu0 %vm4124_vm5, %v7292_v11  ;;  %vm4148_vm9 = vmpackc.low %vm99_vm3, %vm98_vm1  ;;  %v5410_v13 = vadd.s32 56, %v5365_v4  ;;  %vm102_vm13 = vcmp.eq.s32.totalorder %v5384_v9, %v5359_v2  ;;  %vm103_vm14 = vcmp.eq.s32.totalorder %v5387_v10, %v5359_v2  ;;  %v5427_v14 = vadd.s32 64, %v5365_v4 }
   0x9   :  { %4666 = vmatprep.subr.msk.bf16.mxu1 %vm4148_vm9, %v7292_v11  ;;  %4635 = vmatpush3.bf16.msk.msra.mxu0 %vm4124_vm5, %v7292_v11  ;;  %vm4126_vm12 = vmpackc.low %vm57_vm6, %vm56_vm4  ;;  %v5430_v15 = vadd.s32 72, %v5365_v4  ;;  %vm60_vm2 = vcmp.eq.s32.totalorder %v5407_v12, %v5354_v1  ;;  %v5449_v18 = vadd.s32 80, %v5365_v4  ;;  %v5452_v19 = vadd.s32 88, %v5365_v4 }
   0xa   :  { %4667 = vmatpush3.bf16.msk.msra.mxu1 %vm4148_vm9, %v7292_v11  ;;  %4636 = vmatprep.subr.msk.bf16.mxu0 %vm4126_vm12, %v7292_v11  ;;  %vm4150_vm15 = vmpackc.low %vm101_vm8, %vm100_vm7  ;;  %vm61_vm3 = vcmp.eq.s32.totalorder %v5410_v13, %v5354_v1  ;;  %vm104_vm4 = vcmp.eq.s32.totalorder %v5407_v12, %v5359_v2  ;;  %vm105_vm5 = vcmp.eq.s32.totalorder %v5410_v13, %v5359_v2  ;;  %v5468_v20 = vadd.s32 96, %v5365_v4 }
   0xb   :  { %4668 = vmatprep.subr.msk.bf16.mxu1 %vm4150_vm15, %v7292_v11  ;;  %vm5436_vm0 = vmpackc.low %vm59_vm11, %vm58_vm10  ;;  %7313 = vst [vmem:[#allocation5_spill] sm:$0xff] %v5449_v18  ;;  %vm62_vm6 = vcmp.eq.s32.totalorder %v5427_v14, %v5354_v1  ;;  %vm63_vm7 = vcmp.eq.s32.totalorder %v5430_v15, %v5354_v1  ;;  %v5471_v21 = vadd.s32 104, %v5365_v4  ;;  %vm106_vm9 = vcmp.eq.s32.totalorder %v5427_v14, %v5359_v2 }
   0xc   :  { %vm5440_vm1 = vmpackc.low %vm103_vm14, %vm102_vm13  ;;  %7314 = vst [vmem:[#allocation6_spill] sm:$0xff] %v5452_v19  ;;  %vm107_vm10 = vcmp.eq.s32.totalorder %v5430_v15, %v5359_v2  ;;  %vm65_vm13 = vcmp.eq.s32.totalorder %v5452_v19, %v5354_v1  ;;  %v5493_v24 = vadd.s32 112, %v5365_v4  ;;  %v5496_v25 = vadd.s32 120, %v5365_v4 }
   0xd   :  { %4637 = vmatpush3.bf16.msk.msra.mxu0 %vm4126_vm12, %v7292_v11  ;;  %7315 = vst [vmem:[#allocation7_spill] sm:$0xff] %v5468_v20  ;;  %7316 = vst [vmem:[#allocation8_spill] sm:$0xff] %v5471_v21  ;;  %vm64_vm12 = vcmp.eq.s32.totalorder %v5449_v18, %v5354_v1 }
   0xe   :  { %4669 = vmatpush3.bf16.msk.msra.mxu1 %vm4150_vm15, %v7292_v11  ;;  %4638 = vmatprep.subr.msk.bf16.mxu0 %vm5436_vm0, %v7292_v11  ;;  %vm5476_vm8 = vmpackc.low %vm61_vm3, %vm60_vm2  ;;  %7321 = vst [vmem:[#allocation9_spill] sm:$0xff] %v5493_v24  ;;  %vm108_vm15 = vcmp.eq.s32.totalorder %v5449_v18, %v5359_v2  ;;  %vm109_vm2 = vcmp.eq.s32.totalorder %v5452_v19, %v5359_v2 }
   0xf   :  { %4670 = vmatprep.subr.msk.bf16.mxu1 %vm5440_vm1, %v7292_v11  ;;  %vm5484_vm11 = vmpackc.low %vm105_vm5, %vm104_vm4  ;;  %7322 = vst [vmem:[#allocation10_spill] sm:$0xff] %v5496_v25  ;;  %vm67_vm4 = vcmp.eq.s32.totalorder %v5471_v21, %v5354_v1 }
  0x10   :  { %vm5501_vm14 = vmpackc.low %vm63_vm7, %vm62_vm6  ;;  %vm111_vm6 = vcmp.eq.s32.totalorder %v5471_v21, %v5359_v2 }
  0x11   :  { %4639 = vmatpush3.bf16.msk.msra.mxu0 %vm5436_vm0, %v7292_v11  ;;  %vm5515_vm3 = vmpackc.low %vm107_vm10, %vm106_vm9  ;;  %vm66_vm0 = vcmp.eq.s32.totalorder %v5468_v20, %v5354_v1  ;;  %vm68_vm9 = vcmp.eq.s32.totalorder %v5493_v24, %v5354_v1  ;;  %vm69_vm10 = vcmp.eq.s32.totalorder %v5496_v25, %v5354_v1 }
  0x12   :  { %4671 = vmatpush3.bf16.msk.msra.mxu1 %vm5440_vm1, %v7292_v11  ;;  %4640 = vmatprep.subr.msk.bf16.mxu0 %vm5476_vm8, %v7292_v11  ;;  %vm5526_vm5 = vmpackc.low %vm65_vm13, %vm64_vm12  ;;  %vm110_vm1 = vcmp.eq.s32.totalorder %v5468_v20, %v5359_v2  ;;  %vm112_vm13 = vcmp.eq.s32.totalorder %v5493_v24, %v5359_v2 }
  0x13   :  { %4672 = vmatprep.subr.msk.bf16.mxu1 %vm5484_vm11, %v7292_v11  ;;  %vm5534_vm7 = vmpackc.low %vm109_vm2, %vm108_vm15  ;;  %vm113_vm15 = vcmp.eq.s32.totalorder %v5496_v25, %v5359_v2 }
  0x14   :  { %vm5545_vm12 = vmpackc.low %vm67_vm4, %vm66_vm0 }
  0x15   :  { %4641 = vmatpush3.bf16.msk.msra.mxu0 %vm5476_vm8, %v7292_v11  ;;  %vm4160_vm2 = vmpackc.low %vm111_vm6, %vm110_vm1 }
  0x16   :  { %4673 = vmatpush3.bf16.msk.msra.mxu1 %vm5484_vm11, %v7292_v11  ;;  %4642 = vmatprep.subr.msk.bf16.mxu0 %vm5501_vm14, %v7292_v11  ;;  %vm5562_vm8 = vmpackc.low %vm69_vm10, %vm68_vm9 }
  0x17   :  { %4674 = vmatprep.subr.msk.bf16.mxu1 %vm5515_vm3, %v7292_v11  ;;  %vm5566_vm0 = vmpackc.low %vm113_vm15, %vm112_vm13 }
  0x19   :  { %4643 = vmatpush3.bf16.msk.msra.mxu0 %vm5501_vm14, %v7292_v11 }
  0x1a   :  { %4675 = vmatpush3.bf16.msk.msra.mxu1 %vm5515_vm3, %v7292_v11  ;;  %4644 = vmatprep.subr.msk.bf16.mxu0 %vm5526_vm5, %v7292_v11 }
  0x1b   :  { %4676 = vmatprep.subr.msk.bf16.mxu1 %vm5534_vm7, %v7292_v11 }
  0x1d   :  { %4645 = vmatpush3.bf16.msk.msra.mxu0 %vm5526_vm5, %v7292_v11 }
  0x1e   :  { %4677 = vmatpush3.bf16.msk.msra.mxu1 %vm5534_vm7, %v7292_v11  ;;  %4646 = vmatprep.subr.msk.bf16.mxu0 %vm5545_vm12, %v7292_v11 }
  0x1f   :  { %4678 = vmatprep.subr.msk.bf16.mxu1 %vm4160_vm2, %v7292_v11 }
  0x21   :  { %4647 = vmatpush3.bf16.msk.msra.mxu0 %vm5545_vm12, %v7292_v11 }
  0x22   :  { %4679 = vmatpush3.bf16.msk.msra.mxu1 %vm4160_vm2, %v7292_v11  ;;  %4648 = vmatprep.subr.msk.bf16.mxu0 %vm5562_vm8, %v7292_v11 }
  0x23   :  { %4680 = vmatprep.subr.msk.bf16.mxu1 %vm5566_vm0, %v7292_v11 }
  0x25   :  { %4649 = vmatpush3.bf16.msk.msra.mxu0 %vm5562_vm8, %v7292_v11 }
  0x26   :  { %4681 = vmatpush3.bf16.msk.msra.mxu1 %vm5566_vm0, %v7292_v11 }
  0x28   :  { %4651 = vmatmul.mubr.bf16.vlgmr.msra.gmra.mrb[0].mxu0 %v5153_v33 }
  0x29   :  { %4683 = vmatmul.mubr.bf16.vlgmr.msra.gmra.mrb[0].mxu1 %v5154_v34  ;;  %4654 = vmatprep.mubr.bf16.mxu0 %v5155_v35 }
  0x2a   :  { %4686 = vmatprep.mubr.bf16.mxu1 %v5156_v36 }
  0x30   :  { %4655 = vmatmul.mubr.bf16.gmra.mrb[4].mxu0 %v5157_v37 }
  0x31   :  { %4687 = vmatmul.mubr.bf16.gmra.mrb[4].mxu1 %v5158_v38  ;;  %4658 = vmatprep.mubr.bf16.mxu0 %v5159_v39 }
  0x32   :  { %4690 = vmatprep.mubr.bf16.mxu1 %v5160_v40 }
  0x38   :  { %4659 = vmatmul.mubr.bf16.gmra.mrb[8].mxu0 %v5161_v41 }
  0x39   :  { %4691 = vmatmul.mubr.bf16.gmra.mrb[8].mxu1 %v5162_v42  ;;  %4662 = vmatprep.mubr.bf16.mxu0 %v5163_v43 }
  0x3a   :  { %4694 = vmatprep.mubr.bf16.mxu1 %v5164_v44 }
  0x40   :  { %4663 = vmatmul.mubr.bf16.gmra.mrb[12].mxu0 %v5165_v45 }
  0x41   :  { %4695 = vmatmul.mubr.bf16.gmra.mrb[12].mxu1 %v5166_v46 }
  0x42   :  { %13 = vsyncpa [#allocation3], 0  ;;  %v5167_v47 = vld [vmem:[%s7287_s4] sm:$0xff]   ;;  %v5304_v49 = vmov 0   ;;  %v486_v51 = vld [vmem:[%s7289_s6 + $0x10] sm:$0xff] }
  0x43   :  { %v5168_v48 = vld [vmem:[%s7288_s5] sm:$0xff]   ;;  %4714 = vmatprep.mubr.bf16.mxu0 %v5167_v47  ;;  %5149 = vset.pattern.permute.xlu0 %v5304_v49  ;;  %v485_v52 = vld [vmem:[%s7289_s6 + $0x8] sm:$0xff]  ;;  %v487_v53 = vld [vmem:[%s7289_s6 + $0x18] sm:$0xff] }
  0x44   :  { %4746 = vmatprep.mubr.bf16.mxu1 %v5168_v48  ;;  %v484_v50 = vld [vmem:[%s7289_s6] sm:$0xff]  ;;  %5150 = vset.pattern.permute.xlu1 %v5304_v49  ;;  %v489_v55 = vld [vmem:[%s7289_s6 + $0x28] sm:$0xff]  ;;  %v490_v56 = vld [vmem:[%s7289_s6 + $0x30] sm:$0xff] }
  0x45   :  { %502 = vperm.xlu0 %5149, %v484_v50   ;;  %512 = vperm.xlu1 %5150, %v486_v51   ;;  %v488_v54 = vld [vmem:[%s7289_s6 + $0x20] sm:$0xff]  ;;  %v491_v57 = vld [vmem:[%s7289_s6 + $0x38] sm:$0xff]  ;;  %v493_v59 = vld [vmem:[%s7289_s6 + $0x48] sm:$0xff] }
  0x46   :  { %v492_v58 = vld [vmem:[%s7289_s6 + $0x40] sm:$0xff]  ;;  %v494_v60 = vld [vmem:[%s7289_s6 + $0x50] sm:$0xff]  ;;  %v495_v61 = vld [vmem:[%s7289_s6 + $0x58] sm:$0xff] }
  0x47   :  { %v496_v62 = vld [vmem:[%s7289_s6 + $0x60] sm:$0xff]  ;;  %v497_v63 = vld [vmem:[%s7289_s6 + $0x68] sm:$0xff]  ;;  %v498_v1 = vld [vmem:[%s7289_s6 + $0x70] sm:$0xff] }
  0x48   :  { %v499_v2 = vld [vmem:[%s7289_s6 + $0x78] sm:$0xff]  ;;  %v749_v3 = vld [vmem:[%s7290_s7] sm:$0xff]  ;;  %v750_v5 = vld [vmem:[%s7290_s7 + $0x8] sm:$0xff] }
  0x49   :  { %507 = vperm.xlu0 %5149, %v485_v52   ;;  %517 = vperm.xlu1 %5150, %v487_v53   ;;  %v751_v16 = vld [vmem:[%s7290_s7 + $0x10] sm:$0xff]  ;;  %v752_v17 = vld [vmem:[%s7290_s7 + $0x18] sm:$0xff]  ;;  %v753_v22 = vld [vmem:[%s7290_s7 + $0x20] sm:$0xff] }
  0x4a   :  { %v754_v23 = vld [vmem:[%s7290_s7 + $0x28] sm:$0xff]  ;;  %v755_v26 = vld [vmem:[%s7290_s7 + $0x30] sm:$0xff]  ;;  %v756_v30 = vld [vmem:[%s7290_s7 + $0x38] sm:$0xff] }
  0x4b   :  { %v757_v31 = vld [vmem:[%s7290_s7 + $0x40] sm:$0xff]  ;;  %v758_v41 = vld [vmem:[%s7290_s7 + $0x48] sm:$0xff]  ;;  %v759_v42 = vld [vmem:[%s7290_s7 + $0x50] sm:$0xff] }
  0x4c   :  { %v760_v48 = vld [vmem:[%s7290_s7 + $0x58] sm:$0xff]  ;;  %v761_v52 = vld [vmem:[%s7290_s7 + $0x60] sm:$0xff] }
  0x4d   :  { %522 = vperm.xlu0 %5149, %v488_v54   ;;  %527 = vperm.xlu1 %5150, %v489_v55  }
  0x51   :  { %532 = vperm.xlu0 %5149, %v490_v56   ;;  %537 = vperm.xlu1 %5150, %v491_v57   ;;  %v762_v57 = vld [vmem:[%s7290_s7 + $0x68] sm:$0xff] }
  0x55   :  { %542 = vperm.xlu0 %5149, %v492_v58   ;;  %547 = vperm.xlu1 %5150, %v493_v59   ;;  %v763_v58 = vld [vmem:[%s7290_s7 + $0x70] sm:$0xff] }
  0x59   :  { %552 = vperm.xlu0 %5149, %v494_v60   ;;  %557 = vperm.xlu1 %5150, %v495_v61  }
  0x5d   :  { %562 = vperm.xlu0 %5149, %v496_v62   ;;  %567 = vperm.xlu1 %5150, %v497_v63  }
  0x61   :  { %572 = vperm.xlu0 %5149, %v498_v1   ;;  %577 = vperm.xlu1 %5150, %v499_v2   ;;  %v764_v1 = vld [vmem:[%s7290_s7 + $0x78] sm:$0xff] }
  0x65   :  { %767 = vperm.xlu0 %5149, %v749_v3   ;;  %772 = vperm.xlu1 %5150, %v750_v5  }
  0x69   :  { %777 = vperm.xlu0 %5149, %v751_v16   ;;  %782 = vperm.xlu1 %5150, %v752_v17  }
  0x6d   :  { %787 = vperm.xlu0 %5149, %v753_v22   ;;  %792 = vperm.xlu1 %5150, %v754_v23  }
  0x71   :  { %797 = vperm.xlu0 %5149, %v755_v26   ;;  %802 = vperm.xlu1 %5150, %v756_v30  }
  0x75   :  { %807 = vperm.xlu0 %5149, %v757_v31   ;;  %812 = vperm.xlu1 %5150, %v758_v41   ;;  %v5169_v41 = vld [vmem:[%s7287_s4 + $0x8] sm:$0xff]  }
  0x79   :  { %817 = vperm.xlu0 %5149, %v759_v42   ;;  %822 = vperm.xlu1 %5150, %v760_v48  }
  0x7d   :  { %827 = vperm.xlu0 %5149, %v761_v52   ;;  %832 = vperm.xlu1 %5150, %v762_v57   ;;  %v5177_v57 = vld [vmem:[%s7287_s4 + $0x28] sm:$0xff]  }
  0x81   :  { %837 = vperm.xlu0 %5149, %v763_v58   ;;  %842 = vperm.xlu1 %5150, %v764_v1   ;;  %v6108_v1 = vld [vmem:[%s7289_s6 + $0x10] sm:$0xff] }
  0xfb   :  { %v4652_v27 = vpop.f32.mrb[0].mxu0 }
  0xfc   :  { %v4684_v28 = vpop.f32.mrb[0].mxu1  ;;  %v236_v29 = vpop.f32.mrb[1].mxu0 }
  0xfd   :  { %v397_v32 = vpop.f32.mrb[1].mxu1  ;;  %v4653_v33 = vpop.f32.mrb[2].mxu0 }
  0xfe   :  { %v477_v34 = vpack.c.bf16 %v4653_v33, %v4652_v27  ;;  %v4685_v35 = vpop.f32.mrb[2].mxu1  ;;  %v239_v36 = vpop.f32.mrb[3].mxu0 }
  0xff   :  { %v742_v37 = vpack.c.bf16 %v4685_v35, %v4684_v28  ;;  %v476_v38 = vpack.c.bf16 %v239_v36, %v236_v29  ;;  %v400_v39 = vpop.f32.mrb[3].mxu1 }
 0x100   :  { %v741_v40 = vpack.c.bf16 %v400_v39, %v397_v32 }
 0x101   :  { %4698 = vmatprep.subr.bf16.mxu0 %v476_v38 }
 0x102   :  { %4730 = vmatprep.subr.bf16.mxu1 %v741_v40  ;;  %4699 = vmatpush3.bf16.msra.mxu0 %v476_v38  ;;  %v5760_v38 = vld [vmem:[%s7284_s1 + $0x1] ss:$0 sm:$0xff] }
 0x103   :  { %4731 = vmatpush3.bf16.msra.mxu1 %v741_v40  ;;  %v4656_v43 = vpop.f32.mrb[4].mxu0  ;;  %4700 = vmatprep.subr.bf16.mxu0 %v477_v34  ;;  %vm1114_vm3 = vcmp.eq.s32.totalorder %v5365_v4, %v5760_v38  ;;  %vm1115_vm4 = vcmp.eq.s32.totalorder %v5371_v6, %v5760_v38  ;;  %vm1116_vm9 = vcmp.eq.s32.totalorder %v5376_v7, %v5760_v38 }
 0x104   :  { %v4688_v44 = vpop.f32.mrb[4].mxu1  ;;  %4732 = vmatprep.subr.bf16.mxu1 %v742_v37  ;;  %v252_v45 = vpop.f32.mrb[5].mxu0  ;;  %vm5777_vm1 = vmpackc.low %vm1115_vm4, %vm1114_vm3  ;;  %vm1117_vm10 = vcmp.eq.s32.totalorder %v5381_v8, %v5760_v38  ;;  %vm1118_vm8 = vcmp.eq.s32.totalorder %v5384_v9, %v5760_v38  ;;  %vm1119_vm0 = vcmp.eq.s32.totalorder %v5387_v10, %v5760_v38 }
 0x105   :  { %v413_v46 = vpop.f32.mrb[5].mxu1  ;;  %v4657_v47 = vpop.f32.mrb[6].mxu0  ;;  %vm5805_vm13 = vmpackc.low %vm1117_vm10, %vm1116_vm9 }
 0x106   :  { %v479_v49 = vpack.c.bf16 %v4657_v47, %v4656_v43  ;;  %v4689_v50 = vpop.f32.mrb[6].mxu1  ;;  %v255_v51 = vpop.f32.mrb[7].mxu0  ;;  %4701 = vmatpush3.bf16.msra.mxu0 %v477_v34  ;;  %v5755_v34 = vld [vmem:[%s7283_s0 + $0x1] ss:$0 sm:$0xff]  ;;  %v5170_v43 = vld [vmem:[%s7288_s5 + $0x8] sm:$0xff]   ;;  %v5172_v47 = vld [vmem:[%s7288_s5 + $0x10] sm:$0xff]  }
 0x107   :  { %v744_v53 = vpack.c.bf16 %v4689_v50, %v4688_v44  ;;  %v478_v54 = vpack.c.bf16 %v255_v51, %v252_v45  ;;  %v416_v55 = vpop.f32.mrb[7].mxu1  ;;  %4733 = vmatpush3.bf16.msra.mxu1 %v742_v37  ;;  %vm1070_vm11 = vcmp.eq.s32.totalorder %v5365_v4, %v5755_v34  ;;  %vm1071_vm14 = vcmp.eq.s32.totalorder %v5371_v6, %v5755_v34  ;;  %v5171_v45 = vld [vmem:[%s7287_s4 + $0x10] sm:$0xff]   ;;  %v5174_v51 = vld [vmem:[%s7288_s5 + $0x18] sm:$0xff]   ;;  %v5199_v44 = vld [vmem:[%s7287_s4] sm:$0xff]  }
 0x108   :  { %v743_v56 = vpack.c.bf16 %v416_v55, %v413_v46  ;;  %vm5770_vm5 = vmpackc.low %vm1071_vm14, %vm1070_vm11  ;;  %vm1072_vm6 = vcmp.eq.s32.totalorder %v5376_v7, %v5755_v34  ;;  %vm1073_vm7 = vcmp.eq.s32.totalorder %v5381_v8, %v5755_v34  ;;  %vm1074_vm15 = vcmp.eq.s32.totalorder %v5384_v9, %v5755_v34  ;;  %v5176_v55 = vld [vmem:[%s7288_s5 + $0x20] sm:$0xff]  }
 0x109   :  { %4702 = vmatprep.subr.bf16.mxu0 %v478_v54  ;;  %vm5798_vm12 = vmpackc.low %vm1073_vm7, %vm1072_vm6  ;;  %vm1075_vm2 = vcmp.eq.s32.totalorder %v5387_v10, %v5755_v34  ;;  %vm1076_vm3 = vcmp.eq.s32.totalorder %v5407_v12, %v5755_v34  ;;  %vm1077_vm4 = vcmp.eq.s32.totalorder %v5410_v13, %v5755_v34  ;;  %vm1078_vm9 = vcmp.eq.s32.totalorder %v5427_v14, %v5755_v34 }
 0x10a   :  { %4734 = vmatprep.subr.bf16.mxu1 %v743_v56  ;;  %4703 = vmatpush3.bf16.msra.mxu0 %v478_v54  ;;  %vm5832_vm11 = vmpackc.low %vm1075_vm2, %vm1074_vm15  ;;  %vm1079_vm10 = vcmp.eq.s32.totalorder %v5430_v15, %v5755_v34 }
 0x10b   :  { %4735 = vmatpush3.bf16.msra.mxu1 %v743_v56  ;;  %v4660_v59 = vpop.f32.mrb[8].mxu0  ;;  %4704 = vmatprep.subr.bf16.mxu0 %v479_v49  ;;  %vm5839_vm14 = vmpackc.low %vm1119_vm0, %vm1118_vm8  ;;  %vm1080_vm8 = vcmp.eq.s32.totalorder %v5449_v18, %v5755_v34  ;;  %vm1081_vm0 = vcmp.eq.s32.totalorder %v5452_v19, %v5755_v34 }
 0x10c   :  { %v4692_v60 = vpop.f32.mrb[8].mxu1  ;;  %4736 = vmatprep.subr.bf16.mxu1 %v744_v53  ;;  %v268_v61 = vpop.f32.mrb[9].mxu0  ;;  %vm5866_vm6 = vmpackc.low %vm1077_vm4, %vm1076_vm3 }
 0x10d   :  { %v429_v62 = vpop.f32.mrb[9].mxu1  ;;  %v4661_v63 = vpop.f32.mrb[10].mxu0  ;;  %vm5900_vm15 = vmpackc.low %vm1079_vm10, %vm1078_vm9 }
 0x10e   :  { %v481_v2 = vpack.c.bf16 %v4661_v63, %v4660_v59  ;;  %v4693_v3 = vpop.f32.mrb[10].mxu1  ;;  %v271_v5 = vpop.f32.mrb[11].mxu0  ;;  %4705 = vmatpush3.bf16.msra.mxu0 %v479_v49  ;;  %v5173_v49 = vld [vmem:[%s7287_s4 + $0x18] sm:$0xff]   ;;  %v5178_v59 = vld [vmem:[%s7288_s5 + $0x28] sm:$0xff]   ;;  %vm5934_vm3 = vmpackc.low %vm1081_vm0, %vm1080_vm8 }
 0x10f   :  { %v746_v16 = vpack.c.bf16 %v4693_v3, %v4692_v60  ;;  %v480_v17 = vpack.c.bf16 %v271_v5, %v268_v61  ;;  %v432_v22 = vpop.f32.mrb[11].mxu1  ;;  %4737 = vmatpush3.bf16.msra.mxu1 %v744_v53  ;;  %v5175_v53 = vld [vmem:[%s7287_s4 + $0x20] sm:$0xff]   ;;  %v5179_v61 = vld [vmem:[%s7287_s4 + $0x30] sm:$0xff]   ;;  %v5182_v5 = vld [vmem:[%s7288_s5 + $0x38] sm:$0xff]  }
 0x110   :  { %v745_v23 = vpack.c.bf16 %v432_v22, %v429_v62  ;;  %v5180_v63 = vld [vmem:[%s7288_s5 + $0x30] sm:$0xff]   ;;  %v5185_v22 = vld [vmem:[%s7285_s2 + $0x8] sm:$0xff]   ;;  %v6093_v60 = vld [vmem:[%s7289_s6] sm:$0xff] }
 0x111   :  { %4706 = vmatprep.subr.bf16.mxu0 %v480_v17  ;;  %1518 = vperm.xlu0 %5149, %v6093_v60   ;;  %v6115_v3 = vld [vmem:[%s7289_s6 + $0x18] sm:$0xff] }
 0x112   :  { %4738 = vmatprep.subr.bf16.mxu1 %v745_v23  ;;  %4707 = vmatpush3.bf16.msra.mxu0 %v480_v17  ;;  %v5184_v17 = vld [vmem:[%s7286_s3] sm:$0xff]  }
 0x113   :  { %4739 = vmatpush3.bf16.msra.mxu1 %v745_v23  ;;  %v4664_v26 = vpop.f32.mrb[12].mxu0  ;;  %4708 = vmatprep.subr.bf16.mxu0 %v481_v2  ;;  %v5186_v23 = vld [vmem:[%s7286_s3 + $0x8] sm:$0xff]  }
 0x114   :  { %v4696_v27 = vpop.f32.mrb[12].mxu1  ;;  %4740 = vmatprep.subr.bf16.mxu1 %v746_v16  ;;  %v284_v28 = vpop.f32.mrb[13].mxu0 }
 0x115   :  { %v445_v29 = vpop.f32.mrb[13].mxu1  ;;  %v4665_v30 = vpop.f32.mrb[14].mxu0  ;;  %1528 = vperm.xlu0 %5149, %v6108_v1  }
 0x116   :  { %v483_v31 = vpack.c.bf16 %v4665_v30, %v4664_v26  ;;  %v4697_v32 = vpop.f32.mrb[14].mxu1  ;;  %v287_v33 = vpop.f32.mrb[15].mxu0  ;;  %4709 = vmatpush3.bf16.msra.mxu0 %v481_v2  ;;  %v5181_v2 = vld [vmem:[%s7287_s4 + $0x38] sm:$0xff]   ;;  %v5187_v26 = vld [vmem:[%s7285_s2 + $0x10] sm:$0xff]   ;;  %v5191_v30 = vld [vmem:[%s7285_s2 + $0x20] sm:$0xff]  }
 0x117   :  { %v748_v35 = vpack.c.bf16 %v4697_v32, %v4696_v27  ;;  %v482_v36 = vpack.c.bf16 %v287_v33, %v284_v28  ;;  %v448_v37 = vpop.f32.mrb[15].mxu1  ;;  %4741 = vmatpush3.bf16.msra.mxu1 %v746_v16  ;;  %v5183_v16 = vld [vmem:[%s7285_s2] sm:$0xff]   ;;  %v5188_v27 = vld [vmem:[%s7286_s3 + $0x10] sm:$0xff]   ;;  %v5189_v28 = vld [vmem:[%s7285_s2 + $0x18] sm:$0xff]  }
 0x118   :  { %v747_v39 = vpack.c.bf16 %v448_v37, %v445_v29  ;;  %v5190_v29 = vld [vmem:[%s7286_s3 + $0x18] sm:$0xff]   ;;  %v5193_v32 = vld [vmem:[%s7285_s2 + $0x28] sm:$0xff]  }
 0x119   :  { %4710 = vmatprep.subr.bf16.mxu0 %v482_v36  ;;  %v5194_v33 = vld [vmem:[%s7286_s3 + $0x28] sm:$0xff]   ;;  %v5198_v37 = vld [vmem:[%s7286_s3 + $0x38] sm:$0xff]  }
 0x11a   :  { %4742 = vmatprep.subr.bf16.mxu1 %v747_v39  ;;  %4711 = vmatpush3.bf16.msra.mxu0 %v482_v36  ;;  %v5197_v36 = vld [vmem:[%s7285_s2 + $0x38] sm:$0xff]  }
 0x11b   :  { %4743 = vmatpush3.bf16.msra.mxu1 %v747_v39  ;;  %4712 = vmatprep.subr.bf16.mxu0 %v483_v31  ;;  %v513_v39 = vpop.permute.xlu1 %512 }
 0x11c   :  { %4744 = vmatprep.subr.bf16.mxu1 %v748_v35 }
 0x11e   :  { %4713 = vmatpush3.bf16.msra.mxu0 %v483_v31  ;;  %v5192_v31 = vld [vmem:[%s7286_s3 + $0x20] sm:$0xff]  }
 0x11f   :  { %4745 = vmatpush3.bf16.msra.mxu1 %v748_v35  ;;  %4762 = vmatprep.subr.msk.bf16.mxu0 %vm5770_vm5, %v7292_v11  ;;  %v5196_v35 = vld [vmem:[%s7286_s3 + $0x30] sm:$0xff]  }
 0x120   :  { %4794 = vmatprep.subr.msk.bf16.mxu1 %vm5777_vm1, %v7292_v11 }
 0x121   :  { %4715 = vmatmul.mubr.bf16.vlgmr.msra.gmra.mrb[16].mxu0 %v5169_v41  ;;  %v518_v41 = vpop.permute.xlu1 %517 }
 0x122   :  { %4747 = vmatmul.mubr.bf16.vlgmr.msra.gmra.mrb[16].mxu1 %v5170_v43  ;;  %4763 = vmatpush3.bf16.msk.msra.mxu0 %vm5770_vm5, %v7292_v11  ;;  %vm1120_vm5 = vcmp.eq.s32.totalorder %v5407_v12, %v5760_v38 }
 0x123   :  { %4795 = vmatpush3.bf16.msk.msra.mxu1 %vm5777_vm1, %v7292_v11  ;;  %4764 = vmatprep.subr.msk.bf16.mxu0 %vm5798_vm12, %v7292_v11  ;;  %vm1121_vm1 = vcmp.eq.s32.totalorder %v5410_v13, %v5760_v38 }
 0x124   :  { %4796 = vmatprep.subr.msk.bf16.mxu1 %vm5805_vm13, %v7292_v11  ;;  %4718 = vmatprep.mubr.bf16.mxu0 %v5171_v45  ;;  %vm5873_vm7 = vmpackc.low %vm1121_vm1, %vm1120_vm5  ;;  %vm1082_vm5 = vcmp.eq.s32.totalorder %v5468_v20, %v5755_v34  ;;  %vm1083_vm1 = vcmp.eq.s32.totalorder %v5471_v21, %v5755_v34  ;;  %v5200_v45 = vld [vmem:[%s7288_s5] sm:$0xff]  }
 0x125   :  { %4750 = vmatprep.mubr.bf16.mxu1 %v5172_v47  ;;  %vm5968_vm9 = vmpackc.low %vm1083_vm1, %vm1082_vm5  ;;  %v6062_v43 = vpop.permute.xlu1 %527 }
 0x126   :  { %4765 = vmatpush3.bf16.msk.msra.mxu0 %vm5798_vm12, %v7292_v11  ;;  %vm1122_vm12 = vcmp.eq.s32.totalorder %v5427_v14, %v5760_v38 }
 0x127   :  { %4797 = vmatpush3.bf16.msk.msra.mxu1 %vm5805_vm13, %v7292_v11  ;;  %4766 = vmatprep.subr.msk.bf16.mxu0 %vm5832_vm11, %v7292_v11  ;;  %vm1123_vm13 = vcmp.eq.s32.totalorder %v5430_v15, %v5760_v38 }
 0x128   :  { %4798 = vmatprep.subr.msk.bf16.mxu1 %vm5839_vm14, %v7292_v11  ;;  %vm5907_vm2 = vmpackc.low %vm1123_vm13, %vm1122_vm12  ;;  %vm1084_vm12 = vcmp.eq.s32.totalorder %v5493_v24, %v5755_v34  ;;  %vm1085_vm13 = vcmp.eq.s32.totalorder %v5496_v25, %v5755_v34  ;;  %v5195_v34 = vld [vmem:[%s7285_s2 + $0x30] sm:$0xff]  }
 0x129   :  { %4719 = vmatmul.mubr.bf16.gmra.mrb[20].mxu0 %v5173_v49  ;;  %vm4204_vm8 = vmpackc.low %vm1085_vm13, %vm1084_vm12  ;;  %v6072_v47 = vpop.permute.xlu1 %537 }
 0x12a   :  { %4751 = vmatmul.mubr.bf16.gmra.mrb[20].mxu1 %v5174_v51  ;;  %4767 = vmatpush3.bf16.msk.msra.mxu0 %vm5832_vm11, %v7292_v11  ;;  %vm1124_vm11 = vcmp.eq.s32.totalorder %v5449_v18, %v5760_v38 }
 0x12b   :  { %4799 = vmatpush3.bf16.msk.msra.mxu1 %vm5839_vm14, %v7292_v11  ;;  %4768 = vmatprep.subr.msk.bf16.mxu0 %vm5866_vm6, %v7292_v11  ;;  %vm1125_vm14 = vcmp.eq.s32.totalorder %v5452_v19, %v5760_v38 }
 0x12c   :  { %4800 = vmatprep.subr.msk.bf16.mxu1 %vm5873_vm7, %v7292_v11  ;;  %4722 = vmatprep.mubr.bf16.mxu0 %v5175_v53  ;;  %vm5941_vm4 = vmpackc.low %vm1125_vm14, %vm1124_vm11 }
 0x12d   :  { %4754 = vmatprep.mubr.bf16.mxu1 %v5176_v55  ;;  %v6076_v49 = vpop.permute.xlu1 %547 }
 0x12e   :  { %4769 = vmatpush3.bf16.msk.msra.mxu0 %vm5866_vm6, %v7292_v11  ;;  %vm1126_vm6 = vcmp.eq.s32.totalorder %v5468_v20, %v5760_v38 }
 0x12f   :  { %4801 = vmatpush3.bf16.msk.msra.mxu1 %vm5873_vm7, %v7292_v11  ;;  %4770 = vmatprep.subr.msk.bf16.mxu0 %vm5900_vm15, %v7292_v11  ;;  %vm1127_vm7 = vcmp.eq.s32.totalorder %v5471_v21, %v5760_v38 }
 0x130   :  { %4802 = vmatprep.subr.msk.bf16.mxu1 %vm5907_vm2, %v7292_v11  ;;  %vm5975_vm10 = vmpackc.low %vm1127_vm7, %vm1126_vm6 }
 0x131   :  { %4723 = vmatmul.mubr.bf16.gmra.mrb[24].mxu0 %v5177_v57  ;;  %v6080_v51 = vpop.permute.xlu1 %557 }
 0x132   :  { %4755 = vmatmul.mubr.bf16.gmra.mrb[24].mxu1 %v5178_v59  ;;  %4771 = vmatpush3.bf16.msk.msra.mxu0 %vm5900_vm15, %v7292_v11  ;;  %vm1128_vm15 = vcmp.eq.s32.totalorder %v5493_v24, %v5760_v38 }
 0x133   :  { %4803 = vmatpush3.bf16.msk.msra.mxu1 %vm5907_vm2, %v7292_v11  ;;  %4772 = vmatprep.subr.msk.bf16.mxu0 %vm5934_vm3, %v7292_v11  ;;  %vm1129_vm2 = vcmp.eq.s32.totalorder %v5496_v25, %v5760_v38  ;;  %v503_v38 = vpop.permute.xlu0 %502 }
 0x134   :  { %4804 = vmatprep.subr.msk.bf16.mxu1 %vm5941_vm4, %v7292_v11  ;;  %4726 = vmatprep.mubr.bf16.mxu0 %v5179_v61  ;;  %vm4228_vm0 = vmpackc.low %vm1129_vm2, %vm1128_vm15 }
 0x135   :  { %4758 = vmatprep.mubr.bf16.mxu1 %v5180_v63  ;;  %v6084_v53 = vpop.permute.xlu1 %567  ;;  %v6103_v63 = vld [vmem:[%s7289_s6 + $0x8] sm:$0xff] }
 0x136   :  { %4773 = vmatpush3.bf16.msk.msra.mxu0 %vm5934_vm3, %v7292_v11  ;;  %1523 = vperm.xlu1 %5150, %v6103_v63  }
 0x137   :  { %4805 = vmatpush3.bf16.msk.msra.mxu1 %vm5941_vm4, %v7292_v11  ;;  %4774 = vmatprep.subr.msk.bf16.mxu0 %vm5968_vm9, %v7292_v11  ;;  %v508_v40 = vpop.permute.xlu0 %507 }
 0x138   :  { %4806 = vmatprep.subr.msk.bf16.mxu1 %vm5975_vm10, %v7292_v11 }
 0x139   :  { %4727 = vmatmul.mubr.bf16.gmra.mrb[28].mxu0 %v5181_v2  ;;  %v6088_v55 = vpop.permute.xlu1 %577 }
 0x13a   :  { %4759 = vmatmul.mubr.bf16.gmra.mrb[28].mxu1 %v5182_v5  ;;  %4775 = vmatpush3.bf16.msk.msra.mxu0 %vm5968_vm9, %v7292_v11  ;;  %v6120_v5 = vld [vmem:[%s7289_s6 + $0x20] sm:$0xff] }
 0x13b   :  { %4807 = vmatpush3.bf16.msk.msra.mxu1 %vm5975_vm10, %v7292_v11  ;;  %4776 = vmatprep.subr.msk.bf16.mxu0 %vm4204_vm8, %v7292_v11  ;;  %v6060_v42 = vpop.permute.xlu0 %522 }
 0x13c   :  { %4808 = vmatprep.subr.msk.bf16.mxu1 %vm4228_vm0, %v7292_v11  ;;  %4778 = vmatprep.mubr.bf16.mxu0 %v5183_v16 }
 0x13d   :  { %4810 = vmatprep.mubr.bf16.mxu1 %v5184_v17  ;;  %v773_v57 = vpop.permute.xlu1 %772  ;;  %1533 = vperm.xlu1 %5150, %v6115_v3  }
 0x13e   :  { %4777 = vmatpush3.bf16.msk.msra.mxu0 %vm4204_vm8, %v7292_v11  ;;  %1538 = vperm.xlu0 %5149, %v6120_v5  }
 0x13f   :  { %4809 = vmatpush3.bf16.msk.msra.mxu1 %vm4228_vm0, %v7292_v11  ;;  %v6070_v46 = vpop.permute.xlu0 %532 }
 0x141   :  { %4779 = vmatmul.mubr.bf16.vlgmr.msra.gmra.mrb[32].mxu0 %v5185_v22  ;;  %v783_v59 = vpop.permute.xlu1 %782  ;;  %v6131_v22 = vld [vmem:[%s7289_s6 + $0x28] sm:$0xff] }
 0x142   :  { %4811 = vmatmul.mubr.bf16.vlgmr.msra.gmra.mrb[32].mxu1 %v5186_v23  ;;  %4782 = vmatprep.mubr.bf16.mxu0 %v5187_v26  ;;  %v6136_v23 = vld [vmem:[%s7289_s6 + $0x30] sm:$0xff] }
 0x143   :  { %4814 = vmatprep.mubr.bf16.mxu1 %v5188_v27  ;;  %v6074_v48 = vpop.permute.xlu0 %542  ;;  %1543 = vperm.xlu1 %5150, %v6131_v22  }
 0x144   :  { %1548 = vperm.xlu0 %5149, %v6136_v23  }
 0x145   :  { %v6098_v62 = vpop.permute.xlu1 %792 }
 0x147   :  { %v6078_v50 = vpop.permute.xlu0 %552 }
 0x149   :  { %4783 = vmatmul.mubr.bf16.gmra.mrb[36].mxu0 %v5189_v28  ;;  %v6122_v16 = vpop.permute.xlu1 %802 }
 0x14a   :  { %4815 = vmatmul.mubr.bf16.gmra.mrb[36].mxu1 %v5190_v29  ;;  %4786 = vmatprep.mubr.bf16.mxu0 %v5191_v30 }
 0x14b   :  { %4818 = vmatprep.mubr.bf16.mxu1 %v5192_v31  ;;  %v6082_v52 = vpop.permute.xlu0 %562  ;;  %v6145_v31 = vld [vmem:[%s7289_s6 + $0x38] sm:$0xff] }
 0x14c   :  { %1553 = vperm.xlu1 %5150, %v6145_v31  }
 0x14d   :  { %v6138_v27 = vpop.permute.xlu1 %812 }
 0x14f   :  { %v6086_v54 = vpop.permute.xlu0 %572 }
 0x151   :  { %4787 = vmatmul.mubr.bf16.gmra.mrb[40].mxu0 %v5193_v32  ;;  %v6150_v32 = vld [vmem:[%s7289_s6 + $0x40] sm:$0xff] }
 0x152   :  { %4819 = vmatmul.mubr.bf16.gmra.mrb[40].mxu1 %v5194_v33  ;;  %4790 = vmatprep.mubr.bf16.mxu0 %v5195_v34 }
 0x153   :  { %4822 = vmatprep.mubr.bf16.mxu1 %v5196_v35  ;;  %v768_v56 = vpop.permute.xlu0 %767  ;;  %1558 = vperm.xlu0 %5149, %v6150_v32  }
 0x157   :  { %v778_v58 = vpop.permute.xlu0 %777 }
 0x159   :  { %4791 = vmatmul.mubr.bf16.gmra.mrb[44].mxu0 %v5197_v36 }
 0x15a   :  { %4823 = vmatmul.mubr.bf16.gmra.mrb[44].mxu1 %v5198_v37  ;;  %4842 = vmatprep.mubr.bf16.mxu0 %v5199_v44 }
 0x15b   :  { %4874 = vmatprep.mubr.bf16.mxu1 %v5200_v45  ;;  %v6096_v61 = vpop.permute.xlu0 %787 }
 0x15f   :  { %v798_v2 = vpop.permute.xlu0 %797 }
 0x163   :  { %v6126_v17 = vpop.permute.xlu0 %807 }
 0x1f4   :  { %v4716_v26 = vpop.f32.mrb[16].mxu0 }
 0x1f5   :  { %v671_v28 = vadd.f32 %v4716_v26, %v513_v39  ;;  %v4748_v29 = vpop.f32.mrb[16].mxu1  ;;  %v662_v30 = vpop.f32.mrb[17].mxu0 }
 0x1f6   :  { %v936_v33 = vadd.f32 %v4748_v29, %v778_v58  ;;  %v663_v34 = vadd.f32 %v662_v30, %v503_v38  ;;  %v927_v35 = vpop.f32.mrb[17].mxu1  ;;  %v4717_v36 = vpop.f32.mrb[18].mxu0  ;;  %v6157_v38 = vld [vmem:[%s7289_s6 + $0x48] sm:$0xff] }
 0x1f7   :  { %v992_v37 = vmax.f32 %v671_v28, 0.0  ;;  %v928_v44 = vadd.f32 %v927_v35, %v768_v56  ;;  %v674_v45 = vadd.f32 %v4717_v36, %v518_v41  ;;  %v4749_v39 = vpop.f32.mrb[18].mxu1  ;;  %v665_v26 = vpop.f32.mrb[19].mxu0  ;;  %v6162_v41 = vld [vmem:[%s7289_s6 + $0x50] sm:$0xff]  ;;  %1563 = vperm.xlu1 %5150, %v6157_v38  }
 0x1f8   :  { %v1008_v11 = vmax.f32 %v936_v33, 0.0  ;;  %v990_v0 = vmax.f32 %v663_v34, 0.0  ;;  %v939_v25 = vadd.f32 %v4749_v39, %v783_v59  ;;  %v666_v24 = vadd.f32 %v665_v26, %v508_v40  ;;  %v930_v21 = vpop.f32.mrb[19].mxu1  ;;  %v818_v30 = vpop.permute.xlu0 %817  ;;  %1568 = vperm.xlu0 %5149, %v6162_v41  }
 0x1f9   :  { %v1006_v20 = vmax.f32 %v928_v44, 0.0  ;;  %v993_v19 = vmax.f32 %v674_v45, 0.0  ;;  %v931_v58 = vadd.f32 %v930_v21, %v773_v57  ;;  %v6164_v35 = vpop.permute.xlu1 %822 }
 0x1fa   :  { %v1024_v56 = vmul.f32 %v1008_v11, %v992_v37  ;;  %v1009_v40 = vmax.f32 %v939_v25, 0.0  ;;  %v991_v59 = vmax.f32 %v666_v24, 0.0  ;;  %v6172_v11 = vld [vmem:[%s7289_s6 + $0x58] sm:$0xff] }
 0x1fb   :  { %v1022_v28 = vmul.f32 %v1006_v20, %v990_v0  ;;  %v1007_v29 = vmax.f32 %v931_v58, 0.0  ;;  %v6177_v0 = vld [vmem:[%s7289_s6 + $0x60] sm:$0xff]  ;;  %1573 = vperm.xlu1 %5150, %v6172_v11  }
 0x1fc   :  { %v1025_v33 = vmul.f32 %v1009_v40, %v993_v19  ;;  %v4720_v34 = vpop.f32.mrb[20].mxu0  ;;  %1578 = vperm.xlu0 %5149, %v6177_v0  }
 0x1fd   :  { %v1023_v21 = vmul.f32 %v1007_v29, %v991_v59  ;;  %v687_v57 = vadd.f32 %v4720_v34, %v6070_v46  ;;  %v4752_v36 = vpop.f32.mrb[20].mxu1  ;;  %v678_v44 = vpop.f32.mrb[21].mxu0 }
 0x1fe   :  { %v952_v19 = vadd.f32 %v4752_v36, %v798_v2  ;;  %v679_v20 = vadd.f32 %v678_v44, %v6060_v42  ;;  %v943_v24 = vpop.f32.mrb[21].mxu1  ;;  %v4721_v25 = vpop.f32.mrb[22].mxu0 }
 0x1ff   :  { %v1038_v37 = vadd.f32 %v1023_v21, %v1022_v28  ;;  %v996_v45 = vmax.f32 %v687_v57, 0.0  ;;  %v944_v46 = vadd.f32 %v943_v24, %v6096_v61  ;;  %v690_v39 = vadd.f32 %v4721_v25, %v6072_v47  ;;  %v4753_v26 = vpop.f32.mrb[22].mxu1  ;;  %v681_v58 = vpop.f32.mrb[23].mxu0  ;;  %v6190_v47 = vld [vmem:[%s7289_s6 + $0x68] sm:$0xff] }
 0x200   :  { %v1012_v40 = vmax.f32 %v952_v19, 0.0  ;;  %v994_v59 = vmax.f32 %v679_v20, 0.0  ;;  %v955_v29 = vadd.f32 %v4753_v26, %v6122_v16  ;;  %v682_v34 = vadd.f32 %v681_v58, %v6062_v43  ;;  %v946_v18 = vpop.f32.mrb[23].mxu1  ;;  %v6195_v16 = vld [vmem:[%s7289_s6 + $0x70] sm:$0xff]  ;;  %v828_v19 = vpop.permute.xlu0 %827  ;;  %1583 = vperm.xlu1 %5150, %v6190_v47  }
 0x201   :  { %v1039_v42 = vadd.f32 %v1038_v37, %v1024_v56  ;;  %v1010_v2 = vmax.f32 %v944_v46, 0.0  ;;  %v997_v28 = vmax.f32 %v690_v39, 0.0  ;;  %v947_v61 = vadd.f32 %v946_v18, %v6098_v62  ;;  %v6197_v18 = vpop.permute.xlu1 %832  ;;  %1588 = vperm.xlu0 %5149, %v6195_v16   ;;  %v6210_v39 = vld [vmem:[%s7290_s7] sm:$0xff] }
 0x202   :  { %v1028_v43 = vmul.f32 %v1012_v40, %v996_v45  ;;  %v1013_v21 = vmax.f32 %v955_v29, 0.0  ;;  %v995_v57 = vmax.f32 %v682_v34, 0.0 }
 0x203   :  { %v1026_v36 = vmul.f32 %v1010_v2, %v994_v59  ;;  %v1040_v44 = vadd.f32 %v1039_v42, %v1025_v33  ;;  %v1011_v56 = vmax.f32 %v947_v61, 0.0  ;;  %v6205_v33 = vld [vmem:[%s7289_s6 + $0x78] sm:$0xff] }
 0x204   :  { %v1029_v20 = vmul.f32 %v1013_v21, %v997_v28  ;;  %v4724_v24 = vpop.f32.mrb[24].mxu0  ;;  %1593 = vperm.xlu1 %5150, %v6205_v33  }
 0x205   :  { %v1041_v62 = vadd.f32 %v1040_v44, %v1026_v36  ;;  %v1027_v25 = vmul.f32 %v1011_v56, %v995_v57  ;;  %v703_v37 = vadd.f32 %v4724_v24, %v6078_v50  ;;  %v4756_v46 = vpop.f32.mrb[24].mxu1  ;;  %v694_v45 = vpop.f32.mrb[25].mxu0  ;;  %1783 = vperm.xlu0 %5149, %v6210_v39  }
 0x206   :  { %v968_v26 = vadd.f32 %v4756_v46, %v818_v30  ;;  %v695_v58 = vadd.f32 %v694_v45, %v6074_v48  ;;  %v959_v40 = vpop.f32.mrb[25].mxu1  ;;  %v4725_v59 = vpop.f32.mrb[26].mxu0 }
 0x207   :  { %v1042_v29 = vadd.f32 %v1041_v62, %v1027_v25  ;;  %v1000_v34 = vmax.f32 %v703_v37, 0.0  ;;  %v960_v50 = vadd.f32 %v959_v40, %v6126_v17  ;;  %v706_v42 = vadd.f32 %v4725_v59, %v6080_v51  ;;  %v4757_v2 = vpop.f32.mrb[26].mxu1  ;;  %v697_v28 = vpop.f32.mrb[27].mxu0  ;;  %v6223_v51 = vld [vmem:[%s7290_s7 + $0x8] sm:$0xff] }
 0x208   :  { %v1016_v61 = vmax.f32 %v968_v26, 0.0  ;;  %v998_v21 = vmax.f32 %v695_v58, 0.0  ;;  %v971_v57 = vadd.f32 %v4757_v2, %v6164_v35  ;;  %v698_v36 = vadd.f32 %v697_v28, %v6076_v49  ;;  %v962_v44 = vpop.f32.mrb[27].mxu1  ;;  %v1767_v35 = vld [vmem:[%s7290_s7 + $0x10] sm:$0xff]  ;;  %v843_v58 = vpop.permute.xlu1 %842  ;;  %1788 = vperm.xlu1 %5150, %v6223_v51  }
 0x209   :  { %v1043_v48 = vadd.f32 %v1042_v29, %v1028_v43  ;;  %v1014_v30 = vmax.f32 %v960_v50, 0.0  ;;  %v1001_v56 = vmax.f32 %v706_v42, 0.0  ;;  %v963_v17 = vadd.f32 %v962_v44, %v6138_v27  ;;  %v838_v43 = vpop.permute.xlu0 %837  ;;  %1793 = vperm.xlu0 %5149, %v1767_v35  }
 0x20a   :  { %v1032_v49 = vmul.f32 %v1016_v61, %v1000_v34  ;;  %v1017_v24 = vmax.f32 %v971_v57, 0.0  ;;  %v999_v62 = vmax.f32 %v698_v36, 0.0  ;;  %v1768_v34 = vld [vmem:[%s7290_s7 + $0x18] sm:$0xff] }
 0x20b   :  { %v1030_v25 = vmul.f32 %v1014_v30, %v998_v21  ;;  %v1044_v37 = vadd.f32 %v1043_v48, %v1029_v20  ;;  %v1015_v46 = vmax.f32 %v963_v17, 0.0  ;;  %v1769_v20 = vld [vmem:[%s7290_s7 + $0x20] sm:$0xff] }
 0x20c   :  { %v1033_v45 = vmul.f32 %v1017_v24, %v1001_v56  ;;  %v4728_v26 = vpop.f32.mrb[28].mxu0  ;;  %1798 = vperm.xlu1 %5150, %v1768_v34   ;;  %v1772_v34 = vld [vmem:[%s7290_s7 + $0x38] sm:$0xff] }
 0x20d   :  { %v1045_v27 = vadd.f32 %v1044_v37, %v1030_v25  ;;  %v1031_v40 = vmul.f32 %v1015_v46, %v999_v62  ;;  %v719_v59 = vadd.f32 %v4728_v26, %v6086_v54  ;;  %v4760_v29 = vpop.f32.mrb[28].mxu1  ;;  %v710_v50 = vpop.f32.mrb[29].mxu0  ;;  %1803 = vperm.xlu0 %5149, %v1769_v20   ;;  %v1773_v20 = vld [vmem:[%s7290_s7 + $0x40] sm:$0xff] }
 0x20e   :  { %v984_v42 = vadd.f32 %v4760_v29, %v838_v43  ;;  %v711_v2 = vadd.f32 %v710_v50, %v6082_v52  ;;  %v975_v28 = vpop.f32.mrb[29].mxu1  ;;  %v4729_v61 = vpop.f32.mrb[30].mxu0 }
 0x20f   :  { %v1046_v21 = vadd.f32 %v1045_v27, %v1031_v40  ;;  %v1004_v57 = vmax.f32 %v719_v59, 0.0  ;;  %v976_v36 = vadd.f32 %v975_v28, %v828_v19  ;;  %v722_v54 = vadd.f32 %v4729_v61, %v6088_v55  ;;  %v4761_v44 = vpop.f32.mrb[30].mxu1  ;;  %v713_v48 = vpop.f32.mrb[31].mxu0  ;;  %v1770_v19 = vld [vmem:[%s7290_s7 + $0x28] sm:$0xff]  ;;  %v1771_v55 = vld [vmem:[%s7290_s7 + $0x30] sm:$0xff] }
 0x210   :  { %v1020_v30 = vmax.f32 %v984_v42, 0.0  ;;  %v1002_v56 = vmax.f32 %v711_v2, 0.0  ;;  %v987_v17 = vadd.f32 %v4761_v44, %v843_v58  ;;  %v714_v35 = vadd.f32 %v713_v48, %v6084_v53  ;;  %v978_v24 = vpop.f32.mrb[31].mxu1  ;;  %1808 = vperm.xlu1 %5150, %v1770_v19   ;;  %v1776_v19 = vld [vmem:[%s7290_s7 + $0x58] sm:$0xff] }
 0x211   :  { %v1047_v62 = vadd.f32 %v1046_v21, %v1032_v49  ;;  %v1018_v25 = vmax.f32 %v976_v36, 0.0  ;;  %v1005_v52 = vmax.f32 %v722_v54, 0.0  ;;  %v979_v37 = vadd.f32 %v978_v24, %v6197_v18  ;;  %1813 = vperm.xlu0 %5149, %v1771_v55  }
 0x212   :  { %v1036_v46 = vmul.f32 %v1020_v30, %v1004_v57  ;;  %v1021_v43 = vmax.f32 %v987_v17, 0.0  ;;  %v1003_v26 = vmax.f32 %v714_v35, 0.0  ;;  %v1774_v30 = vld [vmem:[%s7290_s7 + $0x48] sm:$0xff]  ;;  %v1775_v17 = vld [vmem:[%s7290_s7 + $0x50] sm:$0xff] }
 0x213   :  { %v1034_v53 = vmul.f32 %v1018_v25, %v1002_v56  ;;  %v1048_v58 = vadd.f32 %v1047_v62, %v1033_v45  ;;  %v1019_v27 = vmax.f32 %v979_v37, 0.0 }
 0x214   :  { %v1037_v40 = vmul.f32 %v1021_v43, %v1005_v52  ;;  %v4780_v49 = vpop.f32.mrb[32].mxu0  ;;  %1818 = vperm.xlu1 %5150, %v1772_v34  }
 0x215   :  { %v1049_v59 = vadd.f32 %v1048_v58, %v1034_v53  ;;  %v1035_v18 = vmul.f32 %v1019_v27, %v1003_v26  ;;  %v4812_v29 = vpop.f32.mrb[32].mxu1  ;;  %v1252_v50 = vpop.f32.mrb[33].mxu0  ;;  %1823 = vperm.xlu0 %5149, %v1773_v20   ;;  %v1777_v53 = vld [vmem:[%s7290_s7 + $0x60] sm:$0xff] }
 0x216   :  { %v1413_v42 = vpop.f32.mrb[33].mxu1  ;;  %v4781_v2 = vpop.f32.mrb[34].mxu0 }
 0x217   :  { %v1050_v45 = vadd.f32 %v1049_v59, %v1035_v18  ;;  %v1493_v28 = vpack.c.bf16 %v4781_v2, %v4780_v49  ;;  %v4813_v61 = vpop.f32.mrb[34].mxu1  ;;  %v1255_v21 = vpop.f32.mrb[35].mxu0  ;;  %v1778_v18 = vld [vmem:[%s7290_s7 + $0x68] sm:$0xff] }
 0x218   :  { %v1758_v57 = vpack.c.bf16 %v4813_v61, %v4812_v29  ;;  %v1492_v36 = vpack.c.bf16 %v1255_v21, %v1252_v50  ;;  %v1416_v54 = vpop.f32.mrb[35].mxu1  ;;  %1828 = vperm.xlu1 %5150, %v1774_v30   ;;  %v1779_v29 = vld [vmem:[%s7290_s7 + $0x70] sm:$0xff]  ;;  %v1780_v61 = vld [vmem:[%s7290_s7 + $0x78] sm:$0xff]  ;;  %v7365_v21 = vlaneseq }
 0x219   :  { %v1051_v44 = vadd.f32 %v1050_v45, %v1036_v46  ;;  %v1757_v48 = vpack.c.bf16 %v1416_v54, %v1413_v42  ;;  %1833 = vperm.xlu0 %5149, %v1775_v17  }
 0x21a   :  { %4826 = vmatprep.subr.bf16.mxu0 %v1492_v36  ;;  %vm6274_vm11 = vcmp.lt.s32.totalorder %v7365_v21, 128  ;;  %v5212_v21 = vld [vmem:[%s7288_s5 + $0x30] sm:$0xff]  }
 0x21b   :  { %v1052_v56 = vadd.f32 %v1051_v44, %v1037_v40  ;;  %4858 = vmatprep.subr.bf16.mxu1 %v1757_v48  ;;  %4827 = vmatpush3.bf16.msra.mxu0 %v1492_v36 }
 0x21c   :  { %4859 = vmatpush3.bf16.msra.mxu1 %v1757_v48  ;;  %v4784_v35 = vpop.f32.mrb[36].mxu0  ;;  %4828 = vmatprep.subr.bf16.mxu0 %v1493_v28 }
 0x21d   :  { %v1053_v24 = vrot.slane %v1052_v56, 4  ;;  %v4816_v62 = vpop.f32.mrb[36].mxu1  ;;  %4860 = vmatprep.subr.bf16.mxu1 %v1758_v57  ;;  %v1268_v25 = vpop.f32.mrb[37].mxu0  ;;  %1838 = vperm.xlu1 %5150, %v1776_v19  }
 0x21e   :  { %v1429_v52 = vpop.f32.mrb[37].mxu1  ;;  %v4785_v37 = vpop.f32.mrb[38].mxu0  ;;  %1843 = vperm.xlu0 %5149, %v1777_v53  }
 0x21f   :  { %v1054_v55 = vadd.f32 %v1053_v24, %v1052_v56  ;;  %v1495_v46 = vpack.c.bf16 %v4785_v37, %v4784_v35  ;;  %v4817_v43 = vpop.f32.mrb[38].mxu1  ;;  %v1271_v26 = vpop.f32.mrb[39].mxu0  ;;  %4829 = vmatpush3.bf16.msra.mxu0 %v1493_v28 }
 0x220   :  { %v1760_v58 = vpack.c.bf16 %v4817_v43, %v4816_v62  ;;  %v1494_v27 = vpack.c.bf16 %v1271_v26, %v1268_v25  ;;  %v1432_v40 = vpop.f32.mrb[39].mxu1  ;;  %4861 = vmatpush3.bf16.msra.mxu1 %v1758_v57 }
 0x221   :  { %v1055_v49 = vrot.slane %v1054_v55, 2  ;;  %v1759_v59 = vpack.c.bf16 %v1432_v40, %v1429_v52  ;;  %1848 = vperm.xlu1 %5150, %v1778_v18   ;;  %v5203_v40 = vld [vmem:[%s7287_s4 + $0x10] sm:$0xff]  }
 0x222   :  { %4830 = vmatprep.subr.bf16.mxu0 %v1494_v27  ;;  %1853 = vperm.xlu0 %5149, %v1779_v29   ;;  %v5206_v29 = vld [vmem:[%s7288_s5 + $0x18] sm:$0xff]  }
 0x223   :  { %4862 = vmatprep.subr.bf16.mxu1 %v1759_v59  ;;  %4831 = vmatpush3.bf16.msra.mxu0 %v1494_v27  ;;  %v1056_v50 = vadd.f32 %v1055_v49, %v1054_v55  ;;  %v7372_v27 = vmov 1.0|1.0  }
 0x224   :  { %4863 = vmatpush3.bf16.msra.mxu1 %v1759_v59  ;;  %v4788_v34 = vpop.f32.mrb[40].mxu0  ;;  %4832 = vmatprep.subr.bf16.mxu0 %v1495_v46  ;;  %v5204_v59 = vld [vmem:[%s7288_s5 + $0x10] sm:$0xff]  }
 0x225   :  { %v4820_v20 = vpop.f32.mrb[40].mxu1  ;;  %4864 = vmatprep.subr.bf16.mxu1 %v1760_v58  ;;  %v1284_v42 = vpop.f32.mrb[41].mxu0  ;;  %v1057_v2 = vrot.slane %v1056_v50, 1  ;;  %1858 = vperm.xlu1 %5150, %v1780_v61  }
 0x226   :  { %v1445_v45 = vpop.f32.mrb[41].mxu1  ;;  %v4789_v28 = vpop.f32.mrb[42].mxu0  ;;  %2530 = vperm.xlu0 %5149, %v6093_v60   ;;  %v6286_v60 = vld [vmem:[%s7283_s0 + $0x2] ss:$0 sm:$0xff] }
 0x227   :  { %v1497_v36 = vpack.c.bf16 %v4789_v28, %v4788_v34  ;;  %v4821_v54 = vpop.f32.mrb[42].mxu1  ;;  %v1287_v44 = vpop.f32.mrb[43].mxu0  ;;  %4833 = vmatpush3.bf16.msra.mxu0 %v1495_v46  ;;  %v1058_v48 = vadd.f32 %v1057_v2, %v1056_v50  ;;  %vm2082_vm14 = vcmp.eq.s32.totalorder %v5365_v4, %v6286_v60  ;;  %vm2083_vm3 = vcmp.eq.s32.totalorder %v5371_v6, %v6286_v60  ;;  %v5208_v34 = vld [vmem:[%s7288_s5 + $0x20] sm:$0xff]   ;;  %v5210_v28 = vld [vmem:[%s7288_s5 + $0x28] sm:$0xff]  }
 0x228   :  { %v1762_v30 = vpack.c.bf16 %v4821_v54, %v4820_v20  ;;  %v1496_v56 = vpack.c.bf16 %v1287_v44, %v1284_v42  ;;  %v1448_v17 = vpop.f32.mrb[43].mxu1  ;;  %4865 = vmatpush3.bf16.msra.mxu1 %v1760_v58  ;;  %vm6303_vm1 = vmpackc.low %vm2083_vm3, %vm2082_vm14  ;;  %vm2084_vm7 = vcmp.eq.s32.totalorder %v5376_v7, %v6286_v60  ;;  %vm2085_vm9 = vcmp.eq.s32.totalorder %v5381_v8, %v6286_v60  ;;  %v5209_v20 = vld [vmem:[%s7287_s4 + $0x28] sm:$0xff]   ;;  %v7396_v54 = vld [vmem:[#allocation8_spill] sm:$0xff] }
 0x229   :  { %v1761_v35 = vpack.c.bf16 %v1448_v17, %v1445_v45  ;;  %1063 = vst.msk [vmem:[#allocation2] sm:$0x1] %vm6274_vm11, %v1058_v48  ;;  %2535 = vperm.xlu1 %5150, %v6103_v63   ;;  %v6291_v63 = vld [vmem:[%s7284_s1 + $0x2] ss:$0 sm:$0xff]  ;;  %vm6333_vm13 = vmpackc.low %vm2085_vm9, %vm2084_vm7  ;;  %vm2086_vm2 = vcmp.eq.s32.totalorder %v5384_v9, %v6286_v60  ;;  %vm2087_vm8 = vcmp.eq.s32.totalorder %v5387_v10, %v6286_v60  ;;  %v7389_v2 = vld [vmem:[#allocation5_spill] sm:$0xff] }
 0x22a   :  { %4834 = vmatprep.subr.bf16.mxu0 %v1496_v56  ;;  %2540 = vperm.xlu0 %5149, %v6108_v1   ;;  %vm2126_vm4 = vcmp.eq.s32.totalorder %v5365_v4, %v6291_v63  ;;  %vm2127_vm5 = vcmp.eq.s32.totalorder %v5371_v6, %v6291_v63  ;;  %vm2128_vm10 = vcmp.eq.s32.totalorder %v5376_v7, %v6291_v63  ;;  %vm6369_vm3 = vmpackc.low %vm2087_vm8, %vm2086_vm2  ;;  %v7390_v45 = vld [vmem:[#allocation6_spill] sm:$0xff]  ;;  %v5213_v44 = vld [vmem:[%s7287_s4 + $0x38] sm:$0xff]  }
 0x22b   :  { %4866 = vmatprep.subr.bf16.mxu1 %v1761_v35  ;;  %4835 = vmatpush3.bf16.msra.mxu0 %v1496_v56  ;;  %vm6311_vm6 = vmpackc.low %vm2127_vm5, %vm2126_vm4  ;;  %vm2129_vm12 = vcmp.eq.s32.totalorder %v5381_v8, %v6291_v63  ;;  %vm2130_vm0 = vcmp.eq.s32.totalorder %v5384_v9, %v6291_v63  ;;  %vm2131_vm14 = vcmp.eq.s32.totalorder %v5387_v10, %v6291_v63  ;;  %v7402_v56 = vld [vmem:[#allocation10_spill] sm:$0xff]  ;;  %v5214_v17 = vld [vmem:[%s7288_s5 + $0x38] sm:$0xff]  }
 0x22c   :  { %4867 = vmatpush3.bf16.msra.mxu1 %v1761_v35  ;;  %v4792_v24 = vpop.f32.mrb[44].mxu0  ;;  %4836 = vmatprep.subr.bf16.mxu0 %v1497_v36  ;;  %vm6341_vm15 = vmpackc.low %vm2129_vm12, %vm2128_vm10  ;;  %vm2088_vm5 = vcmp.eq.s32.totalorder %v5407_v12, %v6286_v60  ;;  %vm2133_vm7 = vcmp.eq.s32.totalorder %v5410_v13, %v6291_v63  ;;  %vm2090_vm12 = vcmp.eq.s32.totalorder %v5427_v14, %v6286_v60  ;;  %v5217_v35 = vld [vmem:[%s7285_s2 + $0x8] sm:$0xff]  }
 0x22d   :  { %v4824_v62 = vpop.f32.mrb[44].mxu1  ;;  %4868 = vmatprep.subr.bf16.mxu1 %v1762_v30  ;;  %v1300_v25 = vpop.f32.mrb[45].mxu0  ;;  %2545 = vperm.xlu1 %5150, %v6115_v3   ;;  %v5201_v3 = vld [vmem:[%s7287_s4 + $0x8] sm:$0xff]   ;;  %vm6376_vm4 = vmpackc.low %vm2131_vm14, %vm2130_vm0  ;;  %vm2135_vm2 = vcmp.eq.s32.totalorder %v5430_v15, %v6291_v63  ;;  %vm2092_vm14 = vcmp.eq.s32.totalorder %v7389_v2, %v6286_v60 }
 0x22e   :  { %v1461_v52 = vpop.f32.mrb[45].mxu1  ;;  %v4793_v37 = vpop.f32.mrb[46].mxu0  ;;  %2550 = vperm.xlu0 %5149, %v6120_v5  }
 0x22f   :  { %v1499_v19 = vpack.c.bf16 %v4793_v37, %v4792_v24  ;;  %v4825_v55 = vpop.f32.mrb[46].mxu1  ;;  %v1303_v46 = vpop.f32.mrb[47].mxu0  ;;  %4837 = vmatpush3.bf16.msra.mxu0 %v1497_v36  ;;  %v7395_v36 = vld [vmem:[#allocation7_spill] sm:$0xff]  ;;  %v5223_v37 = vld [vmem:[%s7285_s2 + $0x20] sm:$0xff]  }
 0x230   :  { %v1764_v43 = vpack.c.bf16 %v4825_v55, %v4824_v62  ;;  %v1498_v26 = vpack.c.bf16 %v1303_v46, %v1300_v25  ;;  %v1464_v53 = vpop.f32.mrb[47].mxu1  ;;  %4869 = vmatpush3.bf16.msra.mxu1 %v1762_v30  ;;  %v7401_v30 = vld [vmem:[#allocation9_spill] sm:$0xff]  ;;  %v5219_v24 = vld [vmem:[%s7285_s2 + $0x10] sm:$0xff]   ;;  %v5221_v25 = vld [vmem:[%s7285_s2 + $0x18] sm:$0xff]  }
 0x231   :  { %v1763_v58 = vpack.c.bf16 %v1464_v53, %v1461_v52  ;;  %2555 = vperm.xlu1 %5150, %v6131_v22   ;;  %v5202_v22 = vld [vmem:[%s7288_s5 + $0x8] sm:$0xff]   ;;  %v5220_v62 = vld [vmem:[%s7286_s3 + $0x10] sm:$0xff]   ;;  %v5222_v52 = vld [vmem:[%s7286_s3 + $0x18] sm:$0xff]  }
 0x232   :  { %4838 = vmatprep.subr.bf16.mxu0 %v1498_v26  ;;  %2560 = vperm.xlu0 %5149, %v6136_v23   ;;  %v5225_v55 = vld [vmem:[%s7285_s2 + $0x28] sm:$0xff]   ;;  %v5230_v53 = vld [vmem:[%s7286_s3 + $0x38] sm:$0xff]   ;;  %v5231_v23 = vld [vmem:[%s7287_s4] sm:$0xff]  }
 0x233   :  { %4870 = vmatprep.subr.bf16.mxu1 %v1763_v58  ;;  %4839 = vmatpush3.bf16.msra.mxu0 %v1498_v26  ;;  %v5226_v46 = vld [vmem:[%s7286_s3 + $0x28] sm:$0xff]   ;;  %v5229_v26 = vld [vmem:[%s7285_s2 + $0x38] sm:$0xff]  }
 0x234   :  { %4871 = vmatpush3.bf16.msra.mxu1 %v1763_v58  ;;  %4840 = vmatprep.subr.bf16.mxu0 %v1499_v19  ;;  %v1524_v58 = vpop.permute.xlu1 %1523 }
 0x235   :  { %4872 = vmatprep.subr.bf16.mxu1 %v1764_v43  ;;  %2565 = vperm.xlu1 %5150, %v6145_v31  }
 0x236   :  { %2570 = vperm.xlu0 %5149, %v6150_v32   ;;  %v5205_v32 = vld [vmem:[%s7287_s4 + $0x18] sm:$0xff]  }
 0x237   :  { %4841 = vmatpush3.bf16.msra.mxu0 %v1499_v19  ;;  %v5224_v19 = vld [vmem:[%s7286_s3 + $0x20] sm:$0xff]  }
 0x238   :  { %4873 = vmatpush3.bf16.msra.mxu1 %v1764_v43  ;;  %4890 = vmatprep.subr.msk.bf16.mxu0 %vm6303_vm1, %v7372_v27  ;;  %v5228_v43 = vld [vmem:[%s7286_s3 + $0x30] sm:$0xff]  }
 0x239   :  { %4922 = vmatprep.subr.msk.bf16.mxu1 %vm6311_vm6, %v7372_v27  ;;  %2575 = vperm.xlu1 %5150, %v6157_v38  }
 0x23a   :  { %4843 = vmatmul.mubr.bf16.vlgmr.msra.gmra.mrb[48].mxu0 %v5201_v3  ;;  %2580 = vperm.xlu0 %5149, %v6162_v41   ;;  %v5207_v41 = vld [vmem:[%s7287_s4 + $0x20] sm:$0xff]   ;;  %v1534_v3 = vpop.permute.xlu1 %1533 }
 0x23b   :  { %4875 = vmatmul.mubr.bf16.vlgmr.msra.gmra.mrb[48].mxu1 %v5202_v22  ;;  %4891 = vmatpush3.bf16.msk.msra.mxu0 %vm6303_vm1, %v7372_v27  ;;  %vm2089_vm1 = vcmp.eq.s32.totalorder %v5410_v13, %v6286_v60 }
 0x23c   :  { %4923 = vmatpush3.bf16.msk.msra.mxu1 %vm6311_vm6, %v7372_v27  ;;  %4892 = vmatprep.subr.msk.bf16.mxu0 %vm6333_vm13, %v7372_v27  ;;  %vm2132_vm6 = vcmp.eq.s32.totalorder %v5407_v12, %v6291_v63  ;;  %vm6405_vm9 = vmpackc.low %vm2089_vm1, %vm2088_vm5  ;;  %vm2137_vm5 = vcmp.eq.s32.totalorder %v7390_v45, %v6291_v63 }
 0x23d   :  { %4924 = vmatprep.subr.msk.bf16.mxu1 %vm6341_vm15, %v7372_v27  ;;  %4846 = vmatprep.mubr.bf16.mxu0 %v5203_v40  ;;  %vm6412_vm10 = vmpackc.low %vm2133_vm7, %vm2132_vm6  ;;  %vm2094_vm7 = vcmp.eq.s32.totalorder %v7395_v36, %v6286_v60  ;;  %v5232_v40 = vld [vmem:[%s7288_s5] sm:$0xff]  }
 0x23e   :  { %4878 = vmatprep.mubr.bf16.mxu1 %v5204_v59  ;;  %2585 = vperm.xlu1 %5150, %v6172_v11   ;;  %v6608_v22 = vpop.permute.xlu1 %1543 }
 0x23f   :  { %4893 = vmatpush3.bf16.msk.msra.mxu0 %vm6333_vm13, %v7372_v27  ;;  %vm2091_vm13 = vcmp.eq.s32.totalorder %v5430_v15, %v6286_v60  ;;  %2590 = vperm.xlu0 %5149, %v6177_v0   ;;  %v5211_v0 = vld [vmem:[%s7287_s4 + $0x30] sm:$0xff]  }
 0x240   :  { %4925 = vmatpush3.bf16.msk.msra.mxu1 %vm6341_vm15, %v7372_v27  ;;  %4894 = vmatprep.subr.msk.bf16.mxu0 %vm6369_vm3, %v7372_v27  ;;  %vm2134_vm15 = vcmp.eq.s32.totalorder %v5427_v14, %v6291_v63  ;;  %vm6440_vm8 = vmpackc.low %vm2091_vm13, %vm2090_vm12  ;;  %vm2139_vm12 = vcmp.eq.s32.totalorder %v7396_v54, %v6291_v63 }
 0x241   :  { %4926 = vmatprep.subr.msk.bf16.mxu1 %vm6376_vm4, %v7372_v27  ;;  %vm6447_vm0 = vmpackc.low %vm2135_vm2, %vm2134_vm15  ;;  %vm2096_vm2 = vcmp.eq.s32.totalorder %v7401_v30, %v6286_v60 }
 0x242   :  { %4847 = vmatmul.mubr.bf16.gmra.mrb[52].mxu0 %v5205_v32  ;;  %2595 = vperm.xlu1 %5150, %v6190_v47   ;;  %v6618_v59 = vpop.permute.xlu1 %1553 }
 0x243   :  { %4879 = vmatmul.mubr.bf16.gmra.mrb[52].mxu1 %v5206_v29  ;;  %4895 = vmatpush3.bf16.msk.msra.mxu0 %vm6369_vm3, %v7372_v27  ;;  %vm2093_vm3 = vcmp.eq.s32.totalorder %v7390_v45, %v6286_v60 }
 0x244   :  { %4927 = vmatpush3.bf16.msk.msra.mxu1 %vm6376_vm4, %v7372_v27  ;;  %4896 = vmatprep.subr.msk.bf16.mxu0 %vm6405_vm9, %v7372_v27  ;;  %vm2136_vm4 = vcmp.eq.s32.totalorder %v7389_v2, %v6291_v63  ;;  %vm6476_vm1 = vmpackc.low %vm2093_vm3, %vm2092_vm14  ;;  %vm2141_vm14 = vcmp.eq.s32.totalorder %v7402_v56, %v6291_v63 }
 0x245   :  { %4928 = vmatprep.subr.msk.bf16.mxu1 %vm6412_vm10, %v7372_v27  ;;  %4850 = vmatprep.mubr.bf16.mxu0 %v5207_v41  ;;  %vm6483_vm6 = vmpackc.low %vm2137_vm5, %vm2136_vm4 }
 0x246   :  { %4882 = vmatprep.mubr.bf16.mxu1 %v5208_v34  ;;  %2605 = vperm.xlu1 %5150, %v6205_v33   ;;  %v6643_v33 = vld [vmem:[%s7290_s7 + $0x18] sm:$0xff] }
 0x247   :  { %4897 = vmatpush3.bf16.msk.msra.mxu0 %vm6405_vm9, %v7372_v27  ;;  %vm2095_vm9 = vcmp.eq.s32.totalorder %v7396_v54, %v6286_v60  ;;  %2600 = vperm.xlu0 %5149, %v6195_v16   ;;  %v5215_v16 = vld [vmem:[%s7285_s2] sm:$0xff]  }
 0x248   :  { %4929 = vmatpush3.bf16.msk.msra.mxu1 %vm6412_vm10, %v7372_v27  ;;  %4898 = vmatprep.subr.msk.bf16.mxu0 %vm6440_vm8, %v7372_v27  ;;  %vm2138_vm10 = vcmp.eq.s32.totalorder %v7395_v36, %v6291_v63  ;;  %vm6511_vm13 = vmpackc.low %vm2095_vm9, %vm2094_vm7 }
 0x249   :  { %4930 = vmatprep.subr.msk.bf16.mxu1 %vm6447_vm0, %v7372_v27  ;;  %vm6518_vm15 = vmpackc.low %vm2139_vm12, %vm2138_vm10 }
 0x24a   :  { %4851 = vmatmul.mubr.bf16.gmra.mrb[56].mxu0 %v5209_v20  ;;  %2800 = vperm.xlu1 %5150, %v6223_v51   ;;  %v5216_v51 = vld [vmem:[%s7286_s3] sm:$0xff]  }
 0x24b   :  { %4883 = vmatmul.mubr.bf16.gmra.mrb[56].mxu1 %v5210_v28  ;;  %4899 = vmatpush3.bf16.msk.msra.mxu0 %vm6440_vm8, %v7372_v27  ;;  %vm2097_vm8 = vcmp.eq.s32.totalorder %v7402_v56, %v6286_v60  ;;  %v5227_v60 = vld [vmem:[%s7285_s2 + $0x30] sm:$0xff]  }
 0x24c   :  { %4931 = vmatpush3.bf16.msk.msra.mxu1 %vm6447_vm0, %v7372_v27  ;;  %4900 = vmatprep.subr.msk.bf16.mxu0 %vm6476_vm1, %v7372_v27  ;;  %vm2140_vm0 = vcmp.eq.s32.totalorder %v7401_v30, %v6291_v63  ;;  %vm4270_vm3 = vmpackc.low %vm2097_vm8, %vm2096_vm2  ;;  %v1519_v63 = vpop.permute.xlu0 %1518 }
 0x24d   :  { %4932 = vmatprep.subr.msk.bf16.mxu1 %vm6483_vm6, %v7372_v27  ;;  %4854 = vmatprep.mubr.bf16.mxu0 %v5211_v0  ;;  %vm4294_vm4 = vmpackc.low %vm2141_vm14, %vm2140_vm0 }
 0x24e   :  { %4886 = vmatprep.mubr.bf16.mxu1 %v5212_v21  ;;  %2795 = vperm.xlu0 %5149, %v6210_v39   ;;  %v5218_v39 = vld [vmem:[%s7286_s3 + $0x8] sm:$0xff]  }
 0x24f   :  { %4901 = vmatpush3.bf16.msk.msra.mxu0 %vm6476_vm1, %v7372_v27  ;;  %2810 = vperm.xlu1 %5150, %v6643_v33  }
 0x250   :  { %4933 = vmatpush3.bf16.msk.msra.mxu1 %vm6483_vm6, %v7372_v27  ;;  %4902 = vmatprep.subr.msk.bf16.mxu0 %vm6511_vm13, %v7372_v27  ;;  %v1529_v1 = vpop.permute.xlu0 %1528 }
 0x251   :  { %4934 = vmatprep.subr.msk.bf16.mxu1 %vm6518_vm15, %v7372_v27 }
 0x252   :  { %4855 = vmatmul.mubr.bf16.gmra.mrb[60].mxu0 %v5213_v44  ;;  %v6648_v44 = vld [vmem:[%s7290_s7 + $0x10] sm:$0xff] }
 0x253   :  { %4887 = vmatmul.mubr.bf16.gmra.mrb[60].mxu1 %v5214_v17  ;;  %4903 = vmatpush3.bf16.msk.msra.mxu0 %vm6511_vm13, %v7372_v27 }
 0x254   :  { %4935 = vmatpush3.bf16.msk.msra.mxu1 %vm6518_vm15, %v7372_v27  ;;  %4904 = vmatprep.subr.msk.bf16.mxu0 %vm4270_vm3, %v7372_v27  ;;  %v6606_v5 = vpop.permute.xlu0 %1538 }
 0x255   :  { %4936 = vmatprep.subr.msk.bf16.mxu1 %vm4294_vm4, %v7372_v27  ;;  %4906 = vmatprep.mubr.bf16.mxu0 %v5215_v16 }
 0x256   :  { %4938 = vmatprep.mubr.bf16.mxu1 %v5216_v51  ;;  %2805 = vperm.xlu0 %5149, %v6648_v44   ;;  %v6659_v51 = vld [vmem:[%s7290_s7 + $0x28] sm:$0xff] }
 0x257   :  { %4905 = vmatpush3.bf16.msk.msra.mxu0 %vm4270_vm3, %v7372_v27  ;;  %2820 = vperm.xlu1 %5150, %v6659_v51  }
 0x258   :  { %4937 = vmatpush3.bf16.msk.msra.mxu1 %vm4294_vm4, %v7372_v27  ;;  %v6616_v49 = vpop.permute.xlu0 %1548 }
 0x25a   :  { %4907 = vmatmul.mubr.bf16.vlgmr.msra.gmra.mrb[64].mxu0 %v5217_v35  ;;  %v6664_v35 = vld [vmem:[%s7290_s7 + $0x20] sm:$0xff] }
 0x25b   :  { %4939 = vmatmul.mubr.bf16.vlgmr.msra.gmra.mrb[64].mxu1 %v5218_v39  ;;  %4910 = vmatprep.mubr.bf16.mxu0 %v5219_v24 }
 0x25c   :  { %4942 = vmatprep.mubr.bf16.mxu1 %v5220_v62  ;;  %v6620_v31 = vpop.permute.xlu0 %1558  ;;  %2815 = vperm.xlu0 %5149, %v6664_v35  }
 0x262   :  { %4911 = vmatmul.mubr.bf16.gmra.mrb[68].mxu0 %v5221_v25 }
 0x263   :  { %4943 = vmatmul.mubr.bf16.gmra.mrb[68].mxu1 %v5222_v52  ;;  %4914 = vmatprep.mubr.bf16.mxu0 %v5223_v37 }
 0x264   :  { %4946 = vmatprep.mubr.bf16.mxu1 %v5224_v19 }
 0x26a   :  { %4915 = vmatmul.mubr.bf16.gmra.mrb[72].mxu0 %v5225_v55 }
 0x26b   :  { %4947 = vmatmul.mubr.bf16.gmra.mrb[72].mxu1 %v5226_v46  ;;  %4918 = vmatprep.mubr.bf16.mxu0 %v5227_v60 }
 0x26c   :  { %4950 = vmatprep.mubr.bf16.mxu1 %v5228_v43 }
 0x272   :  { %4919 = vmatmul.mubr.bf16.gmra.mrb[76].mxu0 %v5229_v26 }
 0x273   :  { %4951 = vmatmul.mubr.bf16.gmra.mrb[76].mxu1 %v5230_v53  ;;  %4970 = vmatprep.mubr.bf16.mxu0 %v5231_v23 }
 0x274   :  { %5002 = vmatprep.mubr.bf16.mxu1 %v5232_v40 }
 0x276   :  { %v6622_v32 = vpop.permute.xlu1 %1563 }
 0x277   :  { %v6624_v18 = vpop.permute.xlu0 %1568 }
 0x27a   :  { %v6626_v29 = vpop.permute.xlu1 %1573 }
 0x27b   :  { %v6628_v38 = vpop.permute.xlu0 %1578 }
 0x27f   :  { %v6630_v41 = vpop.permute.xlu1 %1583 }
 0x280   :  { %v6632_v50 = vpop.permute.xlu0 %1588 }
 0x283   :  { %v6634_v34 = vpop.permute.xlu1 %1593 }
 0x284   :  { %v1784_v11 = vpop.permute.xlu0 %1783 }
 0x287   :  { %v1789_v20 = vpop.permute.xlu1 %1788 }
 0x288   :  { %v1794_v42 = vpop.permute.xlu0 %1793 }
 0x28b   :  { %v1799_v28 = vpop.permute.xlu1 %1798 }
 0x28c   :  { %v1804_v47 = vpop.permute.xlu0 %1803 }
 0x28f   :  { %v6636_v0 = vpop.permute.xlu1 %1808 }
 0x290   :  { %v1814_v61 = vpop.permute.xlu0 %1813 }
 0x293   :  { %v6638_v21 = vpop.permute.xlu1 %1818 }
 0x294   :  { %v6650_v48 = vpop.permute.xlu0 %1823 }
 0x297   :  { %v6654_v16 = vpop.permute.xlu1 %1828 }
 0x30d   :  { %v4844_v17 = vpop.f32.mrb[48].mxu0 }
 0x30e   :  { %v1687_v39 = vadd.f32 %v4844_v17, %v1529_v1  ;;  %v4876_v24 = vpop.f32.mrb[48].mxu1  ;;  %v1678_v62 = vpop.f32.mrb[49].mxu0 }
 0x30f   :  { %v1952_v25 = vadd.f32 %v4876_v24, %v1794_v42  ;;  %v1679_v52 = vadd.f32 %v1678_v62, %v1519_v63  ;;  %v1943_v37 = vpop.f32.mrb[49].mxu1  ;;  %v4845_v19 = vpop.f32.mrb[50].mxu0  ;;  %v6671_v63 = vld [vmem:[%s7290_s7 + $0x38] sm:$0xff] }
 0x310   :  { %v2008_v55 = vmax.f32 %v1687_v39, 0.0  ;;  %v1944_v46 = vadd.f32 %v1943_v37, %v1784_v11  ;;  %v1690_v60 = vadd.f32 %v4845_v19, %v1534_v3  ;;  %v4877_v43 = vpop.f32.mrb[50].mxu1  ;;  %v1681_v26 = vpop.f32.mrb[51].mxu0  ;;  %v6676_v3 = vld [vmem:[%s7290_s7 + $0x30] sm:$0xff]  ;;  %2830 = vperm.xlu1 %5150, %v6671_v63  }
 0x311   :  { %v2024_v53 = vmax.f32 %v1952_v25, 0.0  ;;  %v2006_v23 = vmax.f32 %v1679_v52, 0.0  ;;  %v1955_v40 = vadd.f32 %v4877_v43, %v1799_v28  ;;  %v1682_v56 = vadd.f32 %v1681_v26, %v1524_v58  ;;  %v1946_v1 = vpop.f32.mrb[51].mxu1  ;;  %v1834_v58 = vpop.permute.xlu0 %1833  ;;  %2825 = vperm.xlu0 %5149, %v6676_v3  }
 0x312   :  { %v2022_v11 = vmax.f32 %v1944_v46, 0.0  ;;  %v2009_v42 = vmax.f32 %v1690_v60, 0.0  ;;  %v1947_v17 = vadd.f32 %v1946_v1, %v1789_v20  ;;  %v6680_v19 = vpop.permute.xlu1 %1838  ;;  %v6685_v46 = vld [vmem:[%s7290_s7 + $0x48] sm:$0xff] }
 0x313   :  { %v2040_v39 = vmul.f32 %v2024_v53, %v2008_v55  ;;  %v2025_v24 = vmax.f32 %v1955_v40, 0.0  ;;  %v2007_v62 = vmax.f32 %v1682_v56, 0.0  ;;  %v6690_v56 = vld [vmem:[%s7290_s7 + $0x40] sm:$0xff] }
 0x314   :  { %v2038_v25 = vmul.f32 %v2022_v11, %v2006_v23  ;;  %v2023_v28 = vmax.f32 %v1947_v17, 0.0  ;;  %2840 = vperm.xlu1 %5150, %v6685_v46  }
 0x315   :  { %v2041_v52 = vmul.f32 %v2025_v24, %v2009_v42  ;;  %v4848_v37 = vpop.f32.mrb[52].mxu0  ;;  %2835 = vperm.xlu0 %5149, %v6690_v56  }
 0x316   :  { %v2039_v20 = vmul.f32 %v2023_v28, %v2007_v62  ;;  %v1703_v55 = vadd.f32 %v4848_v37, %v6616_v49  ;;  %v4880_v60 = vpop.f32.mrb[52].mxu1  ;;  %v1694_v43 = vpop.f32.mrb[53].mxu0 }
 0x317   :  { %v1968_v26 = vadd.f32 %v4880_v60, %v1814_v61  ;;  %v1695_v53 = vadd.f32 %v1694_v43, %v6606_v5  ;;  %v1959_v23 = vpop.f32.mrb[53].mxu1  ;;  %v4849_v40 = vpop.f32.mrb[54].mxu0 }
 0x318   :  { %v2054_v1 = vadd.f32 %v2039_v20, %v2038_v25  ;;  %v2012_v11 = vmax.f32 %v1703_v55, 0.0  ;;  %v1960_v42 = vadd.f32 %v1959_v23, %v1804_v47  ;;  %v1706_v17 = vadd.f32 %v4849_v40, %v6618_v59  ;;  %v4881_v24 = vpop.f32.mrb[54].mxu1  ;;  %v1697_v30 = vpop.f32.mrb[55].mxu0  ;;  %v6702_v25 = vld [vmem:[%s7290_s7 + $0x58] sm:$0xff]  ;;  %v6707_v59 = vld [vmem:[%s7290_s7 + $0x50] sm:$0xff] }
 0x319   :  { %v2028_v62 = vmax.f32 %v1968_v26, 0.0  ;;  %v2010_v49 = vmax.f32 %v1695_v53, 0.0  ;;  %v1971_v28 = vadd.f32 %v4881_v24, %v6638_v21  ;;  %v1698_v61 = vadd.f32 %v1697_v30, %v6608_v22  ;;  %v1962_v5 = vpop.f32.mrb[55].mxu1  ;;  %v1844_v53 = vpop.permute.xlu0 %1843  ;;  %2850 = vperm.xlu1 %5150, %v6702_v25   ;;  %2845 = vperm.xlu0 %5149, %v6707_v59  }
 0x31a   :  { %v2055_v47 = vadd.f32 %v2054_v1, %v2040_v39  ;;  %v2026_v37 = vmax.f32 %v1960_v42, 0.0  ;;  %v2013_v20 = vmax.f32 %v1706_v17, 0.0  ;;  %v1963_v55 = vadd.f32 %v1962_v5, %v6636_v0  ;;  %v6712_v24 = vpop.permute.xlu1 %1848  ;;  %v6717_v39 = vld [vmem:[%s7290_s7 + $0x68] sm:$0xff]  ;;  %v6722_v0 = vld [vmem:[%s7290_s7 + $0x60] sm:$0xff] }
 0x31b   :  { %v2044_v60 = vmul.f32 %v2028_v62, %v2012_v11  ;;  %v2029_v21 = vmax.f32 %v1971_v28, 0.0  ;;  %v2011_v43 = vmax.f32 %v1698_v61, 0.0 }
 0x31c   :  { %v2042_v30 = vmul.f32 %v2026_v37, %v2010_v49  ;;  %v2056_v22 = vadd.f32 %v2055_v47, %v2041_v52  ;;  %v2027_v26 = vmax.f32 %v1963_v55, 0.0 }
 0x31d   :  { %v2045_v23 = vmul.f32 %v2029_v21, %v2013_v20  ;;  %v4852_v40 = vpop.f32.mrb[56].mxu0  ;;  %2860 = vperm.xlu1 %5150, %v6717_v39   ;;  %2855 = vperm.xlu0 %5149, %v6722_v0  }
 0x31e   :  { %v2057_v52 = vadd.f32 %v2056_v22, %v2042_v30  ;;  %v2043_v1 = vmul.f32 %v2027_v26, %v2011_v43  ;;  %v1719_v11 = vadd.f32 %v4852_v40, %v6624_v18  ;;  %v4884_v42 = vpop.f32.mrb[56].mxu1  ;;  %v1710_v17 = vpop.f32.mrb[57].mxu0  ;;  %v6735_v22 = vld [vmem:[%s7290_s7 + $0x78] sm:$0xff] }
 0x31f   :  { %v1984_v62 = vadd.f32 %v4884_v42, %v1834_v58  ;;  %v1711_v49 = vadd.f32 %v1710_v17, %v6620_v31  ;;  %v1975_v28 = vpop.f32.mrb[57].mxu1  ;;  %v4853_v61 = vpop.f32.mrb[58].mxu0 }
 0x320   :  { %v2058_v5 = vadd.f32 %v2057_v52, %v2043_v1  ;;  %v2016_v47 = vmax.f32 %v1719_v11, 0.0  ;;  %v1976_v37 = vadd.f32 %v1975_v28, %v6650_v48  ;;  %v1722_v20 = vadd.f32 %v4853_v61, %v6626_v29  ;;  %v4885_v55 = vpop.f32.mrb[58].mxu1  ;;  %v1713_v21 = vpop.f32.mrb[59].mxu0  ;;  %v6740_v29 = vld [vmem:[%s7290_s7 + $0x70] sm:$0xff] }
 0x321   :  { %v2032_v18 = vmax.f32 %v1984_v62, 0.0  ;;  %v2014_v43 = vmax.f32 %v1711_v49, 0.0  ;;  %v1987_v58 = vadd.f32 %v4885_v55, %v6680_v19  ;;  %v1714_v31 = vadd.f32 %v1713_v21, %v6622_v32  ;;  %v1978_v30 = vpop.f32.mrb[59].mxu1  ;;  %v1854_v62 = vpop.permute.xlu0 %1853  ;;  %2870 = vperm.xlu1 %5150, %v6735_v22   ;;  %2865 = vperm.xlu0 %5149, %v6740_v29  }
 0x322   :  { %v2059_v48 = vadd.f32 %v2058_v5, %v2044_v60  ;;  %v2030_v26 = vmax.f32 %v1976_v37, 0.0  ;;  %v2017_v40 = vmax.f32 %v1722_v20, 0.0  ;;  %v1979_v52 = vadd.f32 %v1978_v30, %v6654_v16  ;;  %v1859_v61 = vpop.permute.xlu1 %1858  ;;  %v3525_v60 = vld [vmem:[%s7289_s6 + $0x8] sm:$0xff]  ;;  %v3524_v16 = vld [vmem:[%s7289_s6] sm:$0xff] }
 0x323   :  { %v2048_v1 = vmul.f32 %v2032_v18, %v2016_v47  ;;  %v2033_v19 = vmax.f32 %v1987_v58, 0.0  ;;  %v2015_v11 = vmax.f32 %v1714_v31, 0.0 }
 0x324   :  { %v2046_v32 = vmul.f32 %v2030_v26, %v2014_v43  ;;  %v2060_v42 = vadd.f32 %v2059_v48, %v2045_v23  ;;  %v2031_v17 = vmax.f32 %v1979_v52, 0.0 }
 0x325   :  { %v2049_v49 = vmul.f32 %v2033_v19, %v2017_v40  ;;  %v4856_v28 = vpop.f32.mrb[60].mxu0  ;;  %3547 = vperm.xlu1 %5150, %v3525_v60   ;;  %3542 = vperm.xlu0 %5149, %v3524_v16  }
 0x326   :  { %v2061_v5 = vadd.f32 %v2060_v42, %v2046_v32  ;;  %v2047_v47 = vmul.f32 %v2031_v17, %v2015_v11  ;;  %v1735_v23 = vadd.f32 %v4856_v28, %v6632_v50  ;;  %v4888_v37 = vpop.f32.mrb[60].mxu1  ;;  %v1726_v20 = vpop.f32.mrb[61].mxu0 }
 0x327   :  { %v2000_v55 = vadd.f32 %v4888_v37, %v1854_v62  ;;  %v1727_v21 = vadd.f32 %v1726_v20, %v6628_v38  ;;  %v1991_v18 = vpop.f32.mrb[61].mxu1  ;;  %v4857_v43 = vpop.f32.mrb[62].mxu0  ;;  %v3527_v38 = vld [vmem:[%s7289_s6 + $0x18] sm:$0xff]  ;;  %v3790_v37 = vld [vmem:[%s7290_s7 + $0x8] sm:$0xff] }
 0x328   :  { %v2062_v58 = vadd.f32 %v2061_v5, %v2047_v47  ;;  %v2020_v31 = vmax.f32 %v1735_v23, 0.0  ;;  %v1992_v30 = vadd.f32 %v1991_v18, %v1844_v53  ;;  %v1738_v48 = vadd.f32 %v4857_v43, %v6634_v34  ;;  %v4889_v26 = vpop.f32.mrb[62].mxu1  ;;  %v1729_v40 = vpop.f32.mrb[63].mxu0  ;;  %v3526_v53 = vld [vmem:[%s7289_s6 + $0x10] sm:$0xff] }
 0x329   :  { %v2036_v52 = vmax.f32 %v2000_v55, 0.0  ;;  %v2018_v19 = vmax.f32 %v1727_v21, 0.0  ;;  %v2003_v11 = vadd.f32 %v4889_v26, %v1859_v61  ;;  %v1730_v50 = vadd.f32 %v1729_v40, %v6630_v41  ;;  %v1994_v32 = vpop.f32.mrb[63].mxu1  ;;  %3557 = vperm.xlu1 %5150, %v3527_v38   ;;  %3552 = vperm.xlu0 %5149, %v3526_v53  }
 0x32a   :  { %v2063_v42 = vadd.f32 %v2062_v58, %v2048_v1  ;;  %v2034_v34 = vmax.f32 %v1992_v30, 0.0  ;;  %v2021_v17 = vmax.f32 %v1738_v48, 0.0  ;;  %v1995_v62 = vadd.f32 %v1994_v32, %v6712_v24  ;;  %v3789_v1 = vld [vmem:[%s7290_s7] sm:$0xff] }
 0x32b   :  { %v2052_v28 = vmul.f32 %v2036_v52, %v2020_v31  ;;  %v2037_v60 = vmax.f32 %v2003_v11, 0.0  ;;  %v2019_v16 = vmax.f32 %v1730_v50, 0.0 }
 0x32c   :  { %v2050_v61 = vmul.f32 %v2034_v34, %v2018_v19  ;;  %v2064_v5 = vadd.f32 %v2063_v42, %v2049_v49  ;;  %v2035_v41 = vmax.f32 %v1995_v62, 0.0 }
 0x32d   :  { %v2053_v47 = vmul.f32 %v2037_v60, %v2021_v17  ;;  %v4908_v23 = vpop.f32.mrb[64].mxu0  ;;  %3812 = vperm.xlu1 %5150, %v3790_v37   ;;  %3807 = vperm.xlu0 %5149, %v3789_v1  }
 0x32e   :  { %v2065_v20 = vadd.f32 %v2064_v5, %v2050_v61  ;;  %v2051_v24 = vmul.f32 %v2035_v41, %v2019_v16  ;;  %v4940_v55 = vpop.f32.mrb[64].mxu1  ;;  %v2264_v21 = vpop.f32.mrb[65].mxu0  ;;  %v3528_v16 = vld [vmem:[%s7289_s6 + $0x20] sm:$0xff] }
 0x32f   :  { %v2425_v18 = vpop.f32.mrb[65].mxu1  ;;  %v4909_v43 = vpop.f32.mrb[66].mxu0 }
 0x330   :  { %v2066_v49 = vadd.f32 %v2065_v20, %v2051_v24  ;;  %v2505_v58 = vpack.c.bf16 %v4909_v43, %v4908_v23  ;;  %v4941_v31 = vpop.f32.mrb[66].mxu1  ;;  %v2267_v30 = vpop.f32.mrb[67].mxu0 }
 0x331   :  { %v2770_v48 = vpack.c.bf16 %v4941_v31, %v4940_v55  ;;  %v2504_v26 = vpack.c.bf16 %v2267_v30, %v2264_v21  ;;  %v2428_v40 = vpop.f32.mrb[67].mxu1  ;;  %3822 = vperm.xlu1 %5150, %v6643_v33   ;;  %3817 = vperm.xlu0 %5149, %v6648_v44   ;;  %v3529_v33 = vld [vmem:[%s7289_s6 + $0x28] sm:$0xff] }
 0x332   :  { %v2067_v52 = vadd.f32 %v2066_v49, %v2052_v28  ;;  %v2769_v19 = vpack.c.bf16 %v2428_v40, %v2425_v18  ;;  %v3530_v49 = vld [vmem:[%s7289_s6 + $0x30] sm:$0xff] }
 0x333   :  { %4954 = vmatprep.subr.bf16.mxu0 %v2504_v26 }
 0x334   :  { %v2068_v11 = vadd.f32 %v2067_v52, %v2053_v47  ;;  %4986 = vmatprep.subr.bf16.mxu1 %v2769_v19  ;;  %4955 = vmatpush3.bf16.msra.mxu0 %v2504_v26 }
 0x335   :  { %4987 = vmatpush3.bf16.msra.mxu1 %v2769_v19  ;;  %v4912_v50 = vpop.f32.mrb[68].mxu0  ;;  %4956 = vmatprep.subr.bf16.mxu0 %v2505_v58 }
 0x336   :  { %v2069_v32 = vrot.slane %v2068_v11, 4  ;;  %v4944_v38 = vpop.f32.mrb[68].mxu1  ;;  %4988 = vmatprep.subr.bf16.mxu1 %v2770_v48  ;;  %v2280_v53 = vpop.f32.mrb[69].mxu0  ;;  %3827 = vperm.xlu1 %5150, %v6664_v35  }
 0x337   :  { %v2441_v42 = vpop.f32.mrb[69].mxu1  ;;  %v4913_v34 = vpop.f32.mrb[70].mxu0  ;;  %3562 = vperm.xlu0 %5149, %v3528_v16  }
 0x338   :  { %v2070_v17 = vadd.f32 %v2069_v32, %v2068_v11  ;;  %v2507_v62 = vpack.c.bf16 %v4913_v34, %v4912_v50  ;;  %v4945_v28 = vpop.f32.mrb[70].mxu1  ;;  %v2283_v60 = vpop.f32.mrb[71].mxu0  ;;  %4957 = vmatpush3.bf16.msra.mxu0 %v2505_v58 }
 0x339   :  { %v2772_v61 = vpack.c.bf16 %v4945_v28, %v4944_v38  ;;  %v2506_v5 = vpack.c.bf16 %v2283_v60, %v2280_v53  ;;  %v2444_v41 = vpop.f32.mrb[71].mxu1  ;;  %4989 = vmatpush3.bf16.msra.mxu1 %v2770_v48  ;;  %v6791_v53 = vld [vmem:[%s7283_s0 + $0x3] ss:$0 sm:$0xff] }
 0x33a   :  { %v2071_v47 = vrot.slane %v2070_v17, 2  ;;  %v2771_v23 = vpack.c.bf16 %v2444_v41, %v2441_v42  ;;  %3832 = vperm.xlu1 %5150, %v6659_v51   ;;  %v3531_v51 = vld [vmem:[%s7289_s6 + $0x38] sm:$0xff]  ;;  %v3532_v42 = vld [vmem:[%s7289_s6 + $0x40] sm:$0xff]  ;;  %vm3094_vm5 = vcmp.eq.s32.totalorder %v5365_v4, %v6791_v53  ;;  %vm3095_vm1 = vcmp.eq.s32.totalorder %v5371_v6, %v6791_v53 }
 0x33b   :  { %4958 = vmatprep.subr.bf16.mxu0 %v2506_v5  ;;  %3567 = vperm.xlu0 %5149, %v3529_v33   ;;  %vm6813_vm9 = vmpackc.low %vm3095_vm1, %vm3094_vm5  ;;  %vm3096_vm12 = vcmp.eq.s32.totalorder %v5376_v7, %v6791_v53  ;;  %vm3097_vm13 = vcmp.eq.s32.totalorder %v5381_v8, %v6791_v53  ;;  %vm3098_vm14 = vcmp.eq.s32.totalorder %v5384_v9, %v6791_v53  ;;  %v3536_v33 = vld [vmem:[%s7289_s6 + $0x60] sm:$0xff] }
 0x33c   :  { %4990 = vmatprep.subr.bf16.mxu1 %v2771_v23  ;;  %4959 = vmatpush3.bf16.msra.mxu0 %v2506_v5  ;;  %v2072_v44 = vadd.f32 %v2071_v47, %v2070_v17  ;;  %vm6845_vm8 = vmpackc.low %vm3097_vm13, %vm3096_vm12  ;;  %v5236_v5 = vld [vmem:[%s7288_s5 + $0x10] sm:$0xff]   ;;  %vm3099_vm3 = vcmp.eq.s32.totalorder %v5387_v10, %v6791_v53  ;;  %v5238_v47 = vld [vmem:[%s7288_s5 + $0x18] sm:$0xff]  }
 0x33d   :  { %4991 = vmatpush3.bf16.msra.mxu1 %v2771_v23  ;;  %v4916_v37 = vpop.f32.mrb[72].mxu0  ;;  %4960 = vmatprep.subr.bf16.mxu0 %v2507_v62  ;;  %vm6883_vm1 = vmpackc.low %vm3099_vm3, %vm3098_vm14  ;;  %v5240_v23 = vld [vmem:[%s7288_s5 + $0x20] sm:$0xff]  }
 0x33e   :  { %v4948_v1 = vpop.f32.mrb[72].mxu1  ;;  %4992 = vmatprep.subr.bf16.mxu1 %v2772_v61  ;;  %v2296_v20 = vpop.f32.mrb[73].mxu0  ;;  %v2073_v24 = vrot.slane %v2072_v44, 1  ;;  %3837 = vperm.xlu1 %5150, %v6676_v3  }
 0x33f   :  { %v2457_v55 = vpop.f32.mrb[73].mxu1  ;;  %v4917_v35 = vpop.f32.mrb[74].mxu0  ;;  %3572 = vperm.xlu0 %5149, %v3530_v49   ;;  %v5248_v49 = vld [vmem:[%s7286_s3] sm:$0xff]  }
 0x340   :  { %v2509_v21 = vpack.c.bf16 %v4917_v35, %v4916_v37  ;;  %v4949_v18 = vpop.f32.mrb[74].mxu1  ;;  %v2299_v43 = vpop.f32.mrb[75].mxu0  ;;  %4961 = vmatpush3.bf16.msra.mxu0 %v2507_v62  ;;  %v2074_v58 = vadd.f32 %v2073_v24, %v2072_v44  ;;  %v5242_v44 = vld [vmem:[%s7288_s5 + $0x28] sm:$0xff]  }
 0x341   :  { %v2774_v31 = vpack.c.bf16 %v4949_v18, %v4948_v1  ;;  %v2508_v30 = vpack.c.bf16 %v2299_v43, %v2296_v20  ;;  %v2460_v48 = vpop.f32.mrb[75].mxu1  ;;  %4993 = vmatpush3.bf16.msra.mxu1 %v2772_v61  ;;  %v3537_v37 = vld [vmem:[%s7289_s6 + $0x68] sm:$0xff]  ;;  %v5244_v1 = vld [vmem:[%s7288_s5 + $0x30] sm:$0xff]   ;;  %v5247_v18 = vld [vmem:[%s7285_s2] sm:$0xff]  }
 0x342   :  { %v2773_v26 = vpack.c.bf16 %v2460_v48, %v2457_v55  ;;  %2075 = vst.msk [vmem:[#allocation2 + $0x1] sm:$0x1] %vm6274_vm11, %v2074_v58  ;;  %3842 = vperm.xlu1 %5150, %v6671_v63   ;;  %v6799_v63 = vld [vmem:[%s7284_s1 + $0x3] ss:$0 sm:$0xff]  ;;  %v3538_v20 = vld [vmem:[%s7289_s6 + $0x70] sm:$0xff]  ;;  %v7431_v55 = vld [vmem:[#allocation9_spill] sm:$0xff] }
 0x343   :  { %4962 = vmatprep.subr.bf16.mxu0 %v2508_v30  ;;  %3577 = vperm.xlu0 %5149, %v3531_v51   ;;  %vm3138_vm6 = vcmp.eq.s32.totalorder %v5365_v4, %v6799_v63  ;;  %vm3139_vm7 = vcmp.eq.s32.totalorder %v5371_v6, %v6799_v63  ;;  %v5233_v4 = vld [vmem:[%s7287_s4 + $0x8] sm:$0xff]   ;;  %vm3140_vm15 = vcmp.eq.s32.totalorder %v5376_v7, %v6799_v63  ;;  %v5235_v7 = vld [vmem:[%s7287_s4 + $0x10] sm:$0xff]   ;;  %v3539_v58 = vld [vmem:[%s7289_s6 + $0x78] sm:$0xff] }
 0x344   :  { %4994 = vmatprep.subr.bf16.mxu1 %v2773_v26  ;;  %4963 = vmatpush3.bf16.msra.mxu0 %v2508_v30  ;;  %vm6821_vm10 = vmpackc.low %vm3139_vm7, %vm3138_vm6  ;;  %v5234_v6 = vld [vmem:[%s7288_s5 + $0x8] sm:$0xff]   ;;  %vm3141_vm2 = vcmp.eq.s32.totalorder %v5381_v8, %v6799_v63  ;;  %vm3142_vm4 = vcmp.eq.s32.totalorder %v5384_v9, %v6799_v63  ;;  %vm3143_vm5 = vcmp.eq.s32.totalorder %v5387_v10, %v6799_v63  ;;  %v5237_v10 = vld [vmem:[%s7287_s4 + $0x18] sm:$0xff]  }
 0x345   :  { %4995 = vmatpush3.bf16.msra.mxu1 %v2773_v26  ;;  %v4920_v40 = vpop.f32.mrb[76].mxu0  ;;  %4964 = vmatprep.subr.bf16.mxu0 %v2509_v21  ;;  %vm6853_vm0 = vmpackc.low %vm3141_vm2, %vm3140_vm15  ;;  %vm3100_vm7 = vcmp.eq.s32.totalorder %v5407_v12, %v6791_v53  ;;  %vm3145_vm12 = vcmp.eq.s32.totalorder %v5410_v13, %v6799_v63  ;;  %vm3102_vm2 = vcmp.eq.s32.totalorder %v5427_v14, %v6791_v53  ;;  %v7432_v35 = vld [vmem:[#allocation10_spill] sm:$0xff]  ;;  %v5253_v26 = vld [vmem:[%s7285_s2 + $0x18] sm:$0xff]  }
 0x346   :  { %v4952_v52 = vpop.f32.mrb[76].mxu1  ;;  %4996 = vmatprep.subr.bf16.mxu1 %v2774_v31  ;;  %v2312_v19 = vpop.f32.mrb[77].mxu0  ;;  %3847 = vperm.xlu1 %5150, %v6690_v56   ;;  %v3533_v56 = vld [vmem:[%s7289_s6 + $0x48] sm:$0xff]  ;;  %vm6890_vm6 = vmpackc.low %vm3143_vm5, %vm3142_vm4  ;;  %vm3147_vm14 = vcmp.eq.s32.totalorder %v5430_v15, %v6799_v63  ;;  %vm3104_vm5 = vcmp.eq.s32.totalorder %v7389_v2, %v6791_v53  ;;  %v5251_v30 = vld [vmem:[%s7285_s2 + $0x10] sm:$0xff]  }
 0x347   :  { %v2473_v3 = vpop.f32.mrb[77].mxu1  ;;  %v4921_v11 = vpop.f32.mrb[78].mxu0  ;;  %3582 = vperm.xlu0 %5149, %v3532_v42   ;;  %v5252_v48 = vld [vmem:[%s7286_s3 + $0x10] sm:$0xff]   ;;  %v5254_v51 = vld [vmem:[%s7286_s3 + $0x18] sm:$0xff]  }
 0x348   :  { %v2511_v50 = vpack.c.bf16 %v4921_v11, %v4920_v40  ;;  %v4953_v32 = vpop.f32.mrb[78].mxu1  ;;  %v2315_v38 = vpop.f32.mrb[79].mxu0  ;;  %4965 = vmatpush3.bf16.msra.mxu0 %v2509_v21  ;;  %v5246_v21 = vld [vmem:[%s7288_s5 + $0x38] sm:$0xff]   ;;  %v5256_v40 = vld [vmem:[%s7286_s3 + $0x20] sm:$0xff]   ;;  %v5260_v11 = vld [vmem:[%s7286_s3 + $0x30] sm:$0xff]  }
 0x349   :  { %v2776_v34 = vpack.c.bf16 %v4953_v32, %v4952_v52  ;;  %v2510_v17 = vpack.c.bf16 %v2315_v38, %v2312_v19  ;;  %v2476_v62 = vpop.f32.mrb[79].mxu1  ;;  %4997 = vmatpush3.bf16.msra.mxu1 %v2774_v31  ;;  %v5250_v31 = vld [vmem:[%s7286_s3 + $0x8] sm:$0xff]   ;;  %v5262_v32 = vld [vmem:[%s7286_s3 + $0x38] sm:$0xff]   ;;  %v2536_v38 = vpop.permute.xlu1 %2535 }
 0x34a   :  { %v2775_v28 = vpack.c.bf16 %v2476_v62, %v2473_v3  ;;  %3852 = vperm.xlu1 %5150, %v6685_v46   ;;  %v3534_v46 = vld [vmem:[%s7289_s6 + $0x50] sm:$0xff]  ;;  %v5257_v52 = vld [vmem:[%s7285_s2 + $0x28] sm:$0xff]  }
 0x34b   :  { %4966 = vmatprep.subr.bf16.mxu0 %v2510_v17  ;;  %3587 = vperm.xlu0 %5149, %v3533_v56   ;;  %v5258_v19 = vld [vmem:[%s7286_s3 + $0x28] sm:$0xff]   ;;  %v5259_v3 = vld [vmem:[%s7285_s2 + $0x30] sm:$0xff]  }
 0x34c   :  { %4998 = vmatprep.subr.bf16.mxu1 %v2775_v28  ;;  %4967 = vmatpush3.bf16.msra.mxu0 %v2510_v17 }
 0x34d   :  { %4999 = vmatpush3.bf16.msra.mxu1 %v2775_v28  ;;  %4968 = vmatprep.subr.bf16.mxu0 %v2511_v50  ;;  %v2546_v42 = vpop.permute.xlu1 %2545  ;;  %v5264_v28 = vld [vmem:[%s7288_s5] sm:$0xff]  }
 0x34e   :  { %5000 = vmatprep.subr.bf16.mxu1 %v2776_v34  ;;  %3857 = vperm.xlu1 %5150, %v6707_v59   ;;  %v3535_v59 = vld [vmem:[%s7289_s6 + $0x58] sm:$0xff] }
 0x34f   :  { %3592 = vperm.xlu0 %5149, %v3534_v46  }
 0x350   :  { %4969 = vmatpush3.bf16.msra.mxu0 %v2511_v50  ;;  %v5261_v50 = vld [vmem:[%s7285_s2 + $0x38] sm:$0xff]  }
 0x351   :  { %5001 = vmatpush3.bf16.msra.mxu1 %v2776_v34  ;;  %5018 = vmatprep.subr.msk.bf16.mxu0 %vm6813_vm9, %v7372_v27  ;;  %v7144_v17 = vpop.permute.xlu1 %2555 }
 0x352   :  { %5050 = vmatprep.subr.msk.bf16.mxu1 %vm6821_vm10, %v7372_v27  ;;  %3862 = vperm.xlu1 %5150, %v6702_v25  }
 0x353   :  { %4971 = vmatmul.mubr.bf16.vlgmr.msra.gmra.mrb[80].mxu0 %v5233_v4  ;;  %3597 = vperm.xlu0 %5149, %v3535_v59  }
 0x354   :  { %5003 = vmatmul.mubr.bf16.vlgmr.msra.gmra.mrb[80].mxu1 %v5234_v6  ;;  %5019 = vmatpush3.bf16.msk.msra.mxu0 %vm6813_vm9, %v7372_v27  ;;  %vm3101_vm9 = vcmp.eq.s32.totalorder %v5410_v13, %v6791_v53 }
 0x355   :  { %5051 = vmatpush3.bf16.msk.msra.mxu1 %vm6821_vm10, %v7372_v27  ;;  %5020 = vmatprep.subr.msk.bf16.mxu0 %vm6845_vm8, %v7372_v27  ;;  %vm3144_vm10 = vcmp.eq.s32.totalorder %v5407_v12, %v6799_v63  ;;  %vm6918_vm13 = vmpackc.low %vm3101_vm9, %vm3100_vm7  ;;  %v5239_v12 = vld [vmem:[%s7287_s4 + $0x20] sm:$0xff]   ;;  %vm3149_vm7 = vcmp.eq.s32.totalorder %v7390_v45, %v6799_v63  ;;  %v2566_v56 = vpop.permute.xlu1 %2565 }
 0x356   :  { %5052 = vmatprep.subr.msk.bf16.mxu1 %vm6853_vm0, %v7372_v27  ;;  %4974 = vmatprep.mubr.bf16.mxu0 %v5235_v7  ;;  %vm6925_vm15 = vmpackc.low %vm3145_vm12, %vm3144_vm10  ;;  %vm3106_vm12 = vcmp.eq.s32.totalorder %v7395_v36, %v6791_v53 }
 0x357   :  { %5006 = vmatprep.mubr.bf16.mxu1 %v5236_v5  ;;  %3867 = vperm.xlu1 %5150, %v6722_v0  }
 0x358   :  { %5021 = vmatpush3.bf16.msk.msra.mxu0 %vm6845_vm8, %v7372_v27  ;;  %vm3103_vm8 = vcmp.eq.s32.totalorder %v5430_v15, %v6791_v53  ;;  %v5241_v15 = vld [vmem:[%s7287_s4 + $0x28] sm:$0xff]   ;;  %3602 = vperm.xlu0 %5149, %v3536_v33  }
 0x359   :  { %5053 = vmatpush3.bf16.msk.msra.mxu1 %vm6853_vm0, %v7372_v27  ;;  %5022 = vmatprep.subr.msk.bf16.mxu0 %vm6883_vm1, %v7372_v27  ;;  %vm3146_vm0 = vcmp.eq.s32.totalorder %v5427_v14, %v6799_v63  ;;  %vm6956_vm3 = vmpackc.low %vm3103_vm8, %vm3102_vm2  ;;  %vm3151_vm2 = vcmp.eq.s32.totalorder %v7396_v54, %v6799_v63  ;;  %v7152_v4 = vpop.permute.xlu1 %2575 }
 0x35a   :  { %5054 = vmatprep.subr.msk.bf16.mxu1 %vm6890_vm6, %v7372_v27  ;;  %vm6963_vm4 = vmpackc.low %vm3147_vm14, %vm3146_vm0  ;;  %vm3108_vm14 = vcmp.eq.s32.totalorder %v7431_v55, %v6791_v53 }
 0x35b   :  { %4975 = vmatmul.mubr.bf16.gmra.mrb[84].mxu0 %v5237_v10  ;;  %3872 = vperm.xlu1 %5150, %v6717_v39  }
 0x35c   :  { %5007 = vmatmul.mubr.bf16.gmra.mrb[84].mxu1 %v5238_v47  ;;  %5023 = vmatpush3.bf16.msk.msra.mxu0 %vm6883_vm1, %v7372_v27  ;;  %vm3105_vm1 = vcmp.eq.s32.totalorder %v7390_v45, %v6791_v53  ;;  %v5243_v45 = vld [vmem:[%s7287_s4 + $0x30] sm:$0xff]  }
 0x35d   :  { %5055 = vmatpush3.bf16.msk.msra.mxu1 %vm6890_vm6, %v7372_v27  ;;  %5024 = vmatprep.subr.msk.bf16.mxu0 %vm6918_vm13, %v7372_v27  ;;  %vm3148_vm6 = vcmp.eq.s32.totalorder %v7389_v2, %v6799_v63  ;;  %vm6994_vm9 = vmpackc.low %vm3105_vm1, %vm3104_vm5  ;;  %vm3153_vm5 = vcmp.eq.s32.totalorder %v7432_v35, %v6799_v63  ;;  %v7156_v6 = vpop.permute.xlu1 %2585 }
 0x35e   :  { %5056 = vmatprep.subr.msk.bf16.mxu1 %vm6925_vm15, %v7372_v27  ;;  %4978 = vmatprep.mubr.bf16.mxu0 %v5239_v12  ;;  %vm7001_vm10 = vmpackc.low %vm3149_vm7, %vm3148_vm6 }
 0x35f   :  { %5010 = vmatprep.mubr.bf16.mxu1 %v5240_v23  ;;  %3607 = vperm.xlu0 %5149, %v3537_v37  }
 0x360   :  { %5025 = vmatpush3.bf16.msk.msra.mxu0 %vm6918_vm13, %v7372_v27  ;;  %vm3107_vm13 = vcmp.eq.s32.totalorder %v7396_v54, %v6791_v53  ;;  %v5245_v54 = vld [vmem:[%s7287_s4 + $0x38] sm:$0xff]   ;;  %3877 = vperm.xlu1 %5150, %v6740_v29  }
 0x361   :  { %5057 = vmatpush3.bf16.msk.msra.mxu1 %vm6925_vm15, %v7372_v27  ;;  %5026 = vmatprep.subr.msk.bf16.mxu0 %vm6956_vm3, %v7372_v27  ;;  %vm3150_vm15 = vcmp.eq.s32.totalorder %v7395_v36, %v6799_v63  ;;  %vm7031_vm8 = vmpackc.low %vm3107_vm13, %vm3106_vm12  ;;  %v7160_v61 = vpop.permute.xlu1 %2595 }
 0x362   :  { %5058 = vmatprep.subr.msk.bf16.mxu1 %vm6963_vm4, %v7372_v27  ;;  %vm7038_vm0 = vmpackc.low %vm3151_vm2, %vm3150_vm15 }
 0x363   :  { %4979 = vmatmul.mubr.bf16.gmra.mrb[88].mxu0 %v5241_v15  ;;  %3612 = vperm.xlu0 %5149, %v3538_v20  }
 0x364   :  { %5011 = vmatmul.mubr.bf16.gmra.mrb[88].mxu1 %v5242_v44  ;;  %5027 = vmatpush3.bf16.msk.msra.mxu0 %vm6956_vm3, %v7372_v27  ;;  %vm3109_vm3 = vcmp.eq.s32.totalorder %v7432_v35, %v6791_v53  ;;  %v2531_v53 = vpop.permute.xlu0 %2530 }
 0x365   :  { %5059 = vmatpush3.bf16.msk.msra.mxu1 %vm6963_vm4, %v7372_v27  ;;  %5028 = vmatprep.subr.msk.bf16.mxu0 %vm6994_vm9, %v7372_v27  ;;  %vm3152_vm4 = vcmp.eq.s32.totalorder %v7431_v55, %v6799_v63  ;;  %vm7066_vm1 = vmpackc.low %vm3109_vm3, %vm3108_vm14  ;;  %v5263_v63 = vld [vmem:[%s7287_s4] sm:$0xff]   ;;  %v7164_v8 = vpop.permute.xlu1 %2605 }
 0x366   :  { %5060 = vmatprep.subr.msk.bf16.mxu1 %vm7001_vm10, %v7372_v27  ;;  %4982 = vmatprep.mubr.bf16.mxu0 %v5243_v45  ;;  %vm7073_vm6 = vmpackc.low %vm3153_vm5, %vm3152_vm4 }
 0x367   :  { %5014 = vmatprep.mubr.bf16.mxu1 %v5244_v1  ;;  %3882 = vperm.xlu1 %5150, %v6735_v22   ;;  %v5249_v22 = vld [vmem:[%s7285_s2 + $0x8] sm:$0xff]  }
 0x368   :  { %5029 = vmatpush3.bf16.msk.msra.mxu0 %vm6994_vm9, %v7372_v27  ;;  %3617 = vperm.xlu0 %5149, %v3539_v58   ;;  %v2541_v34 = vpop.permute.xlu0 %2540 }
 0x369   :  { %5061 = vmatpush3.bf16.msk.msra.mxu1 %vm7001_vm10, %v7372_v27  ;;  %5030 = vmatprep.subr.msk.bf16.mxu0 %vm7031_vm8, %v7372_v27  ;;  %v2801_v59 = vpop.permute.xlu1 %2800 }
 0x36a   :  { %5062 = vmatprep.subr.msk.bf16.mxu1 %vm7038_vm0, %v7372_v27 }
 0x36b   :  { %4983 = vmatmul.mubr.bf16.gmra.mrb[92].mxu0 %v5245_v54 }
 0x36c   :  { %5015 = vmatmul.mubr.bf16.gmra.mrb[92].mxu1 %v5246_v21  ;;  %5031 = vmatpush3.bf16.msk.msra.mxu0 %vm7031_vm8, %v7372_v27  ;;  %v2551_v62 = vpop.permute.xlu0 %2550 }
 0x36d   :  { %5063 = vmatpush3.bf16.msk.msra.mxu1 %vm7038_vm0, %v7372_v27  ;;  %5032 = vmatprep.subr.msk.bf16.mxu0 %vm7066_vm1, %v7372_v27  ;;  %v2811_v10 = vpop.permute.xlu1 %2810 }
 0x36e   :  { %5064 = vmatprep.subr.msk.bf16.mxu1 %vm7073_vm6, %v7372_v27  ;;  %5034 = vmatprep.mubr.bf16.mxu0 %v5247_v18 }
 0x36f   :  { %5066 = vmatprep.mubr.bf16.mxu1 %v5248_v49 }
 0x370   :  { %5033 = vmatpush3.bf16.msk.msra.mxu0 %vm7066_vm1, %v7372_v27  ;;  %v2561_v60 = vpop.permute.xlu0 %2560 }
 0x371   :  { %5065 = vmatpush3.bf16.msk.msra.mxu1 %vm7073_vm6, %v7372_v27  ;;  %v5255_v27 = vld [vmem:[%s7285_s2 + $0x20] sm:$0xff]   ;;  %v2821_v47 = vpop.permute.xlu1 %2820 }
 0x373   :  { %5035 = vmatmul.mubr.bf16.vlgmr.msra.gmra.mrb[96].mxu0 %v5249_v22 }
 0x374   :  { %5067 = vmatmul.mubr.bf16.vlgmr.msra.gmra.mrb[96].mxu1 %v5250_v31  ;;  %5038 = vmatprep.mubr.bf16.mxu0 %v5251_v30  ;;  %v7154_v16 = vpop.permute.xlu0 %2570 }
 0x375   :  { %5070 = vmatprep.mubr.bf16.mxu1 %v5252_v48 }
 0x378   :  { %v7158_v46 = vpop.permute.xlu0 %2580 }
 0x37b   :  { %5039 = vmatmul.mubr.bf16.gmra.mrb[100].mxu0 %v5253_v26 }
 0x37c   :  { %5071 = vmatmul.mubr.bf16.gmra.mrb[100].mxu1 %v5254_v51  ;;  %5042 = vmatprep.mubr.bf16.mxu0 %v5255_v27  ;;  %v7162_v7 = vpop.permute.xlu0 %2590 }
 0x37d   :  { %5074 = vmatprep.mubr.bf16.mxu1 %v5256_v40 }
 0x380   :  { %v7166_v5 = vpop.permute.xlu0 %2600 }
 0x383   :  { %5043 = vmatmul.mubr.bf16.gmra.mrb[104].mxu0 %v5257_v52 }
 0x384   :  { %5075 = vmatmul.mubr.bf16.gmra.mrb[104].mxu1 %v5258_v19  ;;  %5046 = vmatprep.mubr.bf16.mxu0 %v5259_v3  ;;  %v2796_v9 = vpop.permute.xlu0 %2795 }
 0x385   :  { %5078 = vmatprep.mubr.bf16.mxu1 %v5260_v11 }
 0x388   :  { %v2806_v41 = vpop.permute.xlu0 %2805 }
 0x38b   :  { %5047 = vmatmul.mubr.bf16.gmra.mrb[108].mxu0 %v5261_v50 }
 0x38c   :  { %5079 = vmatmul.mubr.bf16.gmra.mrb[108].mxu1 %v5262_v32  ;;  %5098 = vmatprep.mubr.bf16.mxu0 %v5263_v63  ;;  %v2816_v25 = vpop.permute.xlu0 %2815 }
 0x38d   :  { %5130 = vmatprep.mubr.bf16.mxu1 %v5264_v28 }
 0x38f   :  { %v2831_v12 = vpop.permute.xlu1 %2830 }
 0x390   :  { %v2826_v13 = vpop.permute.xlu0 %2825 }
 0x393   :  { %v7168_v23 = vpop.permute.xlu1 %2840 }
 0x394   :  { %v7170_v33 = vpop.permute.xlu0 %2835 }
 0x398   :  { %v2851_v48 = vpop.permute.xlu1 %2850  ;;  %v2846_v27 = vpop.permute.xlu0 %2845 }
 0x426   :  { %v4972_v14 = vpop.f32.mrb[80].mxu0 }
 0x427   :  { %v2699_v15 = vadd.f32 %v4972_v14, %v2541_v34  ;;  %v5004_v0 = vpop.f32.mrb[80].mxu1  ;;  %v2690_v44 = vpop.f32.mrb[81].mxu0 }
 0x428   :  { %v2964_v37 = vadd.f32 %v5004_v0, %v2806_v41  ;;  %v2691_v2 = vadd.f32 %v2690_v44, %v2531_v53  ;;  %v2955_v45 = vpop.f32.mrb[81].mxu1  ;;  %v4973_v39 = vpop.f32.mrb[82].mxu0 }
 0x429   :  { %v3020_v1 = vmax.f32 %v2699_v15, 0.0  ;;  %v2956_v20 = vadd.f32 %v2955_v45, %v2796_v9  ;;  %v2702_v36 = vadd.f32 %v4973_v39, %v2546_v42  ;;  %v5005_v54 = vpop.f32.mrb[82].mxu1  ;;  %v2693_v24 = vpop.f32.mrb[83].mxu0 }
 0x42a   :  { %v3036_v55 = vmax.f32 %v2964_v37, 0.0  ;;  %v3018_v35 = vmax.f32 %v2691_v2, 0.0  ;;  %v2967_v21 = vadd.f32 %v5005_v54, %v2811_v10  ;;  %v2694_v29 = vadd.f32 %v2693_v24, %v2536_v38  ;;  %v2958_v18 = vpop.f32.mrb[83].mxu1 }
 0x42b   :  { %v3034_v43 = vmax.f32 %v2956_v20, 0.0  ;;  %v3021_v49 = vmax.f32 %v2702_v36, 0.0  ;;  %v2959_v58 = vadd.f32 %v2958_v18, %v2801_v59  ;;  %v2856_v36 = vpop.permute.xlu0 %2855 }
 0x42c   :  { %v3052_v22 = vmul.f32 %v3036_v55, %v3020_v1  ;;  %v3037_v31 = vmax.f32 %v2967_v21, 0.0  ;;  %v3019_v30 = vmax.f32 %v2694_v29, 0.0  ;;  %v7173_v1 = vpop.permute.xlu1 %2860 }
 0x42d   :  { %v3050_v26 = vmul.f32 %v3034_v43, %v3018_v35  ;;  %v3035_v51 = vmax.f32 %v2959_v58, 0.0 }
 0x42e   :  { %v3053_v40 = vmul.f32 %v3037_v31, %v3021_v49  ;;  %v4976_v52 = vpop.f32.mrb[84].mxu0 }
 0x42f   :  { %v3051_v19 = vmul.f32 %v3035_v51, %v3019_v30  ;;  %v2715_v3 = vadd.f32 %v4976_v52, %v2561_v60  ;;  %v5008_v11 = vpop.f32.mrb[84].mxu1  ;;  %v2706_v50 = vpop.f32.mrb[85].mxu0 }
 0x430   :  { %v2980_v32 = vadd.f32 %v5008_v11, %v2826_v13  ;;  %v2707_v53 = vadd.f32 %v2706_v50, %v2551_v62  ;;  %v2971_v38 = vpop.f32.mrb[85].mxu1  ;;  %v4977_v42 = vpop.f32.mrb[86].mxu0 }
 0x431   :  { %v3066_v34 = vadd.f32 %v3051_v19, %v3050_v26  ;;  %v3024_v63 = vmax.f32 %v2715_v3, 0.0  ;;  %v2972_v28 = vadd.f32 %v2971_v38, %v2816_v25  ;;  %v2718_v59 = vadd.f32 %v4977_v42, %v2566_v56  ;;  %v5009_v9 = vpop.f32.mrb[86].mxu1  ;;  %v2709_v10 = vpop.f32.mrb[87].mxu0 }
 0x432   :  { %v3040_v41 = vmax.f32 %v2980_v32, 0.0  ;;  %v3022_v14 = vmax.f32 %v2707_v53, 0.0  ;;  %v2983_v15 = vadd.f32 %v5009_v9, %v2831_v12  ;;  %v2710_v0 = vadd.f32 %v2709_v10, %v7144_v17  ;;  %v2974_v44 = vpop.f32.mrb[87].mxu1  ;;  %v2871_v38 = vpop.permute.xlu1 %2870 }
 0x433   :  { %v3067_v37 = vadd.f32 %v3066_v34, %v3052_v22  ;;  %v3038_v60 = vmax.f32 %v2972_v28, 0.0  ;;  %v3025_v2 = vmax.f32 %v2718_v59, 0.0  ;;  %v2975_v45 = vadd.f32 %v2974_v44, %v2821_v47  ;;  %v2866_v34 = vpop.permute.xlu0 %2865 }
 0x434   :  { %v3056_v13 = vmul.f32 %v3040_v41, %v3024_v63  ;;  %v3041_v62 = vmax.f32 %v2983_v15, 0.0  ;;  %v3023_v39 = vmax.f32 %v2710_v0, 0.0 }
 0x435   :  { %v3054_v20 = vmul.f32 %v3038_v60, %v3022_v14  ;;  %v3068_v25 = vadd.f32 %v3067_v37, %v3053_v40  ;;  %v3039_v56 = vmax.f32 %v2975_v45, 0.0 }
 0x436   :  { %v3057_v54 = vmul.f32 %v3041_v62, %v3025_v2  ;;  %v4980_v24 = vpop.f32.mrb[88].mxu0 }
 0x437   :  { %v3069_v55 = vadd.f32 %v3068_v25, %v3054_v20  ;;  %v3055_v12 = vmul.f32 %v3039_v56, %v3023_v39  ;;  %v2731_v17 = vadd.f32 %v4980_v24, %v7158_v46  ;;  %v5012_v35 = vpop.f32.mrb[88].mxu1  ;;  %v2722_v21 = vpop.f32.mrb[89].mxu0 }
 0x438   :  { %v2996_v29 = vadd.f32 %v5012_v35, %v2846_v27  ;;  %v2723_v47 = vadd.f32 %v2722_v21, %v7154_v16  ;;  %v2987_v18 = vpop.f32.mrb[89].mxu1  ;;  %v4981_v43 = vpop.f32.mrb[90].mxu0 }
 0x439   :  { %v3070_v49 = vadd.f32 %v3069_v55, %v3055_v12  ;;  %v3028_v58 = vmax.f32 %v2731_v17, 0.0  ;;  %v2988_v22 = vadd.f32 %v2987_v18, %v7170_v33  ;;  %v2734_v31 = vadd.f32 %v4981_v43, %v7156_v6  ;;  %v5013_v30 = vpop.f32.mrb[90].mxu1  ;;  %v2725_v26 = vpop.f32.mrb[91].mxu0 }
 0x43a   :  { %v3044_v51 = vmax.f32 %v2996_v29, 0.0  ;;  %v3026_v40 = vmax.f32 %v2723_v47, 0.0  ;;  %v2999_v52 = vadd.f32 %v5013_v30, %v2851_v48  ;;  %v2726_v46 = vadd.f32 %v2725_v26, %v7152_v4  ;;  %v2990_v19 = vpop.f32.mrb[91].mxu1 }
 0x43b   :  { %v3071_v3 = vadd.f32 %v3070_v49, %v3056_v13  ;;  %v3042_v27 = vmax.f32 %v2988_v22, 0.0  ;;  %v3029_v11 = vmax.f32 %v2734_v31, 0.0  ;;  %v2991_v16 = vadd.f32 %v2990_v19, %v7168_v23 }
 0x43c   :  { %v3060_v50 = vmul.f32 %v3044_v51, %v3028_v58  ;;  %v3045_v32 = vmax.f32 %v2999_v52, 0.0  ;;  %v3027_v53 = vmax.f32 %v2726_v46, 0.0 }
 0x43d   :  { %v3058_v33 = vmul.f32 %v3042_v27, %v3026_v40  ;;  %v3072_v42 = vadd.f32 %v3071_v3, %v3057_v54  ;;  %v3043_v6 = vmax.f32 %v2991_v16, 0.0 }
 0x43e   :  { %v3061_v63 = vmul.f32 %v3045_v32, %v3029_v11  ;;  %v4984_v28 = vpop.f32.mrb[92].mxu0 }
 0x43f   :  { %v3073_v59 = vadd.f32 %v3072_v42, %v3058_v33  ;;  %v3059_v48 = vmul.f32 %v3043_v6, %v3027_v53  ;;  %v2747_v4 = vadd.f32 %v4984_v28, %v7166_v5  ;;  %v5016_v9 = vpop.f32.mrb[92].mxu1  ;;  %v2738_v10 = vpop.f32.mrb[93].mxu0 }
 0x440   :  { %v3012_v41 = vadd.f32 %v5016_v9, %v2866_v34  ;;  %v2739_v14 = vadd.f32 %v2738_v10, %v7162_v7  ;;  %v3003_v23 = vpop.f32.mrb[93].mxu1  ;;  %v4985_v15 = vpop.f32.mrb[94].mxu0 }
 0x441   :  { %v3074_v0 = vadd.f32 %v3073_v59, %v3059_v48  ;;  %v3032_v44 = vmax.f32 %v2747_v4, 0.0  ;;  %v3004_v37 = vadd.f32 %v3003_v23, %v2856_v36  ;;  %v2750_v60 = vadd.f32 %v4985_v15, %v7164_v8  ;;  %v5017_v2 = vpop.f32.mrb[94].mxu1  ;;  %v2741_v45 = vpop.f32.mrb[95].mxu0 }
 0x442   :  { %v3048_v13 = vmax.f32 %v3012_v41, 0.0  ;;  %v3030_v62 = vmax.f32 %v2739_v14, 0.0  ;;  %v3015_v39 = vadd.f32 %v5017_v2, %v2871_v38  ;;  %v2742_v20 = vadd.f32 %v2741_v45, %v7160_v61  ;;  %v3006_v5 = vpop.f32.mrb[95].mxu1 }
 0x443   :  { %v3075_v25 = vadd.f32 %v3074_v0, %v3060_v50  ;;  %v3046_v56 = vmax.f32 %v3004_v37, 0.0  ;;  %v3033_v54 = vmax.f32 %v2750_v60, 0.0  ;;  %v3007_v7 = vadd.f32 %v3006_v5, %v7173_v1 }
 0x444   :  { %v3064_v24 = vmul.f32 %v3048_v13, %v3032_v44  ;;  %v3049_v55 = vmax.f32 %v3015_v39, 0.0  ;;  %v3031_v12 = vmax.f32 %v2742_v20, 0.0 }
 0x445   :  { %v3062_v17 = vmul.f32 %v3046_v56, %v3030_v62  ;;  %v3076_v36 = vadd.f32 %v3075_v25, %v3061_v63  ;;  %v3047_v35 = vmax.f32 %v3007_v7, 0.0 }
 0x446   :  { %v3065_v8 = vmul.f32 %v3049_v55, %v3033_v54  ;;  %v5036_v21 = vpop.f32.mrb[96].mxu0 }
 0x447   :  { %v3077_v29 = vadd.f32 %v3076_v36, %v3062_v17  ;;  %v3063_v47 = vmul.f32 %v3047_v35, %v3031_v12  ;;  %v5068_v18 = vpop.f32.mrb[96].mxu1  ;;  %v3276_v43 = vpop.f32.mrb[97].mxu0  ;;  %v5265_v17 = vld [vmem:[%s7287_s4 + $0x8] sm:$0xff]   ;;  %v5267_v35 = vld [vmem:[%s7287_s4 + $0x10] sm:$0xff]  }
 0x448   :  { %v3437_v49 = vpop.f32.mrb[97].mxu1  ;;  %v5037_v61 = vpop.f32.mrb[98].mxu0  ;;  %v5266_v36 = vld [vmem:[%s7288_s5 + $0x8] sm:$0xff]  }
 0x449   :  { %v3078_v58 = vadd.f32 %v3077_v29, %v3063_v47  ;;  %v3517_v22 = vpack.c.bf16 %v5037_v61, %v5036_v21  ;;  %v5069_v31 = vpop.f32.mrb[98].mxu1  ;;  %v3279_v30 = vpop.f32.mrb[99].mxu0  ;;  %v5269_v21 = vld [vmem:[%s7287_s4 + $0x18] sm:$0xff]   ;;  %v5271_v47 = vld [vmem:[%s7287_s4 + $0x20] sm:$0xff]   ;;  %v5275_v61 = vld [vmem:[%s7287_s4 + $0x30] sm:$0xff]  }
 0x44a   :  { %v3782_v26 = vpack.c.bf16 %v5069_v31, %v5068_v18  ;;  %v3516_v1 = vpack.c.bf16 %v3279_v30, %v3276_v43  ;;  %v3440_v51 = vpop.f32.mrb[99].mxu1  ;;  %v5270_v29 = vld [vmem:[%s7288_s5 + $0x18] sm:$0xff]   ;;  %v5272_v18 = vld [vmem:[%s7288_s5 + $0x20] sm:$0xff]   ;;  %v5273_v43 = vld [vmem:[%s7287_s4 + $0x28] sm:$0xff]   ;;  %v3548_v30 = vpop.permute.xlu1 %3547 }
 0x44b   :  { %v3079_v40 = vadd.f32 %v3078_v58, %v3064_v24  ;;  %v3781_v52 = vpack.c.bf16 %v3440_v51, %v3437_v49  ;;  %v5274_v49 = vld [vmem:[%s7288_s5 + $0x28] sm:$0xff]   ;;  %v5276_v58 = vld [vmem:[%s7288_s5 + $0x30] sm:$0xff]   ;;  %v5278_v31 = vld [vmem:[%s7288_s5 + $0x38] sm:$0xff]  }
 0x44c   :  { %5082 = vmatprep.subr.bf16.mxu0 %v3516_v1 }
 0x44d   :  { %v3080_v46 = vadd.f32 %v3079_v40, %v3065_v8  ;;  %5114 = vmatprep.subr.bf16.mxu1 %v3781_v52  ;;  %5083 = vmatpush3.bf16.msra.mxu0 %v3516_v1  ;;  %v5268_v8 = vld [vmem:[%s7288_s5 + $0x10] sm:$0xff]  }
 0x44e   :  { %5115 = vmatpush3.bf16.msra.mxu1 %v3781_v52  ;;  %v5040_v19 = vpop.f32.mrb[100].mxu0  ;;  %5084 = vmatprep.subr.bf16.mxu0 %v3517_v22  ;;  %v3558_v1 = vpop.permute.xlu1 %3557 }
 0x44f   :  { %v3081_v3 = vrot.slane %v3080_v46, 4  ;;  %v5072_v27 = vpop.f32.mrb[100].mxu1  ;;  %5116 = vmatprep.subr.bf16.mxu1 %v3782_v26  ;;  %v3292_v11 = vpop.f32.mrb[101].mxu0 }
 0x450   :  { %v3453_v16 = vpop.f32.mrb[101].mxu1  ;;  %v5041_v50 = vpop.f32.mrb[102].mxu0 }
 0x451   :  { %v3082_v32 = vadd.f32 %v3081_v3, %v3080_v46  ;;  %v3519_v53 = vpack.c.bf16 %v5041_v50, %v5040_v19  ;;  %v5073_v38 = vpop.f32.mrb[102].mxu1  ;;  %v3295_v33 = vpop.f32.mrb[103].mxu0  ;;  %5085 = vmatpush3.bf16.msra.mxu0 %v3517_v22  ;;  %v5277_v22 = vld [vmem:[%s7287_s4 + $0x38] sm:$0xff]   ;;  %s5305_s4 = smov [#allocation2]  }
 0x452   :  { %v3784_v42 = vpack.c.bf16 %v5073_v38, %v5072_v27  ;;  %v3518_v6 = vpack.c.bf16 %v3295_v33, %v3292_v11  ;;  %v3456_v34 = vpop.f32.mrb[103].mxu1  ;;  %5117 = vmatpush3.bf16.msra.mxu1 %v3782_v26  ;;  %v3543_v26 = vpop.permute.xlu0 %3542  ;;  %s4106_s5 = sshll.u32 %s5305_s4, 4  ;;  %s4107_s5 = int_to_ptr.vmem [resolvable:$true] %s4106_s5 }
 0x453   :  { %v3083_v63 = vrot.slane %v3082_v32, 2  ;;  %v3783_v28 = vpack.c.bf16 %v3456_v34, %v3453_v16  ;;  %v3813_v40 = vpop.permute.xlu1 %3812  ;;  %s5279_s2 = scalar_lea.vmem %s4107_s5, 64  ;;  %p5284_p1 = scmp.lt.s32.totalorder %s4107_s5, %s4107_s5 }
 0x454   :  { %5086 = vmatprep.subr.bf16.mxu0 %v3518_v6  ;;  %p5280_p0 = scmp.ne.s32.totalorder %s4107_s5, %s5279_s2  ;;  %p5285_p2 = scmp.lt.s32.totalorder %s5279_s2, %s5279_s2 }
 0x455   :  { %5118 = vmatprep.subr.bf16.mxu1 %v3783_v28  ;;  %5087 = vmatpush3.bf16.msra.mxu0 %v3518_v6  ;;  %v3084_v59 = vadd.f32 %v3083_v63, %v3082_v32 }
 0x456   :  { %5119 = vmatpush3.bf16.msra.mxu1 %v3783_v28  ;;  %v5044_v48 = vpop.f32.mrb[104].mxu0  ;;  %5088 = vmatprep.subr.bf16.mxu0 %v3519_v53  ;;  %v3553_v51 = vpop.permute.xlu0 %3552  ;;  %p5286_p3 = por %p5285_p2, %p5284_p1 }
 0x457   :  { %v5076_v4 = vpop.f32.mrb[104].mxu1  ;;  %5120 = vmatprep.subr.bf16.mxu1 %v3784_v42  ;;  %v3308_v9 = vpop.f32.mrb[105].mxu0  ;;  %v3085_v10 = vrot.slane %v3084_v59, 1 }
 0x458   :  { %v3469_v41 = vpop.f32.mrb[105].mxu1  ;;  %v5045_v14 = vpop.f32.mrb[106].mxu0  ;;  %p5287_p4 = pnand %p5286_p3, %p5280_p0 }
 0x459   :  { %v3521_v23 = vpack.c.bf16 %v5045_v14, %v5044_v48  ;;  %v5077_v15 = vpop.f32.mrb[106].mxu1  ;;  %v3311_v0 = vpop.f32.mrb[107].mxu0  ;;  %5089 = vmatpush3.bf16.msra.mxu0 %v3519_v53  ;;  %v3086_v44 = vadd.f32 %v3085_v10, %v3084_v59 }
 0x45a   :  { %v3786_v37 = vpack.c.bf16 %v5077_v15, %v5076_v4  ;;  %v3520_v60 = vpack.c.bf16 %v3311_v0, %v3308_v9  ;;  %v3472_v2 = vpop.f32.mrb[107].mxu1  ;;  %5121 = vmatpush3.bf16.msra.mxu1 %v3784_v42  ;;  %v3808_v52 = vpop.permute.xlu0 %3807 }
 0x45b   :  { %v3785_v45 = vpack.c.bf16 %v3472_v2, %v3469_v41  ;;  %3087 = vst.msk [vmem:[#allocation2 + $0x2] sm:$0x1] %vm6274_vm11, %v3086_v44  ;;  %v3823_v46 = vpop.permute.xlu1 %3822 }
 0x45c   :  { %5090 = vmatprep.subr.bf16.mxu0 %v3520_v60 }
 0x45d   :  { %5122 = vmatprep.subr.bf16.mxu1 %v3785_v45  ;;  %5091 = vmatpush3.bf16.msra.mxu0 %v3520_v60 }
 0x45e   :  { %5123 = vmatpush3.bf16.msra.mxu1 %v3785_v45  ;;  %v5048_v13 = vpop.f32.mrb[108].mxu0  ;;  %5092 = vmatprep.subr.bf16.mxu0 %v3521_v23  ;;  %v3818_v19 = vpop.permute.xlu0 %3817 }
 0x45f   :  { %v5080_v62 = vpop.f32.mrb[108].mxu1  ;;  %5124 = vmatprep.subr.bf16.mxu1 %v3786_v37  ;;  %v3324_v39 = vpop.f32.mrb[109].mxu0 }
 0x460   :  { %v3485_v20 = vpop.f32.mrb[109].mxu1  ;;  %v5049_v5 = vpop.f32.mrb[110].mxu0 }
 0x461   :  { %v3523_v25 = vpack.c.bf16 %v5049_v5, %v5048_v13  ;;  %v5081_v56 = vpop.f32.mrb[110].mxu1  ;;  %v3327_v54 = vpop.f32.mrb[111].mxu0  ;;  %5093 = vmatpush3.bf16.msra.mxu0 %v3521_v23 }
 0x462   :  { %v3788_v7 = vpack.c.bf16 %v5081_v56, %v5080_v62  ;;  %v3522_v24 = vpack.c.bf16 %v3327_v54, %v3324_v39  ;;  %v3488_v55 = vpop.f32.mrb[111].mxu1  ;;  %5125 = vmatpush3.bf16.msra.mxu1 %v3786_v37  ;;  %v3828_v3 = vpop.permute.xlu1 %3827 }
 0x463   :  { %v3787_v12 = vpack.c.bf16 %v3488_v55, %v3485_v20  ;;  %v3563_v27 = vpop.permute.xlu0 %3562 }
 0x464   :  { %5094 = vmatprep.subr.bf16.mxu0 %v3522_v24 }
 0x465   :  { %5126 = vmatprep.subr.bf16.mxu1 %v3787_v12  ;;  %5095 = vmatpush3.bf16.msra.mxu0 %v3522_v24 }
 0x466   :  { %5127 = vmatpush3.bf16.msra.mxu1 %v3787_v12  ;;  %5096 = vmatprep.subr.bf16.mxu0 %v3523_v25  ;;  %v7230_v11 = vpop.permute.xlu1 %3832 }
 0x467   :  { %5128 = vmatprep.subr.bf16.mxu1 %v3788_v7  ;;  %v3568_v16 = vpop.permute.xlu0 %3567 }
 0x469   :  { %5097 = vmatpush3.bf16.msra.mxu0 %v3523_v25 }
 0x46a   :  { %5129 = vmatpush3.bf16.msra.mxu1 %v3788_v7  ;;  %v3838_v50 = vpop.permute.xlu1 %3837 }
 0x46b   :  { %v3573_v32 = vpop.permute.xlu0 %3572 }
 0x46c   :  { %5099 = vmatmul.mubr.bf16.vlgmr.msra.gmra.mrb[112].mxu0 %v5265_v17 }
 0x46d   :  { %5131 = vmatmul.mubr.bf16.vlgmr.msra.gmra.mrb[112].mxu1 %v5266_v36  ;;  %5102 = vmatprep.mubr.bf16.mxu0 %v5267_v35 }
 0x46e   :  { %5134 = vmatprep.mubr.bf16.mxu1 %v5268_v8  ;;  %v3843_v53 = vpop.permute.xlu1 %3842 }
 0x46f   :  { %v3578_v38 = vpop.permute.xlu0 %3577 }
 0x472   :  { %v7232_v33 = vpop.permute.xlu1 %3847 }
 0x473   :  { %v7234_v42 = vpop.permute.xlu0 %3582 }
 0x474   :  { %5103 = vmatmul.mubr.bf16.gmra.mrb[116].mxu0 %v5269_v21 }
 0x475   :  { %5135 = vmatmul.mubr.bf16.gmra.mrb[116].mxu1 %v5270_v29  ;;  %5106 = vmatprep.mubr.bf16.mxu0 %v5271_v47 }
 0x476   :  { %5138 = vmatprep.mubr.bf16.mxu1 %v5272_v18  ;;  %v7236_v6 = vpop.permute.xlu1 %3852 }
 0x477   :  { %v7238_v34 = vpop.permute.xlu0 %3587 }
 0x47a   :  { %v7240_v63 = vpop.permute.xlu1 %3857 }
 0x47b   :  { %v7242_v28 = vpop.permute.xlu0 %3592 }
 0x47c   :  { %5107 = vmatmul.mubr.bf16.gmra.mrb[120].mxu0 %v5273_v43 }
 0x47d   :  { %5139 = vmatmul.mubr.bf16.gmra.mrb[120].mxu1 %v5274_v49  ;;  %5110 = vmatprep.mubr.bf16.mxu0 %v5275_v61 }
 0x47e   :  { %5142 = vmatprep.mubr.bf16.mxu1 %v5276_v58  ;;  %v7244_v59 = vpop.permute.xlu1 %3862 }
 0x47f   :  { %v7246_v48 = vpop.permute.xlu0 %3597 }
 0x482   :  { %v7248_v4 = vpop.permute.xlu1 %3867 }
 0x483   :  { %v7250_v9 = vpop.permute.xlu0 %3602 }
 0x484   :  { %5111 = vmatmul.mubr.bf16.gmra.mrb[124].mxu0 %v5277_v22 }
 0x485   :  { %5143 = vmatmul.mubr.bf16.gmra.mrb[124].mxu1 %v5278_v31 }
 0x486   :  { %v7252_v36 = vpop.permute.xlu1 %3872 }
 0x487   :  { %v7254_v21 = vpop.permute.xlu0 %3607 }
 0x53f   :  { %v5100_v10 = vpop.f32.mrb[112].mxu0 }
 0x540   :  { %v3711_v41 = vadd.f32 %v5100_v10, %v3553_v51  ;;  %v5132_v14 = vpop.f32.mrb[112].mxu1  ;;  %v3702_v23 = vpop.f32.mrb[113].mxu0 }
 0x541   :  { %v3976_v15 = vadd.f32 %v5132_v14, %v3818_v19  ;;  %v3703_v0 = vadd.f32 %v3702_v23, %v3543_v26  ;;  %v3967_v44 = vpop.f32.mrb[113].mxu1  ;;  %v5101_v37 = vpop.f32.mrb[114].mxu0 }
 0x542   :  { %v4032_v60 = vmax.f32 %v3711_v41, 0.0  ;;  %v3968_v2 = vadd.f32 %v3967_v44, %v3808_v52  ;;  %v3714_v45 = vadd.f32 %v5101_v37, %v3558_v1  ;;  %v5133_v13 = vpop.f32.mrb[114].mxu1  ;;  %v3705_v62 = vpop.f32.mrb[115].mxu0 }
 0x543   :  { %v4048_v39 = vmax.f32 %v3976_v15, 0.0  ;;  %v4030_v20 = vmax.f32 %v3703_v0, 0.0  ;;  %v3979_v5 = vadd.f32 %v5133_v13, %v3823_v46  ;;  %v3706_v25 = vadd.f32 %v3705_v62, %v3548_v30  ;;  %v3970_v56 = vpop.f32.mrb[115].mxu1 }
 0x544   :  { %v4046_v54 = vmax.f32 %v3968_v2, 0.0  ;;  %v4033_v7 = vmax.f32 %v3714_v45, 0.0  ;;  %v3971_v24 = vadd.f32 %v3970_v56, %v3813_v40 }
 0x545   :  { %v4064_v55 = vmul.f32 %v4048_v39, %v4032_v60  ;;  %v4049_v12 = vmax.f32 %v3979_v5, 0.0  ;;  %v4031_v17 = vmax.f32 %v3706_v25, 0.0  ;;  %v3878_v60 = vpop.permute.xlu1 %3877 }
 0x546   :  { %v4062_v35 = vmul.f32 %v4046_v54, %v4030_v20  ;;  %v4047_v8 = vmax.f32 %v3971_v24, 0.0 }
 0x547   :  { %v4065_v29 = vmul.f32 %v4049_v12, %v4033_v7  ;;  %v5104_v47 = vpop.f32.mrb[116].mxu0 }
 0x548   :  { %v4063_v18 = vmul.f32 %v4047_v8, %v4031_v17  ;;  %v3727_v43 = vadd.f32 %v5104_v47, %v3573_v32  ;;  %v5136_v49 = vpop.f32.mrb[116].mxu1  ;;  %v3718_v61 = vpop.f32.mrb[117].mxu0 }
 0x549   :  { %v3992_v58 = vadd.f32 %v5136_v49, %v3838_v50  ;;  %v3719_v22 = vadd.f32 %v3718_v61, %v3563_v27  ;;  %v3983_v31 = vpop.f32.mrb[117].mxu1  ;;  %v5105_v30 = vpop.f32.mrb[118].mxu0 }
 0x54a   :  { %v4078_v26 = vadd.f32 %v4063_v18, %v4062_v35  ;;  %v4036_v1 = vmax.f32 %v3727_v43, 0.0  ;;  %v3984_v51 = vadd.f32 %v3983_v31, %v3828_v3  ;;  %v3730_v40 = vadd.f32 %v5105_v30, %v3578_v38  ;;  %v5137_v52 = vpop.f32.mrb[118].mxu1  ;;  %v3721_v46 = vpop.f32.mrb[119].mxu0 }
 0x54b   :  { %v4052_v19 = vmax.f32 %v3992_v58, 0.0  ;;  %v4034_v10 = vmax.f32 %v3719_v22, 0.0  ;;  %v3995_v41 = vadd.f32 %v5137_v52, %v3843_v53  ;;  %v3722_v14 = vadd.f32 %v3721_v46, %v3568_v16  ;;  %v3986_v23 = vpop.f32.mrb[119].mxu1  ;;  %v3613_v38 = vpop.permute.xlu0 %3612 }
 0x54c   :  { %v4079_v15 = vadd.f32 %v4078_v26, %v4064_v55  ;;  %v4050_v0 = vmax.f32 %v3984_v51, 0.0  ;;  %v4037_v32 = vmax.f32 %v3730_v40, 0.0  ;;  %v3987_v44 = vadd.f32 %v3986_v23, %v7230_v11 }
 0x54d   :  { %v4068_v50 = vmul.f32 %v4052_v19, %v4036_v1  ;;  %v4053_v27 = vmax.f32 %v3995_v41, 0.0  ;;  %v4035_v37 = vmax.f32 %v3722_v14, 0.0 }
 0x54e   :  { %v4066_v2 = vmul.f32 %v4050_v0, %v4034_v10  ;;  %v4080_v45 = vadd.f32 %v4079_v15, %v4065_v29  ;;  %v4051_v3 = vmax.f32 %v3987_v44, 0.0 }
 0x54f   :  { %v4069_v13 = vmul.f32 %v4053_v27, %v4037_v32  ;;  %v5108_v62 = vpop.f32.mrb[120].mxu0  ;;  %v3618_v26 = vpop.permute.xlu0 %3617 }
 0x550   :  { %v4081_v39 = vadd.f32 %v4080_v45, %v4066_v2  ;;  %v4067_v20 = vmul.f32 %v4051_v3, %v4035_v37  ;;  %v3743_v16 = vadd.f32 %v5108_v62, %v7242_v28  ;;  %v5140_v53 = vpop.f32.mrb[120].mxu1  ;;  %v3734_v5 = vpop.f32.mrb[121].mxu0 }
 0x551   :  { %v4008_v25 = vadd.f32 %v5140_v53, %v7240_v63  ;;  %v3735_v11 = vadd.f32 %v3734_v5, %v7234_v42  ;;  %v3999_v56 = vpop.f32.mrb[121].mxu1  ;;  %v5109_v54 = vpop.f32.mrb[122].mxu0 }
 0x552   :  { %v4082_v7 = vadd.f32 %v4081_v39, %v4067_v20  ;;  %v4040_v24 = vmax.f32 %v3743_v16, 0.0  ;;  %v4000_v55 = vadd.f32 %v3999_v56, %v7232_v33  ;;  %v3746_v12 = vadd.f32 %v5109_v54, %v7246_v48  ;;  %v5141_v17 = vpop.f32.mrb[122].mxu1  ;;  %v3737_v35 = vpop.f32.mrb[123].mxu0 }
 0x553   :  { %v4056_v8 = vmax.f32 %v4008_v25, 0.0  ;;  %v4038_v29 = vmax.f32 %v3735_v11, 0.0  ;;  %v4011_v28 = vadd.f32 %v5141_v17, %v7244_v59  ;;  %v3738_v47 = vadd.f32 %v3737_v35, %v7238_v34  ;;  %v4002_v18 = vpop.f32.mrb[123].mxu1  ;;  %v3883_v33 = vpop.permute.xlu1 %3882 }
 0x554   :  { %v4083_v63 = vadd.f32 %v4082_v7, %v4068_v50  ;;  %v4054_v43 = vmax.f32 %v4000_v55, 0.0  ;;  %v4041_v42 = vmax.f32 %v3746_v12, 0.0  ;;  %v4003_v49 = vadd.f32 %v4002_v18, %v7236_v6 }
 0x555   :  { %v4072_v61 = vmul.f32 %v4056_v8, %v4040_v24  ;;  %v4057_v58 = vmax.f32 %v4011_v28, 0.0  ;;  %v4039_v22 = vmax.f32 %v3738_v47, 0.0 }
 0x556   :  { %v4070_v31 = vmul.f32 %v4054_v43, %v4038_v29  ;;  %v4084_v48 = vadd.f32 %v4083_v63, %v4069_v13  ;;  %v4055_v30 = vmax.f32 %v4003_v49, 0.0 }
 0x557   :  { %v4073_v1 = vmul.f32 %v4057_v58, %v4041_v42  ;;  %v5112_v51 = vpop.f32.mrb[124].mxu0 }
 0x558   :  { %v4085_v40 = vadd.f32 %v4084_v48, %v4070_v31  ;;  %v4071_v59 = vmul.f32 %v4055_v30, %v4039_v22  ;;  %v3759_v52 = vadd.f32 %v5112_v51, %v3613_v38  ;;  %v5144_v34 = vpop.f32.mrb[124].mxu1  ;;  %v3750_v46 = vpop.f32.mrb[125].mxu0 }
 0x559   :  { %v4024_v19 = vadd.f32 %v5144_v34, %v3878_v60  ;;  %v3751_v10 = vadd.f32 %v3750_v46, %v7250_v9  ;;  %v4015_v41 = vpop.f32.mrb[125].mxu1  ;;  %v5113_v6 = vpop.f32.mrb[126].mxu0 }
 0x55a   :  { %v4086_v14 = vadd.f32 %v4085_v40, %v4071_v59  ;;  %v4044_v23 = vmax.f32 %v3759_v52, 0.0  ;;  %v4016_v15 = vadd.f32 %v4015_v41, %v7248_v4  ;;  %v3762_v0 = vadd.f32 %v5113_v6, %v3618_v26  ;;  %v5145_v32 = vpop.f32.mrb[126].mxu1  ;;  %v3753_v44 = vpop.f32.mrb[127].mxu0 }
 0x55b   :  { %v4060_v50 = vmax.f32 %v4024_v19, 0.0  ;;  %v4042_v27 = vmax.f32 %v3751_v10, 0.0  ;;  %v4027_v37 = vadd.f32 %v5145_v32, %v3883_v33  ;;  %v3754_v2 = vadd.f32 %v3753_v44, %v7254_v21  ;;  %v4018_v45 = vpop.f32.mrb[127].mxu1 }
 0x55c   :  { %v4087_v3 = vadd.f32 %v4086_v14, %v4072_v61  ;;  %v4058_v38 = vmax.f32 %v4016_v15, 0.0  ;;  %v4045_v60 = vmax.f32 %v3762_v0, 0.0  ;;  %v4019_v9 = vadd.f32 %v4018_v45, %v7252_v36 }
 0x55d   :  { %v4076_v13 = vmul.f32 %v4060_v50, %v4044_v23  ;;  %v4061_v62 = vmax.f32 %v4027_v37, 0.0  ;;  %v4043_v39 = vmax.f32 %v3754_v2, 0.0 }
 0x55e   :  { %v4074_v20 = vmul.f32 %v4058_v38, %v4042_v27  ;;  %v4088_v16 = vadd.f32 %v4087_v3, %v4073_v1  ;;  %v4059_v4 = vmax.f32 %v4019_v9, 0.0 }
 0x55f   :  { %v4077_v53 = vmul.f32 %v4061_v62, %v4045_v60 }
 0x560   :  { %v4089_v5 = vadd.f32 %v4088_v16, %v4074_v20  ;;  %v4075_v25 = vmul.f32 %v4059_v4, %v4043_v39 }
 0x562   :  { %v4090_v11 = vadd.f32 %v4089_v5, %v4075_v25 }
 0x564   :  { %v4091_v56 = vadd.f32 %v4090_v11, %v4076_v13 }
 0x566   :  { %v4092_v54 = vadd.f32 %v4091_v56, %v4077_v53 }
 0x568   :  { %v4093_v7 = vrot.slane %v4092_v54, 4 }
 0x56a   :  { %v4094_v21 = vadd.f32 %v4093_v7, %v4092_v54 }
 0x56c   :  { %v4095_v24 = vrot.slane %v4094_v21, 2 }
 0x56e   :  { %v4096_v55 = vadd.f32 %v4095_v24, %v4094_v21 }
 0x570   :  { %v4097_v12 = vrot.slane %v4096_v55, 1 }
 0x572   :  { %v4098_v36 = vadd.f32 %v4097_v12, %v4096_v55 }
 0x574   :  { %4099 = vst.msk [vmem:[#allocation2 + $0x3] sm:$0x1] %vm6274_vm11, %v4098_v36 }
 0x575   :  { %5290 = shalt.err (!%p5287_p4)
}
 0x576   :  { %s5291_s10 = scalar_lea.hbm %s7291_s8, 64 }
 0x577   :  { %p5292_p5 = scmp.ne.s32.totalorder %s7291_s8, %s5291_s10  ;;  %p5295_p6 = scmp.lt.u32.totalorder %s5291_s10, %s7291_s8 }
 0x579   :  { %p5297_p7 = pnand %p5295_p6, %p5292_p5 }
 0x57b   :  { %5300 = shalt.err (!%p5297_p7)
}
 0x57c   :  { %4109 = dma.vmem_to_hbm [thread:$0]  %s4107_s5, 64, %s7291_s8, [#allocation3]  }
 0x57d   :  { %5301 = dma.done.wait [#allocation3], 64  }
 0x57e   :  { %5302 = vsyncadd [#allocation3], 4294967232 }
 0x57f   :  { %4113 = vsyncpa [#allocation3], 1 }

</bundles_post_ra>
